<compile_context>
chip_gen: v5e
topology: v5e:2x2
jax: 0.10.0
libtpu: 0.0.40
codegen_flags: <defaults>
</compile_context>

<pallas_src>
import functools

import jax
import jax.numpy as jnp
from jax import lax
from jax.experimental import pallas as pl
from jax.experimental.pallas import tpu as pltpu

LN_EPS = 1e-5          # nn.LayerNorm default
BF16 = jnp.bfloat16

_VMEM_LIMIT_CACHE = None


def _vmem_limit():
    """Generation-dependent scoped-VMEM limit: ~75% of physical, clamped."""
    global _VMEM_LIMIT_CACHE
    if _VMEM_LIMIT_CACHE is None:
        try:
            cap = int(pltpu.get_tpu_info().vmem_capacity_bytes)
        except Exception:  # noqa: BLE001 - fall back if query unsupported
            cap = 64 * 1024 * 1024          # conservative (v7x physical VMEM)
        _VMEM_LIMIT_CACHE = max(32 * 1024 * 1024,
                                min(cap * 3 // 4, 100 * 1024 * 1024))
    return _VMEM_LIMIT_CACHE


def _layernorm(x, gamma, beta):
    mean = jnp.mean(x, axis=-1, keepdims=True)
    var = jnp.mean(jnp.square(x - mean), axis=-1, keepdims=True)
    return (x - mean) * lax.rsqrt(var + LN_EPS) * gamma + beta


def _const_index_map(ndim):
    return lambda *_: (0,) * ndim


# ---------------------------------------------------------------------------
# 1) Embedding: double-buffered DMA row-gather + position add + LayerNorm
# ---------------------------------------------------------------------------
def roberta_embed_kernel(ids_ref, tok_hbm, pos_ref, gamma_ref, beta_ref,
                         out_ref, gather_buf, sems, *, seq_len):
    t = pl.program_id(0)
    n_tiles = pl.num_programs(0)
    TQ, D = gather_buf.shape[1], gather_buf.shape[2]
    spt = TQ // seq_len
    slot = t % 2

    def issue(tile, slot_):
        base = tile * TQ
        for i in range(TQ):
            pltpu.make_async_copy(
                tok_hbm.at[pl.ds(ids_ref[base + i], 1)],   # (1, D) HBM row
                gather_buf.at[slot_, pl.ds(i, 1)],          # (1, D) VMEM row
                sems.at[slot_],                             # shared per-slot sem
            ).start()

    # Prime the pipeline on the first grid step.
    @pl.when(t == 0)
    def _():
        issue(0, 0)

    # Prefetch next tile's rows into the other slot before computing this tile.
    @pl.when(t + 1 < n_tiles)
    def _():
        issue(t + 1, 1 - slot)

    # Drain this slot: TQ equal-sized waits balance the TQ signals on the shared
    # semaphore regardless of completion order.
    for i in range(TQ):
        pltpu.make_async_copy(
            tok_hbm.at[pl.ds(0, 1)],
            gather_buf.at[slot, pl.ds(i, 1)],
            sems.at[slot],
        ).wait()

    pos = pos_ref[...].astype(jnp.float32)                  # (S, D)
    if spt > 1:
        pos = jnp.tile(pos, (spt, 1))                       # (TQ, D)
    x = gather_buf[slot].astype(jnp.float32) + pos
    y = _layernorm(x, gamma_ref[...].astype(jnp.float32),
                   beta_ref[...].astype(jnp.float32))
    out_ref[...] = y.astype(out_ref.dtype)                  # lane-dense (TQ, D)


def roberta_embedding(input_ids, tok_table, pos_table, gamma, beta,
                      *, seqs_per_tile=1):
    """Returns the embedded sequence flattened to (B*S, D), bf16."""
    B, S = input_ids.shape
    V, D = tok_table.shape
    TQ = seqs_per_tile * S                 # whole sequences per tile -> TQ > S ok
    assert (B * S) % TQ == 0 and TQ % 8 == 0 and S % 8 == 0 and D % 128 == 0
    n_tiles = (B * S) // TQ

    ids_flat = input_ids.reshape(-1).astype(jnp.int32)
    gamma2d = gamma.reshape(1, D)
    beta2d = beta.reshape(1, D)

    return pl.pallas_call(
        functools.partial(roberta_embed_kernel, seq_len=S),
        out_shape=jax.ShapeDtypeStruct((B * S, D), BF16),
        grid_spec=pltpu.PrefetchScalarGridSpec(
            num_scalar_prefetch=1,                              # ids -> SMEM
            grid=(n_tiles,),
            in_specs=[
                pl.BlockSpec(memory_space=pl.ANY),              # token table (HBM)
                pl.BlockSpec((S, D), lambda t, ids: (0, 0)),    # pos rows 0..S-1
                pl.BlockSpec((1, D), lambda t, ids: (0, 0)),    # LN gamma
                pl.BlockSpec((1, D), lambda t, ids: (0, 0)),    # LN beta
            ],
            out_specs=pl.BlockSpec((TQ, D), lambda t, ids: (t, 0)),
            scratch_shapes=[
                pltpu.VMEM((2, TQ, D), tok_table.dtype),        # gather double-buffer
                pltpu.SemaphoreType.DMA((2,)),                  # one sem per slot
            ],
        ),
        compiler_params=pltpu.CompilerParams(
            # Cross-step gather double-buffering carries DMA state between grid
            # steps -> this axis must execute sequentially ("arbitrary").
            dimension_semantics=("arbitrary",),
            vmem_limit_bytes=_vmem_limit(),
        ),
    )(ids_flat, tok_table, pos_table, gamma2d, beta2d)


# ---------------------------------------------------------------------------
# 2) Fused transformer block: fused QKV, per-sequence attention, FFN, 2x LN
# ---------------------------------------------------------------------------
def transformer_block_kernel(x_ref,
                             wqkv_ref, bqkv_ref, wo_ref, bo_ref,
                             g1_ref, b1_ref,
                             wf1_ref, bf1_ref, wf2_ref, bf2_ref,
                             g2_ref, b2_ref, out_ref, *, seq_len):
    R, D = x_ref.shape                      # R = seqs_per_block * seq_len rows
    S = seq_len
    spt = R // S

    x = x_ref[...]                          # bf16 (R, D)
    x_f32 = x.astype(jnp.float32)

    # Fused Q|K|V projection: one (R, D) x (D, 3D) MXU push, f32 accumulation.
    qkv = jnp.dot(x, wqkv_ref[...], preferred_element_type=jnp.float32) \
        + bqkv_ref[...]
    q = qkv[:, :D].reshape(spt, S, D).astype(BF16)
    k = qkv[:, D:2 * D].reshape(spt, S, D).astype(BF16)
    v = qkv[:, 2 * D:].reshape(spt, S, D).astype(BF16)

    # scores = Q K^T / sqrt(D), batched per sequence (no cross-sequence attention).
    scores = jnp.einsum("bqd,bkd->bqk", q, k,
                        preferred_element_type=jnp.float32) * (D ** -0.5)
    scores = scores - jnp.max(scores, axis=-1, keepdims=True)
    e = jnp.exp(scores)
    p = e * pl.reciprocal(jnp.sum(e, axis=-1, keepdims=True), approx=True)

    attn = jnp.einsum("bqk,bkd->bqd", p.astype(BF16), v,
                      preferred_element_type=jnp.float32).reshape(R, D)
    attn = jnp.dot(attn.astype(BF16), wo_ref[...],
                   preferred_element_type=jnp.float32) + bo_ref[...]

    h = _layernorm(x_f32 + attn, g1_ref[...], b1_ref[...])   # norm1(x + attn(x))

    f = jnp.dot(h.astype(BF16), wf1_ref[...],
                preferred_element_type=jnp.float32) + bf1_ref[...]
    f = jnp.maximum(f, 0.0)
    f = jnp.dot(f.astype(BF16), wf2_ref[...],
                preferred_element_type=jnp.float32) + bf2_ref[...]

    out_ref[...] = _layernorm(h + f, g2_ref[...], b2_ref[...]).astype(out_ref.dtype)


def transformer_block(x_flat, lp, *, seq_len, seqs_per_block=None):
    N, D = x_flat.shape
    B = N // seq_len
    if seqs_per_block is None:
        spb = max(1, 256 // seq_len)        # aim ~256 rows per MXU push
        if B >= 2:
            spb = min(spb, B // 2)          # keep >=2 parallel steps (v7x 2 TCs)
        spb = max(1, spb)
        while B % spb:
            spb -= 1
    else:
        spb = seqs_per_block
    assert B % spb == 0
    R = spb * seq_len

    # Fuse QKV weights/biases; matmul weights -> bf16, biases / LN params stay f32.
    wqkv = jnp.concatenate([lp["wq"], lp["wk"], lp["wv"]], axis=1).astype(BF16)
    bqkv = jnp.concatenate([lp["bq"], lp["bk"], lp["bv"]], axis=1)
    weights = [wqkv, bqkv,
               lp["wo"].astype(BF16), lp["bo"],
               lp["ln1_g"], lp["ln1_b"],
               lp["wf1"].astype(BF16), lp["bf1"],
               lp["wf2"].astype(BF16), lp["bf2"],
               lp["ln2_g"], lp["ln2_b"]]
    w_specs = [pl.BlockSpec(w.shape, _const_index_map(w.ndim)) for w in weights]

    return pl.pallas_call(
        functools.partial(transformer_block_kernel, seq_len=seq_len),
        out_shape=jax.ShapeDtypeStruct((N, D), BF16),
        grid=(B // spb,),
        in_specs=[pl.BlockSpec((R, D), lambda b: (b, 0))] + w_specs,
        out_specs=pl.BlockSpec((R, D), lambda b: (b, 0)),
        compiler_params=pltpu.CompilerParams(
            dimension_semantics=("parallel",),
            vmem_limit_bytes=_vmem_limit(),
        ),
    )(x_flat.astype(BF16), *weights)


# ---------------------------------------------------------------------------
# 3) LM head: (token tile x vocab tile) bf16 matmul with f32 accumulation
# ---------------------------------------------------------------------------
def lm_head_kernel(x_ref, w_ref, b_ref, out_ref):
    out_ref[...] = (jnp.dot(x_ref[...], w_ref[...],
                            preferred_element_type=jnp.float32)
                    + b_ref[...]).astype(out_ref.dtype)


def lm_head(x_flat, w_lm, b_lm, *, tile_m=512, tile_n=2048,
            out_dtype=jnp.float32):
    # TODO(synk): at production vocab, write bf16 logits (or only masked rows) to
    #             halve the dominant (N, V) output store on v5e/v6e.
    N, D = x_flat.shape
    V = w_lm.shape[1]
    TM = min(tile_m, N)
    TN = min(tile_n, V)
    if V // TN < 2 and V % 256 == 0:
        TN = V // 2                         # >=2 vocab tiles (v7x megacore)
    assert N % TM == 0 and V % TN == 0 and TM % 8 == 0 and TN % 128 == 0
    b2d = b_lm.reshape(1, V)

    return pl.pallas_call(
        lm_head_kernel,
        out_shape=jax.ShapeDtypeStruct((N, V), out_dtype),
        grid=(N // TM, V // TN),
        in_specs=[
            pl.BlockSpec((TM, D), lambda i, j: (i, 0)),
            pl.BlockSpec((D, TN), lambda i, j: (0, j)),
            pl.BlockSpec((1, TN), lambda i, j: (0, j)),
        ],
        out_specs=pl.BlockSpec((TM, TN), lambda i, j: (i, j)),
        compiler_params=pltpu.CompilerParams(
            dimension_semantics=("parallel", "parallel"),
            vmem_limit_bytes=_vmem_limit(),
        ),
    )(x_flat.astype(BF16), w_lm.astype(BF16), b2d)


# ---------------------------------------------------------------------------
# Full forward
# ---------------------------------------------------------------------------
def roberta_forward(input_ids, params):
    B, S = input_ids.shape
    x = roberta_embedding(input_ids, params["tok_table"], params["pos_table"],
                          params["ln_e_g"], params["ln_e_b"])       # (B*S, D) bf16
    for lp in params["layers"]:
        x = transformer_block(x, lp, seq_len=S)                     # (B*S, D) bf16
    logits = lm_head(x, params["w_lm"], params["b_lm"])             # (B*S, V) f32
    return logits.reshape(B, S, -1)


# ---------------------------------------------------------------------------
# Pure-JAX reference mirroring the kernel's precision policy
# (bf16 matmul operands, f32 accumulation / LayerNorm / softmax).
# ---------------------------------------------------------------------------
def reference_forward(input_ids, params):
    S = input_ids.shape[1]
    x = params["tok_table"][input_ids] + params["pos_table"][:S][None, :, :]
    x = _layernorm(x, params["ln_e_g"], params["ln_e_b"]).astype(BF16)
    for lp in params["layers"]:
        D = x.shape[-1]
        xf = x.astype(jnp.float32)
        wqkv = jnp.concatenate([lp["wq"], lp["wk"], lp["wv"]], axis=1).astype(BF16)
        bqkv = jnp.concatenate([lp["bq"], lp["bk"], lp["bv"]], axis=1)
        qkv = jnp.dot(x, wqkv, preferred_element_type=jnp.float32) + bqkv
        q = qkv[..., :D].astype(BF16)
        k = qkv[..., D:2 * D].astype(BF16)
        v = qkv[..., 2 * D:].astype(BF16)
        s = jnp.einsum("btd,bsd->bts", q, k,
                       preferred_element_type=jnp.float32) * (D ** -0.5)
        s = s - jnp.max(s, axis=-1, keepdims=True)
        e = jnp.exp(s)
        p = e / jnp.sum(e, axis=-1, keepdims=True)
        attn = jnp.einsum("bts,bsd->btd", p.astype(BF16), v,
                          preferred_element_type=jnp.float32)
        attn = jnp.dot(attn.astype(BF16), lp["wo"].astype(BF16),
                       preferred_element_type=jnp.float32) + lp["bo"]
        h = _layernorm(xf + attn, lp["ln1_g"], lp["ln1_b"])
        f = jnp.dot(h.astype(BF16), lp["wf1"].astype(BF16),
                    preferred_element_type=jnp.float32) + lp["bf1"]
        f = jnp.maximum(f, 0.0)
        f = jnp.dot(f.astype(BF16), lp["wf2"].astype(BF16),
                    preferred_element_type=jnp.float32) + lp["bf2"]
        x = _layernorm(h + f, lp["ln2_g"], lp["ln2_b"]).astype(BF16)
    return jnp.dot(x, params["w_lm"].astype(BF16),
                   preferred_element_type=jnp.float32) + params["b_lm"]


def init_params(key, vocab_size, embed_dim, ff_hidden, num_layers, max_len):
    keys = iter(jax.random.split(key, 64))

    def nrm(shape, scale):
        return jax.random.normal(next(keys), shape, dtype=jnp.float32) * scale

    D, F = embed_dim, ff_hidden
    params = {
        "tok_table": nrm((vocab_size, D), 1.0),
        "pos_table": nrm((max_len, D), 1.0),
        "ln_e_g": 1.0 + nrm((1, D), 0.1),
        "ln_e_b": nrm((1, D), 0.1),
        "layers": [],
        # PyTorch nn.Linear stores (out, in); we keep the transposed (in, out)
        # layout so kernels feed the MXU without an in-kernel transpose.
        "w_lm": nrm((D, vocab_size), 0.05),
        "b_lm": nrm((1, vocab_size), 0.05),
    }
    for _ in range(num_layers):
        params["layers"].append({
            "wq": nrm((D, D), 0.05), "bq": nrm((1, D), 0.05),
            "wk": nrm((D, D), 0.05), "bk": nrm((1, D), 0.05),
            "wv": nrm((D, D), 0.05), "bv": nrm((1, D), 0.05),
            "wo": nrm((D, D), 0.05), "bo": nrm((1, D), 0.05),
            "ln1_g": 1.0 + nrm((1, D), 0.1), "ln1_b": nrm((1, D), 0.1),
            "wf1": nrm((D, F), 0.05), "bf1": nrm((1, F), 0.05),
            "wf2": nrm((F, D), 0.05), "bf2": nrm((1, D), 0.05),
            "ln2_g": 1.0 + nrm((1, D), 0.1), "ln2_b": nrm((1, D), 0.1),
        })
    return params


if __name__ == "__main__":
    # Small shapes consistent with the module (embed_dim=256, num_heads=8, ff=512).
    vocab_size = 512
    embed_dim = 256
    ff_hidden = 512
    num_layers = 2
    max_len = 64
    B, S = 2, 16

    key = jax.random.PRNGKey(0)
    k_ids, k_par = jax.random.split(key)
    input_ids = jax.random.randint(k_ids, (B, S), 0, vocab_size, dtype=jnp.int32)
    params = init_params(k_par, vocab_size, embed_dim, ff_hidden, num_layers, max_len)

    # Run the Pallas forward.
    logits = roberta_forward(input_ids, params)
    logits = jax.block_until_ready(logits)
    assert logits.shape == (B, S, vocab_size)
    assert not jnp.any(jnp.isnan(logits))

    # Embedding wiring check (DMA gather + cross-step double buffer + LN);
    # tolerance covers only the bf16 output rounding.
    emb_k = roberta_embedding(input_ids, params["tok_table"], params["pos_table"],
                              params["ln_e_g"], params["ln_e_b"]
                              ).astype(jnp.float32).reshape(B, S, embed_dim)
    emb_r = _layernorm(params["tok_table"][input_ids]
                       + params["pos_table"][:S][None],
                       params["ln_e_g"], params["ln_e_b"])
    assert jnp.allclose(emb_k, emb_r, atol=5e-2, rtol=5e-2)

    # End-to-end check against a reference that mirrors the kernel's bf16/f32
    # precision policy (remaining deltas: MXU vs XLA accumulation order, approx
    # reciprocal in the kernel softmax).
    ref_logits = reference_forward(input_ids, params).reshape(B, S, vocab_size)
    assert jnp.allclose(logits, ref_logits, atol=5e-2, rtol=5e-2)

    print("KERNEL_OK")
</pallas_src>

<mosaic_0001>
module attributes {stable_mosaic.version = 11 : i64} {
  func.func @roberta_embed_kernel(%arg0: i32, %arg1: memref<32xi32, #tpu.memory_space<smem>>, %arg2: memref<512x256xf32, #tpu.memory_space<any>>, %arg3: memref<16x256xf32, #tpu.memory_space<vmem>>, %arg4: memref<1x256xf32, #tpu.memory_space<vmem>>, %arg5: memref<1x256xf32, #tpu.memory_space<vmem>>, %arg6: memref<16x256xbf16, #tpu.memory_space<vmem>>, %arg7: memref<2x16x256xf32, #tpu.memory_space<vmem>>, %arg8: memref<2x!tpu.dma_semaphore, #tpu.memory_space<semaphore_mem>>) attributes {dimension_semantics = [#tpu.dimension_semantics<arbitrary>], iteration_bounds = array<i64: 2>, scalar_prefetch = 1 : i64, scratch_operands = 2 : i64, tpu.core_type = #tpu.core_type<tc>, window_params = [{}, {transform_indices = @transform_1, window_bounds = array<i64: 16, 256>}, {pipeline_mode = #tpu.pipeline_mode<synchronous>, transform_indices = @transform_2, window_bounds = array<i64: 1, 256>}, {pipeline_mode = #tpu.pipeline_mode<synchronous>, transform_indices = @transform_3, window_bounds = array<i64: 1, 256>}, {transform_indices = @transform_4, window_bounds = array<i64: 16, 256>}]} {
    %c2_i32 = arith.constant 2 : i32
    %c0_i32 = arith.constant 0 : i32
    %0 = arith.cmpi eq, %c2_i32, %c0_i32 : i32
    %c1_i32 = arith.constant 1 : i32
    %1 = arith.select %0, %c1_i32, %c2_i32 : i32
    %2 = arith.remsi %arg0, %1 : i32
    %c0_i32_0 = arith.constant 0 : i32
    %3 = arith.cmpi ne, %2, %c0_i32_0 : i32
    %c0_i32_1 = arith.constant 0 : i32
    %4 = arith.cmpi slt, %2, %c0_i32_1 : i32
    %c0_i32_2 = arith.constant 0 : i32
    %5 = arith.cmpi slt, %1, %c0_i32_2 : i32
    %6 = arith.xori %4, %5 : i1
    %7 = arith.andi %6, %3 : i1
    %8 = arith.addi %2, %1 : i32
    %9 = arith.select %7, %8, %2 : i32
    %c0_i32_3 = arith.constant 0 : i32
    %10 = arith.cmpi eq, %arg0, %c0_i32_3 : i32
    %11 = arith.extui %10 : i1 to i32
    %c0_i32_4 = arith.constant 0 : i32
    %12 = arith.cmpi ne, %11, %c0_i32_4 : i32
    scf.if %12 {
      %c0_72 = arith.constant 0 : index
      %128 = memref.load %arg1[%c0_72] : memref<32xi32, #tpu.memory_space<smem>>
      %c0_i32_73 = arith.constant 0 : i32
      %c0_i32_74 = arith.constant 0 : i32
      %c0_i32_75 = arith.constant 0 : i32
      %129 = tpu.memref_slice %arg2[%128, %c0_i32_75] : memref<512x256xf32, #tpu.memory_space<any>> -> memref<1x256xf32, #tpu.memory_space<any>>
      %c0_i32_76 = arith.constant 0 : i32
      %c0_i32_77 = arith.constant 0 : i32
      %130 = tpu.memref_slice %arg7[%c0_i32_73, %c0_i32_76, %c0_i32_77] : memref<2x16x256xf32, #tpu.memory_space<vmem>> -> memref<1x1x256xf32, #tpu.memory_space<vmem>>
      %131 = tpu.memref_squeeze %130 : memref<1x1x256xf32, #tpu.memory_space<vmem>> -> memref<1x256xf32, #tpu.memory_space<vmem>>
      %132 = tpu.memref_slice %arg8[%c0_i32_74] : memref<2x!tpu.dma_semaphore, #tpu.memory_space<semaphore_mem>> -> memref<1x!tpu.dma_semaphore, #tpu.memory_space<semaphore_mem>>
      %133 = tpu.memref_squeeze %132 : memref<1x!tpu.dma_semaphore, #tpu.memory_space<semaphore_mem>> -> memref<!tpu.dma_semaphore, #tpu.memory_space<semaphore_mem>>
      tpu.enqueue_dma source(%129 : memref<1x256xf32, #tpu.memory_space<any>>) target(%131 : memref<1x256xf32, #tpu.memory_space<vmem>>) target_semaphore(%133 : memref<!tpu.dma_semaphore, #tpu.memory_space<semaphore_mem>>)
      %c1 = arith.constant 1 : index
      %134 = memref.load %arg1[%c1] : memref<32xi32, #tpu.memory_space<smem>>
      %c0_i32_78 = arith.constant 0 : i32
      %c0_i32_79 = arith.constant 0 : i32
      %c0_i32_80 = arith.constant 0 : i32
      %135 = tpu.memref_slice %arg2[%134, %c0_i32_80] : memref<512x256xf32, #tpu.memory_space<any>> -> memref<1x256xf32, #tpu.memory_space<any>>
      %c1_i32_81 = arith.constant 1 : i32
      %c0_i32_82 = arith.constant 0 : i32
      %136 = tpu.memref_slice %arg7[%c0_i32_78, %c1_i32_81, %c0_i32_82] : memref<2x16x256xf32, #tpu.memory_space<vmem>> -> memref<1x1x256xf32, #tpu.memory_space<vmem>>
      %137 = tpu.memref_squeeze %136 : memref<1x1x256xf32, #tpu.memory_space<vmem>> -> memref<1x256xf32, #tpu.memory_space<vmem>>
      %138 = tpu.memref_slice %arg8[%c0_i32_79] : memref<2x!tpu.dma_semaphore, #tpu.memory_space<semaphore_mem>> -> memref<1x!tpu.dma_semaphore, #tpu.memory_space<semaphore_mem>>
      %139 = tpu.memref_squeeze %138 : memref<1x!tpu.dma_semaphore, #tpu.memory_space<semaphore_mem>> -> memref<!tpu.dma_semaphore, #tpu.memory_space<semaphore_mem>>
      tpu.enqueue_dma source(%135 : memref<1x256xf32, #tpu.memory_space<any>>) target(%137 : memref<1x256xf32, #tpu.memory_space<vmem>>) target_semaphore(%139 : memref<!tpu.dma_semaphore, #tpu.memory_space<semaphore_mem>>)
      %c2 = arith.constant 2 : index
      %140 = memref.load %arg1[%c2] : memref<32xi32, #tpu.memory_space<smem>>
      %c0_i32_83 = arith.constant 0 : i32
      %c0_i32_84 = arith.constant 0 : i32
      %c0_i32_85 = arith.constant 0 : i32
      %141 = tpu.memref_slice %arg2[%140, %c0_i32_85] : memref<512x256xf32, #tpu.memory_space<any>> -> memref<1x256xf32, #tpu.memory_space<any>>
      %c2_i32_86 = arith.constant 2 : i32
      %c0_i32_87 = arith.constant 0 : i32
      %142 = tpu.memref_slice %arg7[%c0_i32_83, %c2_i32_86, %c0_i32_87] : memref<2x16x256xf32, #tpu.memory_space<vmem>> -> memref<1x1x256xf32, #tpu.memory_space<vmem>>
      %143 = tpu.memref_squeeze %142 : memref<1x1x256xf32, #tpu.memory_space<vmem>> -> memref<1x256xf32, #tpu.memory_space<vmem>>
      %144 = tpu.memref_slice %arg8[%c0_i32_84] : memref<2x!tpu.dma_semaphore, #tpu.memory_space<semaphore_mem>> -> memref<1x!tpu.dma_semaphore, #tpu.memory_space<semaphore_mem>>
      %145 = tpu.memref_squeeze %144 : memref<1x!tpu.dma_semaphore, #tpu.memory_space<semaphore_mem>> -> memref<!tpu.dma_semaphore, #tpu.memory_space<semaphore_mem>>
      tpu.enqueue_dma source(%141 : memref<1x256xf32, #tpu.memory_space<any>>) target(%143 : memref<1x256xf32, #tpu.memory_space<vmem>>) target_semaphore(%145 : memref<!tpu.dma_semaphore, #tpu.memory_space<semaphore_mem>>)
      %c3 = arith.constant 3 : index
      %146 = memref.load %arg1[%c3] : memref<32xi32, #tpu.memory_space<smem>>
      %c0_i32_88 = arith.constant 0 : i32
      %c0_i32_89 = arith.constant 0 : i32
      %c0_i32_90 = arith.constant 0 : i32
      %147 = tpu.memref_slice %arg2[%146, %c0_i32_90] : memref<512x256xf32, #tpu.memory_space<any>> -> memref<1x256xf32, #tpu.memory_space<any>>
      %c3_i32_91 = arith.constant 3 : i32
      %c0_i32_92 = arith.constant 0 : i32
      %148 = tpu.memref_slice %arg7[%c0_i32_88, %c3_i32_91, %c0_i32_92] : memref<2x16x256xf32, #tpu.memory_space<vmem>> -> memref<1x1x256xf32, #tpu.memory_space<vmem>>
      %149 = tpu.memref_squeeze %148 : memref<1x1x256xf32, #tpu.memory_space<vmem>> -> memref<1x256xf32, #tpu.memory_space<vmem>>
      %150 = tpu.memref_slice %arg8[%c0_i32_89] : memref<2x!tpu.dma_semaphore, #tpu.memory_space<semaphore_mem>> -> memref<1x!tpu.dma_semaphore, #tpu.memory_space<semaphore_mem>>
      %151 = tpu.memref_squeeze %150 : memref<1x!tpu.dma_semaphore, #tpu.memory_space<semaphore_mem>> -> memref<!tpu.dma_semaphore, #tpu.memory_space<semaphore_mem>>
      tpu.enqueue_dma source(%147 : memref<1x256xf32, #tpu.memory_space<any>>) target(%149 : memref<1x256xf32, #tpu.memory_space<vmem>>) target_semaphore(%151 : memref<!tpu.dma_semaphore, #tpu.memory_space<semaphore_mem>>)
      %c4 = arith.constant 4 : index
      %152 = memref.load %arg1[%c4] : memref<32xi32, #tpu.memory_space<smem>>
      %c0_i32_93 = arith.constant 0 : i32
      %c0_i32_94 = arith.constant 0 : i32
      %c0_i32_95 = arith.constant 0 : i32
      %153 = tpu.memref_slice %arg2[%152, %c0_i32_95] : memref<512x256xf32, #tpu.memory_space<any>> -> memref<1x256xf32, #tpu.memory_space<any>>
      %c4_i32_96 = arith.constant 4 : i32
      %c0_i32_97 = arith.constant 0 : i32
      %154 = tpu.memref_slice %arg7[%c0_i32_93, %c4_i32_96, %c0_i32_97] : memref<2x16x256xf32, #tpu.memory_space<vmem>> -> memref<1x1x256xf32, #tpu.memory_space<vmem>>
      %155 = tpu.memref_squeeze %154 : memref<1x1x256xf32, #tpu.memory_space<vmem>> -> memref<1x256xf32, #tpu.memory_space<vmem>>
      %156 = tpu.memref_slice %arg8[%c0_i32_94] : memref<2x!tpu.dma_semaphore, #tpu.memory_space<semaphore_mem>> -> memref<1x!tpu.dma_semaphore, #tpu.memory_space<semaphore_mem>>
      %157 = tpu.memref_squeeze %156 : memref<1x!tpu.dma_semaphore, #tpu.memory_space<semaphore_mem>> -> memref<!tpu.dma_semaphore, #tpu.memory_space<semaphore_mem>>
      tpu.enqueue_dma source(%153 : memref<1x256xf32, #tpu.memory_space<any>>) target(%155 : memref<1x256xf32, #tpu.memory_space<vmem>>) target_semaphore(%157 : memref<!tpu.dma_semaphore, #tpu.memory_space<semaphore_mem>>)
      %c5 = arith.constant 5 : index
      %158 = memref.load %arg1[%c5] : memref<32xi32, #tpu.memory_space<smem>>
      %c0_i32_98 = arith.constant 0 : i32
      %c0_i32_99 = arith.constant 0 : i32
      %c0_i32_100 = arith.constant 0 : i32
      %159 = tpu.memref_slice %arg2[%158, %c0_i32_100] : memref<512x256xf32, #tpu.memory_space<any>> -> memref<1x256xf32, #tpu.memory_space<any>>
      %c5_i32_101 = arith.constant 5 : i32
      %c0_i32_102 = arith.constant 0 : i32
      %160 = tpu.memref_slice %arg7[%c0_i32_98, %c5_i32_101, %c0_i32_102] : memref<2x16x256xf32, #tpu.memory_space<vmem>> -> memref<1x1x256xf32, #tpu.memory_space<vmem>>
      %161 = tpu.memref_squeeze %160 : memref<1x1x256xf32, #tpu.memory_space<vmem>> -> memref<1x256xf32, #tpu.memory_space<vmem>>
      %162 = tpu.memref_slice %arg8[%c0_i32_99] : memref<2x!tpu.dma_semaphore, #tpu.memory_space<semaphore_mem>> -> memref<1x!tpu.dma_semaphore, #tpu.memory_space<semaphore_mem>>
      %163 = tpu.memref_squeeze %162 : memref<1x!tpu.dma_semaphore, #tpu.memory_space<semaphore_mem>> -> memref<!tpu.dma_semaphore, #tpu.memory_space<semaphore_mem>>
      tpu.enqueue_dma source(%159 : memref<1x256xf32, #tpu.memory_space<any>>) target(%161 : memref<1x256xf32, #tpu.memory_space<vmem>>) target_semaphore(%163 : memref<!tpu.dma_semaphore, #tpu.memory_space<semaphore_mem>>)
      %c6 = arith.constant 6 : index
      %164 = memref.load %arg1[%c6] : memref<32xi32, #tpu.memory_space<smem>>
      %c0_i32_103 = arith.constant 0 : i32
      %c0_i32_104 = arith.constant 0 : i32
      %c0_i32_105 = arith.constant 0 : i32
      %165 = tpu.memref_slice %arg2[%164, %c0_i32_105] : memref<512x256xf32, #tpu.memory_space<any>> -> memref<1x256xf32, #tpu.memory_space<any>>
      %c6_i32_106 = arith.constant 6 : i32
      %c0_i32_107 = arith.constant 0 : i32
      %166 = tpu.memref_slice %arg7[%c0_i32_103, %c6_i32_106, %c0_i32_107] : memref<2x16x256xf32, #tpu.memory_space<vmem>> -> memref<1x1x256xf32, #tpu.memory_space<vmem>>
      %167 = tpu.memref_squeeze %166 : memref<1x1x256xf32, #tpu.memory_space<vmem>> -> memref<1x256xf32, #tpu.memory_space<vmem>>
      %168 = tpu.memref_slice %arg8[%c0_i32_104] : memref<2x!tpu.dma_semaphore, #tpu.memory_space<semaphore_mem>> -> memref<1x!tpu.dma_semaphore, #tpu.memory_space<semaphore_mem>>
      %169 = tpu.memref_squeeze %168 : memref<1x!tpu.dma_semaphore, #tpu.memory_space<semaphore_mem>> -> memref<!tpu.dma_semaphore, #tpu.memory_space<semaphore_mem>>
      tpu.enqueue_dma source(%165 : memref<1x256xf32, #tpu.memory_space<any>>) target(%167 : memref<1x256xf32, #tpu.memory_space<vmem>>) target_semaphore(%169 : memref<!tpu.dma_semaphore, #tpu.memory_space<semaphore_mem>>)
      %c7 = arith.constant 7 : index
      %170 = memref.load %arg1[%c7] : memref<32xi32, #tpu.memory_space<smem>>
      %c0_i32_108 = arith.constant 0 : i32
      %c0_i32_109 = arith.constant 0 : i32
      %c0_i32_110 = arith.constant 0 : i32
      %171 = tpu.memref_slice %arg2[%170, %c0_i32_110] : memref<512x256xf32, #tpu.memory_space<any>> -> memref<1x256xf32, #tpu.memory_space<any>>
      %c7_i32_111 = arith.constant 7 : i32
      %c0_i32_112 = arith.constant 0 : i32
      %172 = tpu.memref_slice %arg7[%c0_i32_108, %c7_i32_111, %c0_i32_112] : memref<2x16x256xf32, #tpu.memory_space<vmem>> -> memref<1x1x256xf32, #tpu.memory_space<vmem>>
      %173 = tpu.memref_squeeze %172 : memref<1x1x256xf32, #tpu.memory_space<vmem>> -> memref<1x256xf32, #tpu.memory_space<vmem>>
      %174 = tpu.memref_slice %arg8[%c0_i32_109] : memref<2x!tpu.dma_semaphore, #tpu.memory_space<semaphore_mem>> -> memref<1x!tpu.dma_semaphore, #tpu.memory_space<semaphore_mem>>
      %175 = tpu.memref_squeeze %174 : memref<1x!tpu.dma_semaphore, #tpu.memory_space<semaphore_mem>> -> memref<!tpu.dma_semaphore, #tpu.memory_space<semaphore_mem>>
      tpu.enqueue_dma source(%171 : memref<1x256xf32, #tpu.memory_space<any>>) target(%173 : memref<1x256xf32, #tpu.memory_space<vmem>>) target_semaphore(%175 : memref<!tpu.dma_semaphore, #tpu.memory_space<semaphore_mem>>)
      %c8 = arith.constant 8 : index
      %176 = memref.load %arg1[%c8] : memref<32xi32, #tpu.memory_space<smem>>
      %c0_i32_113 = arith.constant 0 : i32
      %c0_i32_114 = arith.constant 0 : i32
      %c0_i32_115 = arith.constant 0 : i32
      %177 = tpu.memref_slice %arg2[%176, %c0_i32_115] : memref<512x256xf32, #tpu.memory_space<any>> -> memref<1x256xf32, #tpu.memory_space<any>>
      %c8_i32_116 = arith.constant 8 : i32
      %c0_i32_117 = arith.constant 0 : i32
      %178 = tpu.memref_slice %arg7[%c0_i32_113, %c8_i32_116, %c0_i32_117] : memref<2x16x256xf32, #tpu.memory_space<vmem>> -> memref<1x1x256xf32, #tpu.memory_space<vmem>>
      %179 = tpu.memref_squeeze %178 : memref<1x1x256xf32, #tpu.memory_space<vmem>> -> memref<1x256xf32, #tpu.memory_space<vmem>>
      %180 = tpu.memref_slice %arg8[%c0_i32_114] : memref<2x!tpu.dma_semaphore, #tpu.memory_space<semaphore_mem>> -> memref<1x!tpu.dma_semaphore, #tpu.memory_space<semaphore_mem>>
      %181 = tpu.memref_squeeze %180 : memref<1x!tpu.dma_semaphore, #tpu.memory_space<semaphore_mem>> -> memref<!tpu.dma_semaphore, #tpu.memory_space<semaphore_mem>>
      tpu.enqueue_dma source(%177 : memref<1x256xf32, #tpu.memory_space<any>>) target(%179 : memref<1x256xf32, #tpu.memory_space<vmem>>) target_semaphore(%181 : memref<!tpu.dma_semaphore, #tpu.memory_space<semaphore_mem>>)
      %c9 = arith.constant 9 : index
      %182 = memref.load %arg1[%c9] : memref<32xi32, #tpu.memory_space<smem>>
      %c0_i32_118 = arith.constant 0 : i32
      %c0_i32_119 = arith.constant 0 : i32
      %c0_i32_120 = arith.constant 0 : i32
      %183 = tpu.memref_slice %arg2[%182, %c0_i32_120] : memref<512x256xf32, #tpu.memory_space<any>> -> memref<1x256xf32, #tpu.memory_space<any>>
      %c9_i32_121 = arith.constant 9 : i32
      %c0_i32_122 = arith.constant 0 : i32
      %184 = tpu.memref_slice %arg7[%c0_i32_118, %c9_i32_121, %c0_i32_122] : memref<2x16x256xf32, #tpu.memory_space<vmem>> -> memref<1x1x256xf32, #tpu.memory_space<vmem>>
      %185 = tpu.memref_squeeze %184 : memref<1x1x256xf32, #tpu.memory_space<vmem>> -> memref<1x256xf32, #tpu.memory_space<vmem>>
      %186 = tpu.memref_slice %arg8[%c0_i32_119] : memref<2x!tpu.dma_semaphore, #tpu.memory_space<semaphore_mem>> -> memref<1x!tpu.dma_semaphore, #tpu.memory_space<semaphore_mem>>
      %187 = tpu.memref_squeeze %186 : memref<1x!tpu.dma_semaphore, #tpu.memory_space<semaphore_mem>> -> memref<!tpu.dma_semaphore, #tpu.memory_space<semaphore_mem>>
      tpu.enqueue_dma source(%183 : memref<1x256xf32, #tpu.memory_space<any>>) target(%185 : memref<1x256xf32, #tpu.memory_space<vmem>>) target_semaphore(%187 : memref<!tpu.dma_semaphore, #tpu.memory_space<semaphore_mem>>)
      %c10 = arith.constant 10 : index
      %188 = memref.load %arg1[%c10] : memref<32xi32, #tpu.memory_space<smem>>
      %c0_i32_123 = arith.constant 0 : i32
      %c0_i32_124 = arith.constant 0 : i32
      %c0_i32_125 = arith.constant 0 : i32
      %189 = tpu.memref_slice %arg2[%188, %c0_i32_125] : memref<512x256xf32, #tpu.memory_space<any>> -> memref<1x256xf32, #tpu.memory_space<any>>
      %c10_i32_126 = arith.constant 10 : i32
      %c0_i32_127 = arith.constant 0 : i32
      %190 = tpu.memref_slice %arg7[%c0_i32_123, %c10_i32_126, %c0_i32_127] : memref<2x16x256xf32, #tpu.memory_space<vmem>> -> memref<1x1x256xf32, #tpu.memory_space<vmem>>
      %191 = tpu.memref_squeeze %190 : memref<1x1x256xf32, #tpu.memory_space<vmem>> -> memref<1x256xf32, #tpu.memory_space<vmem>>
      %192 = tpu.memref_slice %arg8[%c0_i32_124] : memref<2x!tpu.dma_semaphore, #tpu.memory_space<semaphore_mem>> -> memref<1x!tpu.dma_semaphore, #tpu.memory_space<semaphore_mem>>
      %193 = tpu.memref_squeeze %192 : memref<1x!tpu.dma_semaphore, #tpu.memory_space<semaphore_mem>> -> memref<!tpu.dma_semaphore, #tpu.memory_space<semaphore_mem>>
      tpu.enqueue_dma source(%189 : memref<1x256xf32, #tpu.memory_space<any>>) target(%191 : memref<1x256xf32, #tpu.memory_space<vmem>>) target_semaphore(%193 : memref<!tpu.dma_semaphore, #tpu.memory_space<semaphore_mem>>)
      %c11 = arith.constant 11 : index
      %194 = memref.load %arg1[%c11] : memref<32xi32, #tpu.memory_space<smem>>
      %c0_i32_128 = arith.constant 0 : i32
      %c0_i32_129 = arith.constant 0 : i32
      %c0_i32_130 = arith.constant 0 : i32
      %195 = tpu.memref_slice %arg2[%194, %c0_i32_130] : memref<512x256xf32, #tpu.memory_space<any>> -> memref<1x256xf32, #tpu.memory_space<any>>
      %c11_i32_131 = arith.constant 11 : i32
      %c0_i32_132 = arith.constant 0 : i32
      %196 = tpu.memref_slice %arg7[%c0_i32_128, %c11_i32_131, %c0_i32_132] : memref<2x16x256xf32, #tpu.memory_space<vmem>> -> memref<1x1x256xf32, #tpu.memory_space<vmem>>
      %197 = tpu.memref_squeeze %196 : memref<1x1x256xf32, #tpu.memory_space<vmem>> -> memref<1x256xf32, #tpu.memory_space<vmem>>
      %198 = tpu.memref_slice %arg8[%c0_i32_129] : memref<2x!tpu.dma_semaphore, #tpu.memory_space<semaphore_mem>> -> memref<1x!tpu.dma_semaphore, #tpu.memory_space<semaphore_mem>>
      %199 = tpu.memref_squeeze %198 : memref<1x!tpu.dma_semaphore, #tpu.memory_space<semaphore_mem>> -> memref<!tpu.dma_semaphore, #tpu.memory_space<semaphore_mem>>
      tpu.enqueue_dma source(%195 : memref<1x256xf32, #tpu.memory_space<any>>) target(%197 : memref<1x256xf32, #tpu.memory_space<vmem>>) target_semaphore(%199 : memref<!tpu.dma_semaphore, #tpu.memory_space<semaphore_mem>>)
      %c12 = arith.constant 12 : index
      %200 = memref.load %arg1[%c12] : memref<32xi32, #tpu.memory_space<smem>>
      %c0_i32_133 = arith.constant 0 : i32
      %c0_i32_134 = arith.constant 0 : i32
      %c0_i32_135 = arith.constant 0 : i32
      %201 = tpu.memref_slice %arg2[%200, %c0_i32_135] : memref<512x256xf32, #tpu.memory_space<any>> -> memref<1x256xf32, #tpu.memory_space<any>>
      %c12_i32_136 = arith.constant 12 : i32
      %c0_i32_137 = arith.constant 0 : i32
      %202 = tpu.memref_slice %arg7[%c0_i32_133, %c12_i32_136, %c0_i32_137] : memref<2x16x256xf32, #tpu.memory_space<vmem>> -> memref<1x1x256xf32, #tpu.memory_space<vmem>>
      %203 = tpu.memref_squeeze %202 : memref<1x1x256xf32, #tpu.memory_space<vmem>> -> memref<1x256xf32, #tpu.memory_space<vmem>>
      %204 = tpu.memref_slice %arg8[%c0_i32_134] : memref<2x!tpu.dma_semaphore, #tpu.memory_space<semaphore_mem>> -> memref<1x!tpu.dma_semaphore, #tpu.memory_space<semaphore_mem>>
      %205 = tpu.memref_squeeze %204 : memref<1x!tpu.dma_semaphore, #tpu.memory_space<semaphore_mem>> -> memref<!tpu.dma_semaphore, #tpu.memory_space<semaphore_mem>>
      tpu.enqueue_dma source(%201 : memref<1x256xf32, #tpu.memory_space<any>>) target(%203 : memref<1x256xf32, #tpu.memory_space<vmem>>) target_semaphore(%205 : memref<!tpu.dma_semaphore, #tpu.memory_space<semaphore_mem>>)
      %c13 = arith.constant 13 : index
      %206 = memref.load %arg1[%c13] : memref<32xi32, #tpu.memory_space<smem>>
      %c0_i32_138 = arith.constant 0 : i32
      %c0_i32_139 = arith.constant 0 : i32
      %c0_i32_140 = arith.constant 0 : i32
      %207 = tpu.memref_slice %arg2[%206, %c0_i32_140] : memref<512x256xf32, #tpu.memory_space<any>> -> memref<1x256xf32, #tpu.memory_space<any>>
      %c13_i32_141 = arith.constant 13 : i32
      %c0_i32_142 = arith.constant 0 : i32
      %208 = tpu.memref_slice %arg7[%c0_i32_138, %c13_i32_141, %c0_i32_142] : memref<2x16x256xf32, #tpu.memory_space<vmem>> -> memref<1x1x256xf32, #tpu.memory_space<vmem>>
      %209 = tpu.memref_squeeze %208 : memref<1x1x256xf32, #tpu.memory_space<vmem>> -> memref<1x256xf32, #tpu.memory_space<vmem>>
      %210 = tpu.memref_slice %arg8[%c0_i32_139] : memref<2x!tpu.dma_semaphore, #tpu.memory_space<semaphore_mem>> -> memref<1x!tpu.dma_semaphore, #tpu.memory_space<semaphore_mem>>
      %211 = tpu.memref_squeeze %210 : memref<1x!tpu.dma_semaphore, #tpu.memory_space<semaphore_mem>> -> memref<!tpu.dma_semaphore, #tpu.memory_space<semaphore_mem>>
      tpu.enqueue_dma source(%207 : memref<1x256xf32, #tpu.memory_space<any>>) target(%209 : memref<1x256xf32, #tpu.memory_space<vmem>>) target_semaphore(%211 : memref<!tpu.dma_semaphore, #tpu.memory_space<semaphore_mem>>)
      %c14 = arith.constant 14 : index
      %212 = memref.load %arg1[%c14] : memref<32xi32, #tpu.memory_space<smem>>
      %c0_i32_143 = arith.constant 0 : i32
      %c0_i32_144 = arith.constant 0 : i32
      %c0_i32_145 = arith.constant 0 : i32
      %213 = tpu.memref_slice %arg2[%212, %c0_i32_145] : memref<512x256xf32, #tpu.memory_space<any>> -> memref<1x256xf32, #tpu.memory_space<any>>
      %c14_i32_146 = arith.constant 14 : i32
      %c0_i32_147 = arith.constant 0 : i32
      %214 = tpu.memref_slice %arg7[%c0_i32_143, %c14_i32_146, %c0_i32_147] : memref<2x16x256xf32, #tpu.memory_space<vmem>> -> memref<1x1x256xf32, #tpu.memory_space<vmem>>
      %215 = tpu.memref_squeeze %214 : memref<1x1x256xf32, #tpu.memory_space<vmem>> -> memref<1x256xf32, #tpu.memory_space<vmem>>
      %216 = tpu.memref_slice %arg8[%c0_i32_144] : memref<2x!tpu.dma_semaphore, #tpu.memory_space<semaphore_mem>> -> memref<1x!tpu.dma_semaphore, #tpu.memory_space<semaphore_mem>>
      %217 = tpu.memref_squeeze %216 : memref<1x!tpu.dma_semaphore, #tpu.memory_space<semaphore_mem>> -> memref<!tpu.dma_semaphore, #tpu.memory_space<semaphore_mem>>
      tpu.enqueue_dma source(%213 : memref<1x256xf32, #tpu.memory_space<any>>) target(%215 : memref<1x256xf32, #tpu.memory_space<vmem>>) target_semaphore(%217 : memref<!tpu.dma_semaphore, #tpu.memory_space<semaphore_mem>>)
      %c15 = arith.constant 15 : index
      %218 = memref.load %arg1[%c15] : memref<32xi32, #tpu.memory_space<smem>>
      %c0_i32_148 = arith.constant 0 : i32
      %c0_i32_149 = arith.constant 0 : i32
      %c0_i32_150 = arith.constant 0 : i32
      %219 = tpu.memref_slice %arg2[%218, %c0_i32_150] : memref<512x256xf32, #tpu.memory_space<any>> -> memref<1x256xf32, #tpu.memory_space<any>>
      %c15_i32_151 = arith.constant 15 : i32
      %c0_i32_152 = arith.constant 0 : i32
      %220 = tpu.memref_slice %arg7[%c0_i32_148, %c15_i32_151, %c0_i32_152] : memref<2x16x256xf32, #tpu.memory_space<vmem>> -> memref<1x1x256xf32, #tpu.memory_space<vmem>>
      %221 = tpu.memref_squeeze %220 : memref<1x1x256xf32, #tpu.memory_space<vmem>> -> memref<1x256xf32, #tpu.memory_space<vmem>>
      %222 = tpu.memref_slice %arg8[%c0_i32_149] : memref<2x!tpu.dma_semaphore, #tpu.memory_space<semaphore_mem>> -> memref<1x!tpu.dma_semaphore, #tpu.memory_space<semaphore_mem>>
      %223 = tpu.memref_squeeze %222 : memref<1x!tpu.dma_semaphore, #tpu.memory_space<semaphore_mem>> -> memref<!tpu.dma_semaphore, #tpu.memory_space<semaphore_mem>>
      tpu.enqueue_dma source(%219 : memref<1x256xf32, #tpu.memory_space<any>>) target(%221 : memref<1x256xf32, #tpu.memory_space<vmem>>) target_semaphore(%223 : memref<!tpu.dma_semaphore, #tpu.memory_space<semaphore_mem>>)
    } else {
    }
    %c1_i32_5 = arith.constant 1 : i32
    %13 = arith.addi %arg0, %c1_i32_5 : i32
    %c2_i32_6 = arith.constant 2 : i32
    %14 = arith.cmpi slt, %13, %c2_i32_6 : i32
    %15 = arith.extui %14 : i1 to i32
    %c0_i32_7 = arith.constant 0 : i32
    %16 = arith.cmpi ne, %15, %c0_i32_7 : i32
    scf.if %16 {
      %c1_i32_72 = arith.constant 1 : i32
      %128 = arith.addi %arg0, %c1_i32_72 : i32
      %c1_i32_73 = arith.constant 1 : i32
      %129 = arith.subi %c1_i32_73, %9 : i32
      %c16_i32 = arith.constant 16 : i32
      %130 = arith.muli %128, %c16_i32 : i32
      %c0_i32_74 = arith.constant 0 : i32
      %131 = arith.addi %130, %c0_i32_74 : i32
      %132 = arith.index_cast %131 : i32 to index
      %133 = memref.load %arg1[%132] : memref<32xi32, #tpu.memory_space<smem>>
      %c0_i32_75 = arith.constant 0 : i32
      %134 = tpu.memref_slice %arg2[%133, %c0_i32_75] : memref<512x256xf32, #tpu.memory_space<any>> -> memref<1x256xf32, #tpu.memory_space<any>>
      %c0_i32_76 = arith.constant 0 : i32
      %c0_i32_77 = arith.constant 0 : i32
      %135 = tpu.memref_slice %arg7[%129, %c0_i32_76, %c0_i32_77] : memref<2x16x256xf32, #tpu.memory_space<vmem>> -> memref<1x1x256xf32, #tpu.memory_space<vmem>>
      %136 = tpu.memref_squeeze %135 : memref<1x1x256xf32, #tpu.memory_space<vmem>> -> memref<1x256xf32, #tpu.memory_space<vmem>>
      %137 = tpu.memref_slice %arg8[%129] : memref<2x!tpu.dma_semaphore, #tpu.memory_space<semaphore_mem>> -> memref<1x!tpu.dma_semaphore, #tpu.memory_space<semaphore_mem>>
      %138 = tpu.memref_squeeze %137 : memref<1x!tpu.dma_semaphore, #tpu.memory_space<semaphore_mem>> -> memref<!tpu.dma_semaphore, #tpu.memory_space<semaphore_mem>>
      tpu.enqueue_dma source(%134 : memref<1x256xf32, #tpu.memory_space<any>>) target(%136 : memref<1x256xf32, #tpu.memory_space<vmem>>) target_semaphore(%138 : memref<!tpu.dma_semaphore, #tpu.memory_space<semaphore_mem>>)
      %c1_i32_78 = arith.constant 1 : i32
      %139 = arith.addi %130, %c1_i32_78 : i32
      %140 = arith.index_cast %139 : i32 to index
      %141 = memref.load %arg1[%140] : memref<32xi32, #tpu.memory_space<smem>>
      %c0_i32_79 = arith.constant 0 : i32
      %142 = tpu.memref_slice %arg2[%141, %c0_i32_79] : memref<512x256xf32, #tpu.memory_space<any>> -> memref<1x256xf32, #tpu.memory_space<any>>
      %c1_i32_80 = arith.constant 1 : i32
      %c0_i32_81 = arith.constant 0 : i32
      %143 = tpu.memref_slice %arg7[%129, %c1_i32_80, %c0_i32_81] : memref<2x16x256xf32, #tpu.memory_space<vmem>> -> memref<1x1x256xf32, #tpu.memory_space<vmem>>
      %144 = tpu.memref_squeeze %143 : memref<1x1x256xf32, #tpu.memory_space<vmem>> -> memref<1x256xf32, #tpu.memory_space<vmem>>
      %145 = tpu.memref_slice %arg8[%129] : memref<2x!tpu.dma_semaphore, #tpu.memory_space<semaphore_mem>> -> memref<1x!tpu.dma_semaphore, #tpu.memory_space<semaphore_mem>>
      %146 = tpu.memref_squeeze %145 : memref<1x!tpu.dma_semaphore, #tpu.memory_space<semaphore_mem>> -> memref<!tpu.dma_semaphore, #tpu.memory_space<semaphore_mem>>
      tpu.enqueue_dma source(%142 : memref<1x256xf32, #tpu.memory_space<any>>) target(%144 : memref<1x256xf32, #tpu.memory_space<vmem>>) target_semaphore(%146 : memref<!tpu.dma_semaphore, #tpu.memory_space<semaphore_mem>>)
      %c2_i32_82 = arith.constant 2 : i32
      %147 = arith.addi %130, %c2_i32_82 : i32
      %148 = arith.index_cast %147 : i32 to index
      %149 = memref.load %arg1[%148] : memref<32xi32, #tpu.memory_space<smem>>
      %c0_i32_83 = arith.constant 0 : i32
      %150 = tpu.memref_slice %arg2[%149, %c0_i32_83] : memref<512x256xf32, #tpu.memory_space<any>> -> memref<1x256xf32, #tpu.memory_space<any>>
      %c2_i32_84 = arith.constant 2 : i32
      %c0_i32_85 = arith.constant 0 : i32
      %151 = tpu.memref_slice %arg7[%129, %c2_i32_84, %c0_i32_85] : memref<2x16x256xf32, #tpu.memory_space<vmem>> -> memref<1x1x256xf32, #tpu.memory_space<vmem>>
      %152 = tpu.memref_squeeze %151 : memref<1x1x256xf32, #tpu.memory_space<vmem>> -> memref<1x256xf32, #tpu.memory_space<vmem>>
      %153 = tpu.memref_slice %arg8[%129] : memref<2x!tpu.dma_semaphore, #tpu.memory_space<semaphore_mem>> -> memref<1x!tpu.dma_semaphore, #tpu.memory_space<semaphore_mem>>
      %154 = tpu.memref_squeeze %153 : memref<1x!tpu.dma_semaphore, #tpu.memory_space<semaphore_mem>> -> memref<!tpu.dma_semaphore, #tpu.memory_space<semaphore_mem>>
      tpu.enqueue_dma source(%150 : memref<1x256xf32, #tpu.memory_space<any>>) target(%152 : memref<1x256xf32, #tpu.memory_space<vmem>>) target_semaphore(%154 : memref<!tpu.dma_semaphore, #tpu.memory_space<semaphore_mem>>)
      %c3_i32_86 = arith.constant 3 : i32
      %155 = arith.addi %130, %c3_i32_86 : i32
      %156 = arith.index_cast %155 : i32 to index
      %157 = memref.load %arg1[%156] : memref<32xi32, #tpu.memory_space<smem>>
      %c0_i32_87 = arith.constant 0 : i32
      %158 = tpu.memref_slice %arg2[%157, %c0_i32_87] : memref<512x256xf32, #tpu.memory_space<any>> -> memref<1x256xf32, #tpu.memory_space<any>>
      %c3_i32_88 = arith.constant 3 : i32
      %c0_i32_89 = arith.constant 0 : i32
      %159 = tpu.memref_slice %arg7[%129, %c3_i32_88, %c0_i32_89] : memref<2x16x256xf32, #tpu.memory_space<vmem>> -> memref<1x1x256xf32, #tpu.memory_space<vmem>>
      %160 = tpu.memref_squeeze %159 : memref<1x1x256xf32, #tpu.memory_space<vmem>> -> memref<1x256xf32, #tpu.memory_space<vmem>>
      %161 = tpu.memref_slice %arg8[%129] : memref<2x!tpu.dma_semaphore, #tpu.memory_space<semaphore_mem>> -> memref<1x!tpu.dma_semaphore, #tpu.memory_space<semaphore_mem>>
      %162 = tpu.memref_squeeze %161 : memref<1x!tpu.dma_semaphore, #tpu.memory_space<semaphore_mem>> -> memref<!tpu.dma_semaphore, #tpu.memory_space<semaphore_mem>>
      tpu.enqueue_dma source(%158 : memref<1x256xf32, #tpu.memory_space<any>>) target(%160 : memref<1x256xf32, #tpu.memory_space<vmem>>) target_semaphore(%162 : memref<!tpu.dma_semaphore, #tpu.memory_space<semaphore_mem>>)
      %c4_i32_90 = arith.constant 4 : i32
      %163 = arith.addi %130, %c4_i32_90 : i32
      %164 = arith.index_cast %163 : i32 to index
      %165 = memref.load %arg1[%164] : memref<32xi32, #tpu.memory_space<smem>>
      %c0_i32_91 = arith.constant 0 : i32
      %166 = tpu.memref_slice %arg2[%165, %c0_i32_91] : memref<512x256xf32, #tpu.memory_space<any>> -> memref<1x256xf32, #tpu.memory_space<any>>
      %c4_i32_92 = arith.constant 4 : i32
      %c0_i32_93 = arith.constant 0 : i32
      %167 = tpu.memref_slice %arg7[%129, %c4_i32_92, %c0_i32_93] : memref<2x16x256xf32, #tpu.memory_space<vmem>> -> memref<1x1x256xf32, #tpu.memory_space<vmem>>
      %168 = tpu.memref_squeeze %167 : memref<1x1x256xf32, #tpu.memory_space<vmem>> -> memref<1x256xf32, #tpu.memory_space<vmem>>
      %169 = tpu.memref_slice %arg8[%129] : memref<2x!tpu.dma_semaphore, #tpu.memory_space<semaphore_mem>> -> memref<1x!tpu.dma_semaphore, #tpu.memory_space<semaphore_mem>>
      %170 = tpu.memref_squeeze %169 : memref<1x!tpu.dma_semaphore, #tpu.memory_space<semaphore_mem>> -> memref<!tpu.dma_semaphore, #tpu.memory_space<semaphore_mem>>
      tpu.enqueue_dma source(%166 : memref<1x256xf32, #tpu.memory_space<any>>) target(%168 : memref<1x256xf32, #tpu.memory_space<vmem>>) target_semaphore(%170 : memref<!tpu.dma_semaphore, #tpu.memory_space<semaphore_mem>>)
      %c5_i32_94 = arith.constant 5 : i32
      %171 = arith.addi %130, %c5_i32_94 : i32
      %172 = arith.index_cast %171 : i32 to index
      %173 = memref.load %arg1[%172] : memref<32xi32, #tpu.memory_space<smem>>
      %c0_i32_95 = arith.constant 0 : i32
      %174 = tpu.memref_slice %arg2[%173, %c0_i32_95] : memref<512x256xf32, #tpu.memory_space<any>> -> memref<1x256xf32, #tpu.memory_space<any>>
      %c5_i32_96 = arith.constant 5 : i32
      %c0_i32_97 = arith.constant 0 : i32
      %175 = tpu.memref_slice %arg7[%129, %c5_i32_96, %c0_i32_97] : memref<2x16x256xf32, #tpu.memory_space<vmem>> -> memref<1x1x256xf32, #tpu.memory_space<vmem>>
      %176 = tpu.memref_squeeze %175 : memref<1x1x256xf32, #tpu.memory_space<vmem>> -> memref<1x256xf32, #tpu.memory_space<vmem>>
      %177 = tpu.memref_slice %arg8[%129] : memref<2x!tpu.dma_semaphore, #tpu.memory_space<semaphore_mem>> -> memref<1x!tpu.dma_semaphore, #tpu.memory_space<semaphore_mem>>
      %178 = tpu.memref_squeeze %177 : memref<1x!tpu.dma_semaphore, #tpu.memory_space<semaphore_mem>> -> memref<!tpu.dma_semaphore, #tpu.memory_space<semaphore_mem>>
      tpu.enqueue_dma source(%174 : memref<1x256xf32, #tpu.memory_space<any>>) target(%176 : memref<1x256xf32, #tpu.memory_space<vmem>>) target_semaphore(%178 : memref<!tpu.dma_semaphore, #tpu.memory_space<semaphore_mem>>)
      %c6_i32_98 = arith.constant 6 : i32
      %179 = arith.addi %130, %c6_i32_98 : i32
      %180 = arith.index_cast %179 : i32 to index
      %181 = memref.load %arg1[%180] : memref<32xi32, #tpu.memory_space<smem>>
      %c0_i32_99 = arith.constant 0 : i32
      %182 = tpu.memref_slice %arg2[%181, %c0_i32_99] : memref<512x256xf32, #tpu.memory_space<any>> -> memref<1x256xf32, #tpu.memory_space<any>>
      %c6_i32_100 = arith.constant 6 : i32
      %c0_i32_101 = arith.constant 0 : i32
      %183 = tpu.memref_slice %arg7[%129, %c6_i32_100, %c0_i32_101] : memref<2x16x256xf32, #tpu.memory_space<vmem>> -> memref<1x1x256xf32, #tpu.memory_space<vmem>>
      %184 = tpu.memref_squeeze %183 : memref<1x1x256xf32, #tpu.memory_space<vmem>> -> memref<1x256xf32, #tpu.memory_space<vmem>>
      %185 = tpu.memref_slice %arg8[%129] : memref<2x!tpu.dma_semaphore, #tpu.memory_space<semaphore_mem>> -> memref<1x!tpu.dma_semaphore, #tpu.memory_space<semaphore_mem>>
      %186 = tpu.memref_squeeze %185 : memref<1x!tpu.dma_semaphore, #tpu.memory_space<semaphore_mem>> -> memref<!tpu.dma_semaphore, #tpu.memory_space<semaphore_mem>>
      tpu.enqueue_dma source(%182 : memref<1x256xf32, #tpu.memory_space<any>>) target(%184 : memref<1x256xf32, #tpu.memory_space<vmem>>) target_semaphore(%186 : memref<!tpu.dma_semaphore, #tpu.memory_space<semaphore_mem>>)
      %c7_i32_102 = arith.constant 7 : i32
      %187 = arith.addi %130, %c7_i32_102 : i32
      %188 = arith.index_cast %187 : i32 to index
      %189 = memref.load %arg1[%188] : memref<32xi32, #tpu.memory_space<smem>>
      %c0_i32_103 = arith.constant 0 : i32
      %190 = tpu.memref_slice %arg2[%189, %c0_i32_103] : memref<512x256xf32, #tpu.memory_space<any>> -> memref<1x256xf32, #tpu.memory_space<any>>
      %c7_i32_104 = arith.constant 7 : i32
      %c0_i32_105 = arith.constant 0 : i32
      %191 = tpu.memref_slice %arg7[%129, %c7_i32_104, %c0_i32_105] : memref<2x16x256xf32, #tpu.memory_space<vmem>> -> memref<1x1x256xf32, #tpu.memory_space<vmem>>
      %192 = tpu.memref_squeeze %191 : memref<1x1x256xf32, #tpu.memory_space<vmem>> -> memref<1x256xf32, #tpu.memory_space<vmem>>
      %193 = tpu.memref_slice %arg8[%129] : memref<2x!tpu.dma_semaphore, #tpu.memory_space<semaphore_mem>> -> memref<1x!tpu.dma_semaphore, #tpu.memory_space<semaphore_mem>>
      %194 = tpu.memref_squeeze %193 : memref<1x!tpu.dma_semaphore, #tpu.memory_space<semaphore_mem>> -> memref<!tpu.dma_semaphore, #tpu.memory_space<semaphore_mem>>
      tpu.enqueue_dma source(%190 : memref<1x256xf32, #tpu.memory_space<any>>) target(%192 : memref<1x256xf32, #tpu.memory_space<vmem>>) target_semaphore(%194 : memref<!tpu.dma_semaphore, #tpu.memory_space<semaphore_mem>>)
      %c8_i32_106 = arith.constant 8 : i32
      %195 = arith.addi %130, %c8_i32_106 : i32
      %196 = arith.index_cast %195 : i32 to index
      %197 = memref.load %arg1[%196] : memref<32xi32, #tpu.memory_space<smem>>
      %c0_i32_107 = arith.constant 0 : i32
      %198 = tpu.memref_slice %arg2[%197, %c0_i32_107] : memref<512x256xf32, #tpu.memory_space<any>> -> memref<1x256xf32, #tpu.memory_space<any>>
      %c8_i32_108 = arith.constant 8 : i32
      %c0_i32_109 = arith.constant 0 : i32
      %199 = tpu.memref_slice %arg7[%129, %c8_i32_108, %c0_i32_109] : memref<2x16x256xf32, #tpu.memory_space<vmem>> -> memref<1x1x256xf32, #tpu.memory_space<vmem>>
      %200 = tpu.memref_squeeze %199 : memref<1x1x256xf32, #tpu.memory_space<vmem>> -> memref<1x256xf32, #tpu.memory_space<vmem>>
      %201 = tpu.memref_slice %arg8[%129] : memref<2x!tpu.dma_semaphore, #tpu.memory_space<semaphore_mem>> -> memref<1x!tpu.dma_semaphore, #tpu.memory_space<semaphore_mem>>
      %202 = tpu.memref_squeeze %201 : memref<1x!tpu.dma_semaphore, #tpu.memory_space<semaphore_mem>> -> memref<!tpu.dma_semaphore, #tpu.memory_space<semaphore_mem>>
      tpu.enqueue_dma source(%198 : memref<1x256xf32, #tpu.memory_space<any>>) target(%200 : memref<1x256xf32, #tpu.memory_space<vmem>>) target_semaphore(%202 : memref<!tpu.dma_semaphore, #tpu.memory_space<semaphore_mem>>)
      %c9_i32_110 = arith.constant 9 : i32
      %203 = arith.addi %130, %c9_i32_110 : i32
      %204 = arith.index_cast %203 : i32 to index
      %205 = memref.load %arg1[%204] : memref<32xi32, #tpu.memory_space<smem>>
      %c0_i32_111 = arith.constant 0 : i32
      %206 = tpu.memref_slice %arg2[%205, %c0_i32_111] : memref<512x256xf32, #tpu.memory_space<any>> -> memref<1x256xf32, #tpu.memory_space<any>>
      %c9_i32_112 = arith.constant 9 : i32
      %c0_i32_113 = arith.constant 0 : i32
      %207 = tpu.memref_slice %arg7[%129, %c9_i32_112, %c0_i32_113] : memref<2x16x256xf32, #tpu.memory_space<vmem>> -> memref<1x1x256xf32, #tpu.memory_space<vmem>>
      %208 = tpu.memref_squeeze %207 : memref<1x1x256xf32, #tpu.memory_space<vmem>> -> memref<1x256xf32, #tpu.memory_space<vmem>>
      %209 = tpu.memref_slice %arg8[%129] : memref<2x!tpu.dma_semaphore, #tpu.memory_space<semaphore_mem>> -> memref<1x!tpu.dma_semaphore, #tpu.memory_space<semaphore_mem>>
      %210 = tpu.memref_squeeze %209 : memref<1x!tpu.dma_semaphore, #tpu.memory_space<semaphore_mem>> -> memref<!tpu.dma_semaphore, #tpu.memory_space<semaphore_mem>>
      tpu.enqueue_dma source(%206 : memref<1x256xf32, #tpu.memory_space<any>>) target(%208 : memref<1x256xf32, #tpu.memory_space<vmem>>) target_semaphore(%210 : memref<!tpu.dma_semaphore, #tpu.memory_space<semaphore_mem>>)
      %c10_i32_114 = arith.constant 10 : i32
      %211 = arith.addi %130, %c10_i32_114 : i32
      %212 = arith.index_cast %211 : i32 to index
      %213 = memref.load %arg1[%212] : memref<32xi32, #tpu.memory_space<smem>>
      %c0_i32_115 = arith.constant 0 : i32
      %214 = tpu.memref_slice %arg2[%213, %c0_i32_115] : memref<512x256xf32, #tpu.memory_space<any>> -> memref<1x256xf32, #tpu.memory_space<any>>
      %c10_i32_116 = arith.constant 10 : i32
      %c0_i32_117 = arith.constant 0 : i32
      %215 = tpu.memref_slice %arg7[%129, %c10_i32_116, %c0_i32_117] : memref<2x16x256xf32, #tpu.memory_space<vmem>> -> memref<1x1x256xf32, #tpu.memory_space<vmem>>
      %216 = tpu.memref_squeeze %215 : memref<1x1x256xf32, #tpu.memory_space<vmem>> -> memref<1x256xf32, #tpu.memory_space<vmem>>
      %217 = tpu.memref_slice %arg8[%129] : memref<2x!tpu.dma_semaphore, #tpu.memory_space<semaphore_mem>> -> memref<1x!tpu.dma_semaphore, #tpu.memory_space<semaphore_mem>>
      %218 = tpu.memref_squeeze %217 : memref<1x!tpu.dma_semaphore, #tpu.memory_space<semaphore_mem>> -> memref<!tpu.dma_semaphore, #tpu.memory_space<semaphore_mem>>
      tpu.enqueue_dma source(%214 : memref<1x256xf32, #tpu.memory_space<any>>) target(%216 : memref<1x256xf32, #tpu.memory_space<vmem>>) target_semaphore(%218 : memref<!tpu.dma_semaphore, #tpu.memory_space<semaphore_mem>>)
      %c11_i32_118 = arith.constant 11 : i32
      %219 = arith.addi %130, %c11_i32_118 : i32
      %220 = arith.index_cast %219 : i32 to index
      %221 = memref.load %arg1[%220] : memref<32xi32, #tpu.memory_space<smem>>
      %c0_i32_119 = arith.constant 0 : i32
      %222 = tpu.memref_slice %arg2[%221, %c0_i32_119] : memref<512x256xf32, #tpu.memory_space<any>> -> memref<1x256xf32, #tpu.memory_space<any>>
      %c11_i32_120 = arith.constant 11 : i32
      %c0_i32_121 = arith.constant 0 : i32
      %223 = tpu.memref_slice %arg7[%129, %c11_i32_120, %c0_i32_121] : memref<2x16x256xf32, #tpu.memory_space<vmem>> -> memref<1x1x256xf32, #tpu.memory_space<vmem>>
      %224 = tpu.memref_squeeze %223 : memref<1x1x256xf32, #tpu.memory_space<vmem>> -> memref<1x256xf32, #tpu.memory_space<vmem>>
      %225 = tpu.memref_slice %arg8[%129] : memref<2x!tpu.dma_semaphore, #tpu.memory_space<semaphore_mem>> -> memref<1x!tpu.dma_semaphore, #tpu.memory_space<semaphore_mem>>
      %226 = tpu.memref_squeeze %225 : memref<1x!tpu.dma_semaphore, #tpu.memory_space<semaphore_mem>> -> memref<!tpu.dma_semaphore, #tpu.memory_space<semaphore_mem>>
      tpu.enqueue_dma source(%222 : memref<1x256xf32, #tpu.memory_space<any>>) target(%224 : memref<1x256xf32, #tpu.memory_space<vmem>>) target_semaphore(%226 : memref<!tpu.dma_semaphore, #tpu.memory_space<semaphore_mem>>)
      %c12_i32_122 = arith.constant 12 : i32
      %227 = arith.addi %130, %c12_i32_122 : i32
      %228 = arith.index_cast %227 : i32 to index
      %229 = memref.load %arg1[%228] : memref<32xi32, #tpu.memory_space<smem>>
      %c0_i32_123 = arith.constant 0 : i32
      %230 = tpu.memref_slice %arg2[%229, %c0_i32_123] : memref<512x256xf32, #tpu.memory_space<any>> -> memref<1x256xf32, #tpu.memory_space<any>>
      %c12_i32_124 = arith.constant 12 : i32
      %c0_i32_125 = arith.constant 0 : i32
      %231 = tpu.memref_slice %arg7[%129, %c12_i32_124, %c0_i32_125] : memref<2x16x256xf32, #tpu.memory_space<vmem>> -> memref<1x1x256xf32, #tpu.memory_space<vmem>>
      %232 = tpu.memref_squeeze %231 : memref<1x1x256xf32, #tpu.memory_space<vmem>> -> memref<1x256xf32, #tpu.memory_space<vmem>>
      %233 = tpu.memref_slice %arg8[%129] : memref<2x!tpu.dma_semaphore, #tpu.memory_space<semaphore_mem>> -> memref<1x!tpu.dma_semaphore, #tpu.memory_space<semaphore_mem>>
      %234 = tpu.memref_squeeze %233 : memref<1x!tpu.dma_semaphore, #tpu.memory_space<semaphore_mem>> -> memref<!tpu.dma_semaphore, #tpu.memory_space<semaphore_mem>>
      tpu.enqueue_dma source(%230 : memref<1x256xf32, #tpu.memory_space<any>>) target(%232 : memref<1x256xf32, #tpu.memory_space<vmem>>) target_semaphore(%234 : memref<!tpu.dma_semaphore, #tpu.memory_space<semaphore_mem>>)
      %c13_i32_126 = arith.constant 13 : i32
      %235 = arith.addi %130, %c13_i32_126 : i32
      %236 = arith.index_cast %235 : i32 to index
      %237 = memref.load %arg1[%236] : memref<32xi32, #tpu.memory_space<smem>>
      %c0_i32_127 = arith.constant 0 : i32
      %238 = tpu.memref_slice %arg2[%237, %c0_i32_127] : memref<512x256xf32, #tpu.memory_space<any>> -> memref<1x256xf32, #tpu.memory_space<any>>
      %c13_i32_128 = arith.constant 13 : i32
      %c0_i32_129 = arith.constant 0 : i32
      %239 = tpu.memref_slice %arg7[%129, %c13_i32_128, %c0_i32_129] : memref<2x16x256xf32, #tpu.memory_space<vmem>> -> memref<1x1x256xf32, #tpu.memory_space<vmem>>
      %240 = tpu.memref_squeeze %239 : memref<1x1x256xf32, #tpu.memory_space<vmem>> -> memref<1x256xf32, #tpu.memory_space<vmem>>
      %241 = tpu.memref_slice %arg8[%129] : memref<2x!tpu.dma_semaphore, #tpu.memory_space<semaphore_mem>> -> memref<1x!tpu.dma_semaphore, #tpu.memory_space<semaphore_mem>>
      %242 = tpu.memref_squeeze %241 : memref<1x!tpu.dma_semaphore, #tpu.memory_space<semaphore_mem>> -> memref<!tpu.dma_semaphore, #tpu.memory_space<semaphore_mem>>
      tpu.enqueue_dma source(%238 : memref<1x256xf32, #tpu.memory_space<any>>) target(%240 : memref<1x256xf32, #tpu.memory_space<vmem>>) target_semaphore(%242 : memref<!tpu.dma_semaphore, #tpu.memory_space<semaphore_mem>>)
      %c14_i32_130 = arith.constant 14 : i32
      %243 = arith.addi %130, %c14_i32_130 : i32
      %244 = arith.index_cast %243 : i32 to index
      %245 = memref.load %arg1[%244] : memref<32xi32, #tpu.memory_space<smem>>
      %c0_i32_131 = arith.constant 0 : i32
      %246 = tpu.memref_slice %arg2[%245, %c0_i32_131] : memref<512x256xf32, #tpu.memory_space<any>> -> memref<1x256xf32, #tpu.memory_space<any>>
      %c14_i32_132 = arith.constant 14 : i32
      %c0_i32_133 = arith.constant 0 : i32
      %247 = tpu.memref_slice %arg7[%129, %c14_i32_132, %c0_i32_133] : memref<2x16x256xf32, #tpu.memory_space<vmem>> -> memref<1x1x256xf32, #tpu.memory_space<vmem>>
      %248 = tpu.memref_squeeze %247 : memref<1x1x256xf32, #tpu.memory_space<vmem>> -> memref<1x256xf32, #tpu.memory_space<vmem>>
      %249 = tpu.memref_slice %arg8[%129] : memref<2x!tpu.dma_semaphore, #tpu.memory_space<semaphore_mem>> -> memref<1x!tpu.dma_semaphore, #tpu.memory_space<semaphore_mem>>
      %250 = tpu.memref_squeeze %249 : memref<1x!tpu.dma_semaphore, #tpu.memory_space<semaphore_mem>> -> memref<!tpu.dma_semaphore, #tpu.memory_space<semaphore_mem>>
      tpu.enqueue_dma source(%246 : memref<1x256xf32, #tpu.memory_space<any>>) target(%248 : memref<1x256xf32, #tpu.memory_space<vmem>>) target_semaphore(%250 : memref<!tpu.dma_semaphore, #tpu.memory_space<semaphore_mem>>)
      %c15_i32_134 = arith.constant 15 : i32
      %251 = arith.addi %130, %c15_i32_134 : i32
      %252 = arith.index_cast %251 : i32 to index
      %253 = memref.load %arg1[%252] : memref<32xi32, #tpu.memory_space<smem>>
      %c0_i32_135 = arith.constant 0 : i32
      %254 = tpu.memref_slice %arg2[%253, %c0_i32_135] : memref<512x256xf32, #tpu.memory_space<any>> -> memref<1x256xf32, #tpu.memory_space<any>>
      %c15_i32_136 = arith.constant 15 : i32
      %c0_i32_137 = arith.constant 0 : i32
      %255 = tpu.memref_slice %arg7[%129, %c15_i32_136, %c0_i32_137] : memref<2x16x256xf32, #tpu.memory_space<vmem>> -> memref<1x1x256xf32, #tpu.memory_space<vmem>>
      %256 = tpu.memref_squeeze %255 : memref<1x1x256xf32, #tpu.memory_space<vmem>> -> memref<1x256xf32, #tpu.memory_space<vmem>>
      %257 = tpu.memref_slice %arg8[%129] : memref<2x!tpu.dma_semaphore, #tpu.memory_space<semaphore_mem>> -> memref<1x!tpu.dma_semaphore, #tpu.memory_space<semaphore_mem>>
      %258 = tpu.memref_squeeze %257 : memref<1x!tpu.dma_semaphore, #tpu.memory_space<semaphore_mem>> -> memref<!tpu.dma_semaphore, #tpu.memory_space<semaphore_mem>>
      tpu.enqueue_dma source(%254 : memref<1x256xf32, #tpu.memory_space<any>>) target(%256 : memref<1x256xf32, #tpu.memory_space<vmem>>) target_semaphore(%258 : memref<!tpu.dma_semaphore, #tpu.memory_space<semaphore_mem>>)
    } else {
    }
    %c0_i32_8 = arith.constant 0 : i32
    %c0_i32_9 = arith.constant 0 : i32
    %17 = tpu.memref_slice %arg2[%c0_i32_8, %c0_i32_9] : memref<512x256xf32, #tpu.memory_space<any>> -> memref<1x256xf32, #tpu.memory_space<any>>
    %c0_i32_10 = arith.constant 0 : i32
    %c0_i32_11 = arith.constant 0 : i32
    %18 = tpu.memref_slice %arg7[%9, %c0_i32_10, %c0_i32_11] : memref<2x16x256xf32, #tpu.memory_space<vmem>> -> memref<1x1x256xf32, #tpu.memory_space<vmem>>
    %19 = tpu.memref_squeeze %18 : memref<1x1x256xf32, #tpu.memory_space<vmem>> -> memref<1x256xf32, #tpu.memory_space<vmem>>
    %20 = tpu.memref_slice %arg8[%9] : memref<2x!tpu.dma_semaphore, #tpu.memory_space<semaphore_mem>> -> memref<1x!tpu.dma_semaphore, #tpu.memory_space<semaphore_mem>>
    %21 = tpu.memref_squeeze %20 : memref<1x!tpu.dma_semaphore, #tpu.memory_space<semaphore_mem>> -> memref<!tpu.dma_semaphore, #tpu.memory_space<semaphore_mem>>
    tpu.wait_dma2 semaphore(%21 : memref<!tpu.dma_semaphore, #tpu.memory_space<semaphore_mem>>) src(%17 : memref<1x256xf32, #tpu.memory_space<any>>) dst(%19 : memref<1x256xf32, #tpu.memory_space<vmem>>)
    %c0_i32_12 = arith.constant 0 : i32
    %c0_i32_13 = arith.constant 0 : i32
    %22 = tpu.memref_slice %arg2[%c0_i32_12, %c0_i32_13] : memref<512x256xf32, #tpu.memory_space<any>> -> memref<1x256xf32, #tpu.memory_space<any>>
    %c1_i32_14 = arith.constant 1 : i32
    %c0_i32_15 = arith.constant 0 : i32
    %23 = tpu.memref_slice %arg7[%9, %c1_i32_14, %c0_i32_15] : memref<2x16x256xf32, #tpu.memory_space<vmem>> -> memref<1x1x256xf32, #tpu.memory_space<vmem>>
    %24 = tpu.memref_squeeze %23 : memref<1x1x256xf32, #tpu.memory_space<vmem>> -> memref<1x256xf32, #tpu.memory_space<vmem>>
    %25 = tpu.memref_slice %arg8[%9] : memref<2x!tpu.dma_semaphore, #tpu.memory_space<semaphore_mem>> -> memref<1x!tpu.dma_semaphore, #tpu.memory_space<semaphore_mem>>
    %26 = tpu.memref_squeeze %25 : memref<1x!tpu.dma_semaphore, #tpu.memory_space<semaphore_mem>> -> memref<!tpu.dma_semaphore, #tpu.memory_space<semaphore_mem>>
    tpu.wait_dma2 semaphore(%26 : memref<!tpu.dma_semaphore, #tpu.memory_space<semaphore_mem>>) src(%22 : memref<1x256xf32, #tpu.memory_space<any>>) dst(%24 : memref<1x256xf32, #tpu.memory_space<vmem>>)
    %c0_i32_16 = arith.constant 0 : i32
    %c0_i32_17 = arith.constant 0 : i32
    %27 = tpu.memref_slice %arg2[%c0_i32_16, %c0_i32_17] : memref<512x256xf32, #tpu.memory_space<any>> -> memref<1x256xf32, #tpu.memory_space<any>>
    %c2_i32_18 = arith.constant 2 : i32
    %c0_i32_19 = arith.constant 0 : i32
    %28 = tpu.memref_slice %arg7[%9, %c2_i32_18, %c0_i32_19] : memref<2x16x256xf32, #tpu.memory_space<vmem>> -> memref<1x1x256xf32, #tpu.memory_space<vmem>>
    %29 = tpu.memref_squeeze %28 : memref<1x1x256xf32, #tpu.memory_space<vmem>> -> memref<1x256xf32, #tpu.memory_space<vmem>>
    %30 = tpu.memref_slice %arg8[%9] : memref<2x!tpu.dma_semaphore, #tpu.memory_space<semaphore_mem>> -> memref<1x!tpu.dma_semaphore, #tpu.memory_space<semaphore_mem>>
    %31 = tpu.memref_squeeze %30 : memref<1x!tpu.dma_semaphore, #tpu.memory_space<semaphore_mem>> -> memref<!tpu.dma_semaphore, #tpu.memory_space<semaphore_mem>>
    tpu.wait_dma2 semaphore(%31 : memref<!tpu.dma_semaphore, #tpu.memory_space<semaphore_mem>>) src(%27 : memref<1x256xf32, #tpu.memory_space<any>>) dst(%29 : memref<1x256xf32, #tpu.memory_space<vmem>>)
    %c0_i32_20 = arith.constant 0 : i32
    %c0_i32_21 = arith.constant 0 : i32
    %32 = tpu.memref_slice %arg2[%c0_i32_20, %c0_i32_21] : memref<512x256xf32, #tpu.memory_space<any>> -> memref<1x256xf32, #tpu.memory_space<any>>
    %c3_i32 = arith.constant 3 : i32
    %c0_i32_22 = arith.constant 0 : i32
    %33 = tpu.memref_slice %arg7[%9, %c3_i32, %c0_i32_22] : memref<2x16x256xf32, #tpu.memory_space<vmem>> -> memref<1x1x256xf32, #tpu.memory_space<vmem>>
    %34 = tpu.memref_squeeze %33 : memref<1x1x256xf32, #tpu.memory_space<vmem>> -> memref<1x256xf32, #tpu.memory_space<vmem>>
    %35 = tpu.memref_slice %arg8[%9] : memref<2x!tpu.dma_semaphore, #tpu.memory_space<semaphore_mem>> -> memref<1x!tpu.dma_semaphore, #tpu.memory_space<semaphore_mem>>
    %36 = tpu.memref_squeeze %35 : memref<1x!tpu.dma_semaphore, #tpu.memory_space<semaphore_mem>> -> memref<!tpu.dma_semaphore, #tpu.memory_space<semaphore_mem>>
    tpu.wait_dma2 semaphore(%36 : memref<!tpu.dma_semaphore, #tpu.memory_space<semaphore_mem>>) src(%32 : memref<1x256xf32, #tpu.memory_space<any>>) dst(%34 : memref<1x256xf32, #tpu.memory_space<vmem>>)
    %c0_i32_23 = arith.constant 0 : i32
    %c0_i32_24 = arith.constant 0 : i32
    %37 = tpu.memref_slice %arg2[%c0_i32_23, %c0_i32_24] : memref<512x256xf32, #tpu.memory_space<any>> -> memref<1x256xf32, #tpu.memory_space<any>>
    %c4_i32 = arith.constant 4 : i32
    %c0_i32_25 = arith.constant 0 : i32
    %38 = tpu.memref_slice %arg7[%9, %c4_i32, %c0_i32_25] : memref<2x16x256xf32, #tpu.memory_space<vmem>> -> memref<1x1x256xf32, #tpu.memory_space<vmem>>
    %39 = tpu.memref_squeeze %38 : memref<1x1x256xf32, #tpu.memory_space<vmem>> -> memref<1x256xf32, #tpu.memory_space<vmem>>
    %40 = tpu.memref_slice %arg8[%9] : memref<2x!tpu.dma_semaphore, #tpu.memory_space<semaphore_mem>> -> memref<1x!tpu.dma_semaphore, #tpu.memory_space<semaphore_mem>>
    %41 = tpu.memref_squeeze %40 : memref<1x!tpu.dma_semaphore, #tpu.memory_space<semaphore_mem>> -> memref<!tpu.dma_semaphore, #tpu.memory_space<semaphore_mem>>
    tpu.wait_dma2 semaphore(%41 : memref<!tpu.dma_semaphore, #tpu.memory_space<semaphore_mem>>) src(%37 : memref<1x256xf32, #tpu.memory_space<any>>) dst(%39 : memref<1x256xf32, #tpu.memory_space<vmem>>)
    %c0_i32_26 = arith.constant 0 : i32
    %c0_i32_27 = arith.constant 0 : i32
    %42 = tpu.memref_slice %arg2[%c0_i32_26, %c0_i32_27] : memref<512x256xf32, #tpu.memory_space<any>> -> memref<1x256xf32, #tpu.memory_space<any>>
    %c5_i32 = arith.constant 5 : i32
    %c0_i32_28 = arith.constant 0 : i32
    %43 = tpu.memref_slice %arg7[%9, %c5_i32, %c0_i32_28] : memref<2x16x256xf32, #tpu.memory_space<vmem>> -> memref<1x1x256xf32, #tpu.memory_space<vmem>>
    %44 = tpu.memref_squeeze %43 : memref<1x1x256xf32, #tpu.memory_space<vmem>> -> memref<1x256xf32, #tpu.memory_space<vmem>>
    %45 = tpu.memref_slice %arg8[%9] : memref<2x!tpu.dma_semaphore, #tpu.memory_space<semaphore_mem>> -> memref<1x!tpu.dma_semaphore, #tpu.memory_space<semaphore_mem>>
    %46 = tpu.memref_squeeze %45 : memref<1x!tpu.dma_semaphore, #tpu.memory_space<semaphore_mem>> -> memref<!tpu.dma_semaphore, #tpu.memory_space<semaphore_mem>>
    tpu.wait_dma2 semaphore(%46 : memref<!tpu.dma_semaphore, #tpu.memory_space<semaphore_mem>>) src(%42 : memref<1x256xf32, #tpu.memory_space<any>>) dst(%44 : memref<1x256xf32, #tpu.memory_space<vmem>>)
    %c0_i32_29 = arith.constant 0 : i32
    %c0_i32_30 = arith.constant 0 : i32
    %47 = tpu.memref_slice %arg2[%c0_i32_29, %c0_i32_30] : memref<512x256xf32, #tpu.memory_space<any>> -> memref<1x256xf32, #tpu.memory_space<any>>
    %c6_i32 = arith.constant 6 : i32
    %c0_i32_31 = arith.constant 0 : i32
    %48 = tpu.memref_slice %arg7[%9, %c6_i32, %c0_i32_31] : memref<2x16x256xf32, #tpu.memory_space<vmem>> -> memref<1x1x256xf32, #tpu.memory_space<vmem>>
    %49 = tpu.memref_squeeze %48 : memref<1x1x256xf32, #tpu.memory_space<vmem>> -> memref<1x256xf32, #tpu.memory_space<vmem>>
    %50 = tpu.memref_slice %arg8[%9] : memref<2x!tpu.dma_semaphore, #tpu.memory_space<semaphore_mem>> -> memref<1x!tpu.dma_semaphore, #tpu.memory_space<semaphore_mem>>
    %51 = tpu.memref_squeeze %50 : memref<1x!tpu.dma_semaphore, #tpu.memory_space<semaphore_mem>> -> memref<!tpu.dma_semaphore, #tpu.memory_space<semaphore_mem>>
    tpu.wait_dma2 semaphore(%51 : memref<!tpu.dma_semaphore, #tpu.memory_space<semaphore_mem>>) src(%47 : memref<1x256xf32, #tpu.memory_space<any>>) dst(%49 : memref<1x256xf32, #tpu.memory_space<vmem>>)
    %c0_i32_32 = arith.constant 0 : i32
    %c0_i32_33 = arith.constant 0 : i32
    %52 = tpu.memref_slice %arg2[%c0_i32_32, %c0_i32_33] : memref<512x256xf32, #tpu.memory_space<any>> -> memref<1x256xf32, #tpu.memory_space<any>>
    %c7_i32 = arith.constant 7 : i32
    %c0_i32_34 = arith.constant 0 : i32
    %53 = tpu.memref_slice %arg7[%9, %c7_i32, %c0_i32_34] : memref<2x16x256xf32, #tpu.memory_space<vmem>> -> memref<1x1x256xf32, #tpu.memory_space<vmem>>
    %54 = tpu.memref_squeeze %53 : memref<1x1x256xf32, #tpu.memory_space<vmem>> -> memref<1x256xf32, #tpu.memory_space<vmem>>
    %55 = tpu.memref_slice %arg8[%9] : memref<2x!tpu.dma_semaphore, #tpu.memory_space<semaphore_mem>> -> memref<1x!tpu.dma_semaphore, #tpu.memory_space<semaphore_mem>>
    %56 = tpu.memref_squeeze %55 : memref<1x!tpu.dma_semaphore, #tpu.memory_space<semaphore_mem>> -> memref<!tpu.dma_semaphore, #tpu.memory_space<semaphore_mem>>
    tpu.wait_dma2 semaphore(%56 : memref<!tpu.dma_semaphore, #tpu.memory_space<semaphore_mem>>) src(%52 : memref<1x256xf32, #tpu.memory_space<any>>) dst(%54 : memref<1x256xf32, #tpu.memory_space<vmem>>)
    %c0_i32_35 = arith.constant 0 : i32
    %c0_i32_36 = arith.constant 0 : i32
    %57 = tpu.memref_slice %arg2[%c0_i32_35, %c0_i32_36] : memref<512x256xf32, #tpu.memory_space<any>> -> memref<1x256xf32, #tpu.memory_space<any>>
    %c8_i32 = arith.constant 8 : i32
    %c0_i32_37 = arith.constant 0 : i32
    %58 = tpu.memref_slice %arg7[%9, %c8_i32, %c0_i32_37] : memref<2x16x256xf32, #tpu.memory_space<vmem>> -> memref<1x1x256xf32, #tpu.memory_space<vmem>>
    %59 = tpu.memref_squeeze %58 : memref<1x1x256xf32, #tpu.memory_space<vmem>> -> memref<1x256xf32, #tpu.memory_space<vmem>>
    %60 = tpu.memref_slice %arg8[%9] : memref<2x!tpu.dma_semaphore, #tpu.memory_space<semaphore_mem>> -> memref<1x!tpu.dma_semaphore, #tpu.memory_space<semaphore_mem>>
    %61 = tpu.memref_squeeze %60 : memref<1x!tpu.dma_semaphore, #tpu.memory_space<semaphore_mem>> -> memref<!tpu.dma_semaphore, #tpu.memory_space<semaphore_mem>>
    tpu.wait_dma2 semaphore(%61 : memref<!tpu.dma_semaphore, #tpu.memory_space<semaphore_mem>>) src(%57 : memref<1x256xf32, #tpu.memory_space<any>>) dst(%59 : memref<1x256xf32, #tpu.memory_space<vmem>>)
    %c0_i32_38 = arith.constant 0 : i32
    %c0_i32_39 = arith.constant 0 : i32
    %62 = tpu.memref_slice %arg2[%c0_i32_38, %c0_i32_39] : memref<512x256xf32, #tpu.memory_space<any>> -> memref<1x256xf32, #tpu.memory_space<any>>
    %c9_i32 = arith.constant 9 : i32
    %c0_i32_40 = arith.constant 0 : i32
    %63 = tpu.memref_slice %arg7[%9, %c9_i32, %c0_i32_40] : memref<2x16x256xf32, #tpu.memory_space<vmem>> -> memref<1x1x256xf32, #tpu.memory_space<vmem>>
    %64 = tpu.memref_squeeze %63 : memref<1x1x256xf32, #tpu.memory_space<vmem>> -> memref<1x256xf32, #tpu.memory_space<vmem>>
    %65 = tpu.memref_slice %arg8[%9] : memref<2x!tpu.dma_semaphore, #tpu.memory_space<semaphore_mem>> -> memref<1x!tpu.dma_semaphore, #tpu.memory_space<semaphore_mem>>
    %66 = tpu.memref_squeeze %65 : memref<1x!tpu.dma_semaphore, #tpu.memory_space<semaphore_mem>> -> memref<!tpu.dma_semaphore, #tpu.memory_space<semaphore_mem>>
    tpu.wait_dma2 semaphore(%66 : memref<!tpu.dma_semaphore, #tpu.memory_space<semaphore_mem>>) src(%62 : memref<1x256xf32, #tpu.memory_space<any>>) dst(%64 : memref<1x256xf32, #tpu.memory_space<vmem>>)
    %c0_i32_41 = arith.constant 0 : i32
    %c0_i32_42 = arith.constant 0 : i32
    %67 = tpu.memref_slice %arg2[%c0_i32_41, %c0_i32_42] : memref<512x256xf32, #tpu.memory_space<any>> -> memref<1x256xf32, #tpu.memory_space<any>>
    %c10_i32 = arith.constant 10 : i32
    %c0_i32_43 = arith.constant 0 : i32
    %68 = tpu.memref_slice %arg7[%9, %c10_i32, %c0_i32_43] : memref<2x16x256xf32, #tpu.memory_space<vmem>> -> memref<1x1x256xf32, #tpu.memory_space<vmem>>
    %69 = tpu.memref_squeeze %68 : memref<1x1x256xf32, #tpu.memory_space<vmem>> -> memref<1x256xf32, #tpu.memory_space<vmem>>
    %70 = tpu.memref_slice %arg8[%9] : memref<2x!tpu.dma_semaphore, #tpu.memory_space<semaphore_mem>> -> memref<1x!tpu.dma_semaphore, #tpu.memory_space<semaphore_mem>>
    %71 = tpu.memref_squeeze %70 : memref<1x!tpu.dma_semaphore, #tpu.memory_space<semaphore_mem>> -> memref<!tpu.dma_semaphore, #tpu.memory_space<semaphore_mem>>
    tpu.wait_dma2 semaphore(%71 : memref<!tpu.dma_semaphore, #tpu.memory_space<semaphore_mem>>) src(%67 : memref<1x256xf32, #tpu.memory_space<any>>) dst(%69 : memref<1x256xf32, #tpu.memory_space<vmem>>)
    %c0_i32_44 = arith.constant 0 : i32
    %c0_i32_45 = arith.constant 0 : i32
    %72 = tpu.memref_slice %arg2[%c0_i32_44, %c0_i32_45] : memref<512x256xf32, #tpu.memory_space<any>> -> memref<1x256xf32, #tpu.memory_space<any>>
    %c11_i32 = arith.constant 11 : i32
    %c0_i32_46 = arith.constant 0 : i32
    %73 = tpu.memref_slice %arg7[%9, %c11_i32, %c0_i32_46] : memref<2x16x256xf32, #tpu.memory_space<vmem>> -> memref<1x1x256xf32, #tpu.memory_space<vmem>>
    %74 = tpu.memref_squeeze %73 : memref<1x1x256xf32, #tpu.memory_space<vmem>> -> memref<1x256xf32, #tpu.memory_space<vmem>>
    %75 = tpu.memref_slice %arg8[%9] : memref<2x!tpu.dma_semaphore, #tpu.memory_space<semaphore_mem>> -> memref<1x!tpu.dma_semaphore, #tpu.memory_space<semaphore_mem>>
    %76 = tpu.memref_squeeze %75 : memref<1x!tpu.dma_semaphore, #tpu.memory_space<semaphore_mem>> -> memref<!tpu.dma_semaphore, #tpu.memory_space<semaphore_mem>>
    tpu.wait_dma2 semaphore(%76 : memref<!tpu.dma_semaphore, #tpu.memory_space<semaphore_mem>>) src(%72 : memref<1x256xf32, #tpu.memory_space<any>>) dst(%74 : memref<1x256xf32, #tpu.memory_space<vmem>>)
    %c0_i32_47 = arith.constant 0 : i32
    %c0_i32_48 = arith.constant 0 : i32
    %77 = tpu.memref_slice %arg2[%c0_i32_47, %c0_i32_48] : memref<512x256xf32, #tpu.memory_space<any>> -> memref<1x256xf32, #tpu.memory_space<any>>
    %c12_i32 = arith.constant 12 : i32
    %c0_i32_49 = arith.constant 0 : i32
    %78 = tpu.memref_slice %arg7[%9, %c12_i32, %c0_i32_49] : memref<2x16x256xf32, #tpu.memory_space<vmem>> -> memref<1x1x256xf32, #tpu.memory_space<vmem>>
    %79 = tpu.memref_squeeze %78 : memref<1x1x256xf32, #tpu.memory_space<vmem>> -> memref<1x256xf32, #tpu.memory_space<vmem>>
    %80 = tpu.memref_slice %arg8[%9] : memref<2x!tpu.dma_semaphore, #tpu.memory_space<semaphore_mem>> -> memref<1x!tpu.dma_semaphore, #tpu.memory_space<semaphore_mem>>
    %81 = tpu.memref_squeeze %80 : memref<1x!tpu.dma_semaphore, #tpu.memory_space<semaphore_mem>> -> memref<!tpu.dma_semaphore, #tpu.memory_space<semaphore_mem>>
    tpu.wait_dma2 semaphore(%81 : memref<!tpu.dma_semaphore, #tpu.memory_space<semaphore_mem>>) src(%77 : memref<1x256xf32, #tpu.memory_space<any>>) dst(%79 : memref<1x256xf32, #tpu.memory_space<vmem>>)
    %c0_i32_50 = arith.constant 0 : i32
    %c0_i32_51 = arith.constant 0 : i32
    %82 = tpu.memref_slice %arg2[%c0_i32_50, %c0_i32_51] : memref<512x256xf32, #tpu.memory_space<any>> -> memref<1x256xf32, #tpu.memory_space<any>>
    %c13_i32 = arith.constant 13 : i32
    %c0_i32_52 = arith.constant 0 : i32
    %83 = tpu.memref_slice %arg7[%9, %c13_i32, %c0_i32_52] : memref<2x16x256xf32, #tpu.memory_space<vmem>> -> memref<1x1x256xf32, #tpu.memory_space<vmem>>
    %84 = tpu.memref_squeeze %83 : memref<1x1x256xf32, #tpu.memory_space<vmem>> -> memref<1x256xf32, #tpu.memory_space<vmem>>
    %85 = tpu.memref_slice %arg8[%9] : memref<2x!tpu.dma_semaphore, #tpu.memory_space<semaphore_mem>> -> memref<1x!tpu.dma_semaphore, #tpu.memory_space<semaphore_mem>>
    %86 = tpu.memref_squeeze %85 : memref<1x!tpu.dma_semaphore, #tpu.memory_space<semaphore_mem>> -> memref<!tpu.dma_semaphore, #tpu.memory_space<semaphore_mem>>
    tpu.wait_dma2 semaphore(%86 : memref<!tpu.dma_semaphore, #tpu.memory_space<semaphore_mem>>) src(%82 : memref<1x256xf32, #tpu.memory_space<any>>) dst(%84 : memref<1x256xf32, #tpu.memory_space<vmem>>)
    %c0_i32_53 = arith.constant 0 : i32
    %c0_i32_54 = arith.constant 0 : i32
    %87 = tpu.memref_slice %arg2[%c0_i32_53, %c0_i32_54] : memref<512x256xf32, #tpu.memory_space<any>> -> memref<1x256xf32, #tpu.memory_space<any>>
    %c14_i32 = arith.constant 14 : i32
    %c0_i32_55 = arith.constant 0 : i32
    %88 = tpu.memref_slice %arg7[%9, %c14_i32, %c0_i32_55] : memref<2x16x256xf32, #tpu.memory_space<vmem>> -> memref<1x1x256xf32, #tpu.memory_space<vmem>>
    %89 = tpu.memref_squeeze %88 : memref<1x1x256xf32, #tpu.memory_space<vmem>> -> memref<1x256xf32, #tpu.memory_space<vmem>>
    %90 = tpu.memref_slice %arg8[%9] : memref<2x!tpu.dma_semaphore, #tpu.memory_space<semaphore_mem>> -> memref<1x!tpu.dma_semaphore, #tpu.memory_space<semaphore_mem>>
    %91 = tpu.memref_squeeze %90 : memref<1x!tpu.dma_semaphore, #tpu.memory_space<semaphore_mem>> -> memref<!tpu.dma_semaphore, #tpu.memory_space<semaphore_mem>>
    tpu.wait_dma2 semaphore(%91 : memref<!tpu.dma_semaphore, #tpu.memory_space<semaphore_mem>>) src(%87 : memref<1x256xf32, #tpu.memory_space<any>>) dst(%89 : memref<1x256xf32, #tpu.memory_space<vmem>>)
    %c0_i32_56 = arith.constant 0 : i32
    %c0_i32_57 = arith.constant 0 : i32
    %92 = tpu.memref_slice %arg2[%c0_i32_56, %c0_i32_57] : memref<512x256xf32, #tpu.memory_space<any>> -> memref<1x256xf32, #tpu.memory_space<any>>
    %c15_i32 = arith.constant 15 : i32
    %c0_i32_58 = arith.constant 0 : i32
    %93 = tpu.memref_slice %arg7[%9, %c15_i32, %c0_i32_58] : memref<2x16x256xf32, #tpu.memory_space<vmem>> -> memref<1x1x256xf32, #tpu.memory_space<vmem>>
    %94 = tpu.memref_squeeze %93 : memref<1x1x256xf32, #tpu.memory_space<vmem>> -> memref<1x256xf32, #tpu.memory_space<vmem>>
    %95 = tpu.memref_slice %arg8[%9] : memref<2x!tpu.dma_semaphore, #tpu.memory_space<semaphore_mem>> -> memref<1x!tpu.dma_semaphore, #tpu.memory_space<semaphore_mem>>
    %96 = tpu.memref_squeeze %95 : memref<1x!tpu.dma_semaphore, #tpu.memory_space<semaphore_mem>> -> memref<!tpu.dma_semaphore, #tpu.memory_space<semaphore_mem>>
    tpu.wait_dma2 semaphore(%96 : memref<!tpu.dma_semaphore, #tpu.memory_space<semaphore_mem>>) src(%92 : memref<1x256xf32, #tpu.memory_space<any>>) dst(%94 : memref<1x256xf32, #tpu.memory_space<vmem>>)
    %c0 = arith.constant 0 : index
    %c0_59 = arith.constant 0 : index
    %97 = vector.load %arg3[%c0, %c0_59] : memref<16x256xf32, #tpu.memory_space<vmem>>, vector<16x256xf32>
    %98 = arith.index_cast %9 : i32 to index
    %c0_60 = arith.constant 0 : index
    %c0_61 = arith.constant 0 : index
    %99 = vector.load %arg7[%98, %c0_60, %c0_61] : memref<2x16x256xf32, #tpu.memory_space<vmem>>, vector<1x16x256xf32>
    %100 = vector.shape_cast %99 : vector<1x16x256xf32> to vector<16x256xf32>
    %101 = arith.addf %100, %97 : vector<16x256xf32>
    %c0_62 = arith.constant 0 : index
    %c0_63 = arith.constant 0 : index
    %102 = vector.load %arg4[%c0_62, %c0_63] : memref<1x256xf32, #tpu.memory_space<vmem>>, vector<1x256xf32>
    %c0_64 = arith.constant 0 : index
    %c0_65 = arith.constant 0 : index
    %103 = vector.load %arg5[%c0_64, %c0_65] : memref<1x256xf32, #tpu.memory_space<vmem>>, vector<1x256xf32>
    %cst = arith.constant dense<0.000000e+00> : vector<16xf32>
    %104 = vector.multi_reduction <add>, %101, %cst [1] : vector<16x256xf32> to vector<16xf32>
    %105 = vector.shape_cast %104 : vector<16xf32> to vector<16x1xf32>
    %cst_66 = arith.constant 2.560000e+02 : f32
    %106 = vector.broadcast %cst_66 : f32 to vector<16x1xf32>
    %107 = arith.divf %105, %106 : vector<16x1xf32>
    %108 = vector.broadcast %107 : vector<16x1xf32> to vector<16x256xf32>
    %109 = arith.subf %101, %108 : vector<16x256xf32>
    %110 = arith.mulf %109, %109 : vector<16x256xf32>
    %cst_67 = arith.constant dense<0.000000e+00> : vector<16xf32>
    %111 = vector.multi_reduction <add>, %110, %cst_67 [1] : vector<16x256xf32> to vector<16xf32>
    %112 = vector.shape_cast %111 : vector<16xf32> to vector<16x1xf32>
    %cst_68 = arith.constant 2.560000e+02 : f32
    %113 = vector.broadcast %cst_68 : f32 to vector<16x1xf32>
    %114 = arith.divf %112, %113 : vector<16x1xf32>
    %115 = vector.broadcast %107 : vector<16x1xf32> to vector<16x256xf32>
    %116 = arith.subf %101, %115 : vector<16x256xf32>
    %cst_69 = arith.constant 9.99999974E-6 : f32
    %117 = vector.broadcast %cst_69 : f32 to vector<16x1xf32>
    %118 = arith.addf %114, %117 : vector<16x1xf32>
    %119 = math.rsqrt %118 : vector<16x1xf32>
    %120 = vector.broadcast %119 : vector<16x1xf32> to vector<16x256xf32>
    %121 = arith.mulf %116, %120 : vector<16x256xf32>
    %122 = vector.broadcast %102 : vector<1x256xf32> to vector<16x256xf32>
    %123 = arith.mulf %121, %122 : vector<16x256xf32>
    %124 = vector.broadcast %103 : vector<1x256xf32> to vector<16x256xf32>
    %125 = arith.addf %123, %124 : vector<16x256xf32>
    %126 = arith.truncf %125 : vector<16x256xf32> to vector<16x256xbf16>
    %c0_70 = arith.constant 0 : index
    %c0_71 = arith.constant 0 : index
    %127 = vector.load %arg6[%c0_70, %c0_71] : memref<16x256xbf16, #tpu.memory_space<vmem>>, vector<16x256xbf16>
    tpu.vector_store %arg6[%c0_70, %c0_71], %126 {strides = array<i32>} : memref<16x256xbf16, #tpu.memory_space<vmem>>, vector<16x256xbf16>,
    return
  }
  func.func @transform_1(%arg0: i32, %arg1: memref<32xi32, #tpu.memory_space<smem>>) -> (i32, i32) {
    %c0_i32 = arith.constant 0 : i32
    %c0_i32_0 = arith.constant 0 : i32
    %c0_i32_1 = arith.constant 0 : i32
    return %c0_i32, %c0_i32_0 : i32, i32
  }
  func.func @transform_2(%arg0: i32, %arg1: memref<32xi32, #tpu.memory_space<smem>>) -> (i32, i32) {
    %c0_i32 = arith.constant 0 : i32
    %c0_i32_0 = arith.constant 0 : i32
    %c0_i32_1 = arith.constant 0 : i32
    return %c0_i32, %c0_i32_0 : i32, i32
  }
  func.func @transform_3(%arg0: i32, %arg1: memref<32xi32, #tpu.memory_space<smem>>) -> (i32, i32) {
    %c0_i32 = arith.constant 0 : i32
    %c0_i32_0 = arith.constant 0 : i32
    %c0_i32_1 = arith.constant 0 : i32
    return %c0_i32, %c0_i32_0 : i32, i32
  }
  func.func @transform_4(%arg0: i32, %arg1: memref<32xi32, #tpu.memory_space<smem>>) -> (i32, i32) {
    %c0_i32 = arith.constant 0 : i32
    %c0_i32_0 = arith.constant 0 : i32
    return %arg0, %c0_i32 : i32, i32
  }
}

</mosaic_0001>

<bundles_post_ra>
// kernel: tpu_custom_call.1
= control target key start
LH: loop header
LB: loop body
LE: loop exit
PB: predicated region body
PF: predicated region fallthrough
CT: control target
= control target key end

     0   :  { %s2205_s21 = smov [#allocation5]   ;;  %s3046_s0 = inlined_call_operand.hbm [shape: s32[32], index: 0, kind: input, shape index: {}]   ;;  %s3047_s1 = inlined_call_operand.hbm [shape: f32[512,256], index: 1, kind: input, shape index: {}]   ;;  %s3048_s2 = inlined_call_operand.hbm [shape: f32[64,256], index: 2, kind: input, shape index: {}]   ;;  %s3049_s3 = inlined_call_operand.vmem [shape: f32[1,256], index: 3, kind: input, shape index: {}]   ;;  %s3050_s4 = inlined_call_operand.hbm [shape: f32[1,256], index: 4, kind: input, shape index: {}]   ;;  %s3051_s5 = inlined_call_operand.hbm [shape: bf16[32,256], index: 5, kind: output, shape index: {}]  }
   0x1   :  { %3085 = sst [smem:[#allocation61_spill]] %s3048_s2  ;;  %s11_s20 = sshll.u32 %s3046_s0, 4  ;;  %s12_s20 = int_to_ptr.hbm [resolvable:$true] %s11_s20 }
   0x2   :  { %3086 = sst [smem:[#allocation62_spill]] %s3050_s4 }
   0x3   :  { %3087 = sst [smem:[#allocation63_spill]] %s3051_s5 }
   0x4   :  { %14 = dma.hbm_to_smem %s12_s20, 16, %s2205_s21, [#allocation4] }
   0x5   :  { %2173 = dma.done.wait [#allocation4], 16 }
   0x6   :  { %2174 = vsyncadd [#allocation4], 4294967280 }
   0x7   :  { %17 = sfence }
   0x8   :  { %18 = vsyncpa [#allocation7], 0 }
   0x9   :  { %19 = vsyncpa [#allocation10], 0 }
   0xa   :  { %20 = vsyncpa [#allocation8], 0 }
   0xb   :  { %22 = vsyncpa [#allocation8 + $0x1], 0  ;;  %s2267_s22 = smov 0   ;;  %s2269_s23 = smov 0  }
   0xc   :  { %s2271_s24 = smov 0   ;;  %s2273_s25 = smov 0  }
   0xd LB: > { %3088 = sst [smem:[#allocation49_spill]] %s2191_s22  ;;  %s2288_s0 = sadd.s32 4294967295, %s2203_s25   ;;  %s2203_s25 = sphi %s2273_s25, %s3149_s25   ;;  %s2199_s24 = sphi %s2271_s24, %s3152_s24   ;;  %s2195_s23 = sphi %s2269_s23, %s3151_s23   ;;  %s2191_s22 = sphi %s2267_s22, %s3150_s22  }
   0xe   : > { %3089 = sst [smem:[#allocation50_spill]] %s2195_s23  ;;  %s1105_s26 = sadd.s32 4294967294, %s2203_s25  }
   0xf   : > { %3090 = sst [smem:[#allocation51_spill]] %s2199_s24  ;;  %s2292_s27 = sadd.s32 1, %s2203_s25  }
  0x10   : > { %3091 = sst [smem:[#allocation52_spill]] %s2203_s25  ;;  %s98_s28 = sadd.s32 1, %s2199_s24 }
  0x11   : > { %3092 = sst [smem:[#allocation53_spill]] %s2292_s27  ;;  %s95_s29 = ssub.s32 %s2203_s25, %s2292_s27 }
  0x12   : > { %p108_p0 = scmp.ne.s32.totalorder %s2199_s24, %s2195_s23  ;;  %p96_p1 = scmp.eq.s32.totalorder %s95_s29, 0 }
  0x13   : > { %p109_p2 = scmp.eq.s32.totalorder %s2288_s0, 1  ;;  %p114_p3 = scmp.ne.s32.totalorder %s2195_s23, %s2191_s22 }
  0x14   : > { %p115_p4 = scmp.eq.s32.totalorder %s1105_s26, 1  ;;  %p1106_p7 = scmp.ge.s32.totalorder %s2203_s25, 1 }
  0x15   : > { %s2303_s30 = scalar_select %p96_p1, %s2199_s24, %s98_s28  }
  0x16   : > { %p2305_p5 = por %p109_p2, %p108_p0  ;;  %p2309_p6 = por %p115_p4, %p114_p3 }
  0x17   : > { %3093 = sst [smem:[#allocation54_spill]] %s2303_s30  ;;  %p122_p8 = scmp.lt.s32.totalorder %s2203_s25, 3 }
  0x18   : > { %s3094_s6 = scalar_select %p2305_p5, 1, 0 }
  0x19   : > { %s3096_s7 = scalar_select %p2309_p6, 1, 0 }
  0x1a   : > { %3095 = sst [smem:[#allocation55_spill]] %s3094_s6  ;;  %p1107_p9 = scmp.ne.s32.totalorder %s2288_s0, 0 }
  0x1b   : > { %3097 = sst [smem:[#allocation56_spill]] %s3096_s7  ;;  %p1218_p10 = scmp.eq.s32.totalorder %s2288_s0, 0 }
  0x1c   : > { %p2317_p11 = pnand %p1106_p7, %p122_p8  ;;  %s3099_s2 = sld [smem:[#allocation61_spill]] }
  0x1d   : > { %s2206_s12 = smov [#allocation6]   ;;  %s3100_s4 = sld [smem:[#allocation62_spill]] }
  0x1e   : > { %p1207_p12 = pneg %p2317_p11  ;;  %s135_s13 = sshll.u32 %s2206_s12, 4  ;;  %s136_s13 = int_to_ptr.vmem [resolvable:$true] %s135_s13 }
  0x1f   : > { %s2207_s17 = smov 256   ;;  %s2208_s18 = smov 16  }
  0x20   : > { %p1208_p13 = pnand %p1218_p10, %p1207_p12  ;;  %s2209_s19 = smov [#allocation9]  }
  0x21   : > { %s153_s20 = sshll.u32 %s2209_s19, 4  ;;  %166 = sbr.rel (%p2317_p11) target bundleno = 1007 (0x3ef), region = 32  ;;  %s154_s20 = int_to_ptr.vmem [resolvable:$true] %s153_s20 }
  0x22   : > { %s133_s11 = sshll.u32 %s3099_s2, 4  ;;  %s134_s11 = int_to_ptr.hbm [resolvable:$true] %s133_s11 }
  0x23   : > { %s151_s16 = sshll.u32 %s3100_s4, 4  ;;  %s152_s16 = int_to_ptr.hbm [resolvable:$true] %s151_s16 }
  0x24   : > { %1210 = dma.hbm_to_vmem [thread:$0]  (!%p1208_p13), %s134_s11, 512, %s136_s13, [#allocation7], %s2207_s17, %s2207_s17, %s2208_s18  }
  0x25   : > { %1213 = dma.hbm_to_vmem [thread:$0]  (!%p1208_p13), %s152_s16, 32, %s154_s20, [#allocation10]  }
  0x26   : > { %2176 = dma.done.wait (%p1218_p10), [#allocation7], 512  }
  0x27   : > { %2178 = vsyncadd (%p1218_p10), [#allocation7], 4294966784 }
  0x28   : > { %2180 = dma.done.wait (%p1218_p10), [#allocation10], 32  }
  0x29   : > { %2182 = vsyncadd (%p1218_p10), [#allocation10], 4294967264  ;;  %s3052_s21 = sand.u32 1, %s2195_s23   ;;  %p192_p0 = scmp.lt.s32.totalorder %s2288_s0, 0 }
  0x2a   : > { %s1112_s26 = sshll.u32 %s3052_s21, 4  ;;  %s193_s28 = ssub.s32 0, %s2288_s0 }
  0x2b   : > { %s1113_s29 = smin.u32 %s2288_s0, %s193_s28  ;;  %s2349_s11 = scalar_lea.vmem [#allocation11], %s1112_s26 }
  0x2c   : > { %s195_s8 = sand.u32 1, %s1113_s29  }
  0x2d   : > { %s196_s9 = ssub.s32 0, %s195_s8  ;;  %207 = sbr.rel (%p1107_p9) target bundleno = 292 (0x124), region = 44 }
  0x2e   : > { %s3154_s9 = smov (!%p192_p0, %s196_s9), %s195_s8 }
  0x2f   : > { %p1115_p1 = scmp.lt.s32.totalorder %s3154_s9, 0  ;;  %s202_s10 = sadd.s32 2, %s3154_s9 }
  0x31   : > { %s3156_s10 = smov (!%p1115_p1, %s202_s10), %s3154_s9 }
  0x32   : > { %s208_s12 = sld [smem:[#allocation5]]  ;;  %s2210_s13 = smov [#allocation2]  }
  0x33   : > { %s2353_s14 = sshll.u32 %s2210_s13, 4  ;;  %s2356_s15 = sld [smem:[#allocation5 + $0x1]] }
  0x34   : > { %3101 = sst [smem:[#allocation57_spill]] %s2353_s14  ;;  %s2211_s16 = smov [#allocation2 + $0x1]  }
  0x35   : > { %s2358_s17 = sshll.u32 %s2211_s16, 4  ;;  %s2360_s18 = sld [smem:[#allocation5 + $0x2]] }
  0x36   : > { %3102 = sst [smem:[#allocation58_spill]] %s2358_s17  ;;  %s2212_s28 = smov [#allocation2 + $0x2]  }
  0x37   : > { %s2363_s29 = sshll.u32 %s2212_s28, 4  ;;  %s2374_s28 = scalar_lea.hbm %s3047_s1, 1024 }
  0x38   : > { %s209_s19 = sshrl.u32 %s208_s12, 3  ;;  %s210_s20 = sand.u32 7, %s208_s12  }
  0x39   : > { %s1117_s26 = sshll.u32 %s209_s19, 4  ;;  %3103 = sst [smem:[#allocation59_spill]] %s2363_s29 }
  0x3a   : > { %s212_s8 = sadd.s32 %s1117_s26, %s210_s20  ;;  %s223_s14 = sshrl.u32 %s2356_s15, 3 }
  0x3b   : > { %s213_s21 = scalar_lea.hbm %s3047_s1, %s212_s8  ;;  %s224_s2 = sand.u32 7, %s2356_s15  }
  0x3c   : > { %s214_s16 = sshll.u32 %s213_s21, 4  ;;  %s1119_s4 = sshll.u32 %s223_s14, 4  ;;  %s215_s16 = int_to_ptr.hbm [resolvable:$true] %s214_s16 }
  0x3d   : > { %s1361_s30 = sshra.s32 %s215_s16, 4  ;;  %s1362_s30 = int_to_ptr.hbm [resolvable:$true] %s1361_s30 }
  0x3e   : > { %s1363_s17 = scalar_lea.hbm %s1362_s30, 2  ;;  %p1366_p3 = scmp.lt.s32.totalorder %s1362_s30, %s3047_s1 }
  0x3f   : > { %p1364_p2 = scmp.ne.s32.totalorder %s1362_s30, %s1363_s17  ;;  %p1367_p4 = scmp.lt.s32.totalorder %s2374_s28, %s1363_s17 }
  0x41   : > { %p1368_p7 = por %p1367_p4, %p1366_p3 }
  0x43   : > { %p1369_p8 = pnand %p1368_p7, %p1364_p2 }
  0x45   : > { %1372 = shalt.err (!%p1369_p8)  }
  0x46   : > { %s3064_s21 = smov 128   ;;  %s3104_s14 = sld [smem:[#allocation57_spill]] }
  0x47   : > { %s3066_s15 = smov 1   ;;  %s226_s9 = sadd.s32 %s1119_s4, %s224_s2 }
  0x48   : > { %s238_s13 = sshrl.u32 %s2360_s18, 3  ;;  %s227_s30 = scalar_lea.hbm %s3047_s1, %s226_s9 }
  0x49   : > { %s239_s17 = sand.u32 7, %s2360_s18   ;;  %s229_s20 = sshll.u32 %s227_s30, 4  ;;  %s230_s20 = int_to_ptr.hbm [resolvable:$true] %s229_s20 }
  0x4a   : > { %s1121_s26 = sshll.u32 %s238_s13, 4  ;;  %s1385_s24 = sshra.s32 %s230_s20, 4  ;;  %s1386_s24 = int_to_ptr.hbm [resolvable:$true] %s1385_s24 }
  0x4b   : > { %s241_s29 = sadd.s32 %s1121_s26, %s239_s17  ;;  %s1387_s27 = scalar_lea.hbm %s1386_s24, 2 }
  0x4c   : > { %s3105_s8 = int_to_ptr.vmem [resolvable:$true] %s3104_s14  ;;  %p1388_p9 = scmp.ne.s32.totalorder %s1386_s24, %s1387_s27 }
  0x4d   : > { %221 = dma.hbm_to_vmem [thread:$0]  %s215_s16, 32, %s3105_s8, [#allocation3], %s3064_s21, %s3064_s21, %s3066_s15 }
  0x4e   : > { %p1390_p10 = scmp.lt.s32.totalorder %s1386_s24, %s3047_s1  ;;  %p1391_p11 = scmp.lt.s32.totalorder %s2374_s28, %s1387_s27 }
  0x50   : > { %p1392_p12 = por %p1391_p11, %p1390_p10 }
  0x52   : > { %p1393_p13 = pnand %p1392_p12, %p1388_p9 }
  0x54   : > { %1396 = shalt.err (!%p1393_p13)  }
  0x55   : > { %s3106_s2 = sld [smem:[#allocation58_spill]]  ;;  %s242_s14 = scalar_lea.hbm %s3047_s1, %s241_s29 }
  0x56   : > { %s1122_s8 = sld [smem:[#allocation5 + $0x3]]  ;;  %s244_s9 = sshll.u32 %s242_s14, 4  ;;  %s245_s9 = int_to_ptr.hbm [resolvable:$true] %s244_s9 }
  0x57   : > { %s2215_s22 = smov [#allocation2 + $0x3]   ;;  %s1409_s27 = sshra.s32 %s245_s9, 4  ;;  %s1410_s27 = int_to_ptr.hbm [resolvable:$true] %s1409_s27 }
  0x58   : > { %s2402_s24 = sshll.u32 %s2215_s22, 4  ;;  %s1411_s7 = scalar_lea.hbm %s1410_s27, 2  ;;  %s262_s24 = int_to_ptr.vmem [resolvable:$true] %s2402_s24 }
  0x59   : > { %p1412_p0 = scmp.ne.s32.totalorder %s1410_s27, %s1411_s7  ;;  %p1414_p1 = scmp.lt.s32.totalorder %s1410_s27, %s3047_s1 }
  0x5a   : > { %p1415_p2 = scmp.lt.s32.totalorder %s2374_s28, %s1411_s7 }
  0x5b   : > { %s3107_s4 = int_to_ptr.vmem [resolvable:$true] %s3106_s2 }
  0x5c   : > { %236 = dma.hbm_to_vmem [thread:$0]  %s230_s20, 32, %s3107_s4, [#allocation3], %s3064_s21, %s3064_s21, %s3066_s15 }
  0x5d   : > { %p1416_p3 = por %p1415_p2, %p1414_p1 }
  0x5f   : > { %p1417_p4 = pnand %p1416_p3, %p1412_p0 }
  0x61   : > { %1420 = shalt.err (!%p1417_p4)  }
  0x62   : > { %s3108_s29 = sld [smem:[#allocation59_spill]]  ;;  %s253_s20 = sshrl.u32 %s1122_s8, 3 }
  0x63   : > { %s1124_s30 = sld [smem:[#allocation5 + $0x4]]  ;;  %s254_s26 = sand.u32 7, %s1122_s8  }
  0x64   : > { %s2414_s17 = sld [smem:[#allocation5 + $0x5]]  ;;  %s1123_s2 = sshll.u32 %s253_s20, 4 }
  0x65   : > { %s2216_s4 = smov [#allocation2 + $0x4]   ;;  %s256_s16 = sadd.s32 %s1123_s2, %s254_s26 }
  0x66   : > { %s2416_s18 = sshll.u32 %s2216_s4, 4  ;;  %s257_s27 = scalar_lea.hbm %s3047_s1, %s256_s16 }
  0x67   : > { %3110 = sst [smem:[#allocation57_spill]] %s2416_s18  ;;  %s259_s7 = sshll.u32 %s257_s27, 4  ;;  %s260_s7 = int_to_ptr.hbm [resolvable:$true] %s259_s7 }
  0x68   : > { %s3109_s19 = int_to_ptr.vmem [resolvable:$true] %s3108_s29  ;;  %s1433_s12 = sshra.s32 %s260_s7, 4  ;;  %s1434_s12 = int_to_ptr.hbm [resolvable:$true] %s1433_s12 }
  0x69   : > { %251 = dma.hbm_to_vmem [thread:$0]  %s245_s9, 32, %s3109_s19, [#allocation3], %s3064_s21, %s3064_s21, %s3066_s15 }
  0x6a   : > { %s268_s9 = sshrl.u32 %s1124_s30, 3  ;;  %s269_s13 = sand.u32 7, %s1124_s30  }
  0x6b   : > { %s1435_s29 = scalar_lea.hbm %s1434_s12, 2  ;;  %p1438_p8 = scmp.lt.s32.totalorder %s1434_s12, %s3047_s1 }
  0x6c   : > { %p1436_p7 = scmp.ne.s32.totalorder %s1434_s12, %s1435_s29  ;;  %p1439_p9 = scmp.lt.s32.totalorder %s2374_s28, %s1435_s29 }
  0x6e   : > { %p1440_p10 = por %p1439_p9, %p1438_p8 }
  0x70   : > { %p1441_p11 = pnand %p1440_p10, %p1436_p7 }
  0x72   : > { %1444 = shalt.err (!%p1441_p11)  }
  0x73   : > { %266 = dma.hbm_to_vmem [thread:$0]  %s260_s7, 32, %s262_s24, [#allocation3], %s3064_s21, %s3064_s21, %s3066_s15 }
  0x74   : > { %s1125_s30 = sshll.u32 %s268_s9, 4  ;;  %s283_s20 = sshrl.u32 %s2414_s17, 3 }
  0x75   : > { %s271_s26 = sadd.s32 %s1125_s30, %s269_s13  ;;  %s284_s2 = sand.u32 7, %s2414_s17  }
  0x76   : > { %s272_s14 = scalar_lea.hbm %s3047_s1, %s271_s26  ;;  %s1127_s22 = sshll.u32 %s283_s20, 4 }
  0x77   : > { %s274_s27 = sshll.u32 %s272_s14, 4  ;;  %s286_s12 = sadd.s32 %s1127_s22, %s284_s2  ;;  %s275_s27 = int_to_ptr.hbm [resolvable:$true] %s274_s27 }
  0x78   : > { %s287_s19 = scalar_lea.hbm %s3047_s1, %s286_s12  ;;  %s1457_s18 = sshra.s32 %s275_s27, 4  ;;  %s1458_s18 = int_to_ptr.hbm [resolvable:$true] %s1457_s18 }
  0x79   : > { %s1459_s24 = scalar_lea.hbm %s1458_s18, 2  ;;  %p1462_p13 = scmp.lt.s32.totalorder %s1458_s18, %s3047_s1 }
  0x7a   : > { %p1460_p12 = scmp.ne.s32.totalorder %s1458_s18, %s1459_s24  ;;  %p1463_p0 = scmp.lt.s32.totalorder %s2374_s28, %s1459_s24 }
  0x7c   : > { %p1464_p1 = por %p1463_p0, %p1462_p13 }
  0x7e   : > { %p1465_p2 = pnand %p1464_p1, %p1460_p12 }
  0x80   : > { %1468 = shalt.err (!%p1465_p2)  }
  0x81   : > { %s3111_s17 = sld [smem:[#allocation57_spill]]  ;;  %s289_s30 = sshll.u32 %s287_s19, 4  ;;  %s290_s30 = int_to_ptr.hbm [resolvable:$true] %s289_s30 }
  0x82   : > { %s2217_s20 = smov [#allocation2 + $0x5]   ;;  %s1481_s2 = sshra.s32 %s290_s30, 4  ;;  %s1482_s2 = int_to_ptr.hbm [resolvable:$true] %s1481_s2 }
  0x83   : > { %s291_s26 = sshll.u32 %s2217_s20, 4  ;;  %s1483_s4 = scalar_lea.hbm %s1482_s2, 2  ;;  %s292_s26 = int_to_ptr.vmem [resolvable:$true] %s291_s26 }
  0x84   : > { %p1484_p3 = scmp.ne.s32.totalorder %s1482_s2, %s1483_s4  ;;  %p1486_p4 = scmp.lt.s32.totalorder %s1482_s2, %s3047_s1 }
  0x85   : > { %p1487_p7 = scmp.lt.s32.totalorder %s2374_s28, %s1483_s4 }
  0x87   : > { %s3112_s13 = int_to_ptr.vmem [resolvable:$true] %s3111_s17  ;;  %p1488_p8 = por %p1487_p7, %p1486_p4 }
  0x88   : > { %281 = dma.hbm_to_vmem [thread:$0]  %s275_s27, 32, %s3112_s13, [#allocation3], %s3064_s21, %s3064_s21, %s3066_s15 }
  0x89   : > { %p1489_p9 = pnand %p1488_p8, %p1484_p3 }
  0x8b   : > { %1492 = shalt.err (!%p1489_p9)  }
  0x8c   : > { %296 = dma.hbm_to_vmem [thread:$0]  %s290_s30, 32, %s292_s26, [#allocation3], %s3064_s21, %s3064_s21, %s3066_s15 }
  0x8d   : > { %s1128_s14 = sld [smem:[#allocation5 + $0x6]]  ;;  %s2218_s22 = smov [#allocation2 + $0x6]  }
  0x8e   : > { %s2453_s27 = sshll.u32 %s2218_s22, 4  ;;  %s1130_s12 = sld [smem:[#allocation5 + $0x7]] }
  0x8f   : > { %3113 = sst [smem:[#allocation58_spill]] %s2453_s27  ;;  %s2219_s29 = smov [#allocation2 + $0x7]  }
  0x90   : > { %s2456_s8 = sshll.u32 %s2219_s29, 4  ;;  %s2458_s19 = sld [smem:[#allocation5 + $0x8]] }
  0x91   : > { %3114 = sst [smem:[#allocation59_spill]] %s2456_s8  ;;  %s2220_s24 = smov [#allocation2 + $0x10]  }
  0x92   : > { %s2461_s7 = sshll.u32 %s2220_s24, 4  ;;  %s2463_s9 = sld [smem:[#allocation5 + $0x9]]  ;;  %s337_s7 = int_to_ptr.vmem [resolvable:$true] %s2461_s7 }
  0x93   : > { %s298_s17 = sshrl.u32 %s1128_s14, 3  ;;  %s299_s13 = sand.u32 7, %s1128_s14  }
  0x94   : > { %s1129_s30 = sshll.u32 %s298_s17, 4  ;;  %s313_s20 = sshrl.u32 %s1130_s12, 3 }
  0x95   : > { %s301_s26 = sadd.s32 %s1129_s30, %s299_s13  ;;  %s314_s2 = sand.u32 7, %s1130_s12  }
  0x96   : > { %s302_s16 = scalar_lea.hbm %s3047_s1, %s301_s26  ;;  %s1131_s22 = sshll.u32 %s313_s20, 4 }
  0x97   : > { %s304_s29 = sshll.u32 %s302_s16, 4  ;;  %s316_s27 = sadd.s32 %s1131_s22, %s314_s2  ;;  %s305_s29 = int_to_ptr.hbm [resolvable:$true] %s304_s29 }
  0x98   : > { %s317_s21 = scalar_lea.hbm %s3047_s1, %s316_s27  ;;  %s1505_s15 = sshra.s32 %s305_s29, 4  ;;  %s1506_s15 = int_to_ptr.hbm [resolvable:$true] %s1505_s15 }
  0x99   : > { %s1507_s14 = scalar_lea.hbm %s1506_s15, 2  ;;  %p1510_p11 = scmp.lt.s32.totalorder %s1506_s15, %s3047_s1 }
  0x9a   : > { %p1508_p10 = scmp.ne.s32.totalorder %s1506_s15, %s1507_s14  ;;  %p1511_p12 = scmp.lt.s32.totalorder %s2374_s28, %s1507_s14 }
  0x9c   : > { %p1512_p13 = por %p1511_p12, %p1510_p11 }
  0x9e   : > { %p1513_p0 = pnand %p1512_p13, %p1508_p10 }
  0xa0   : > { %1516 = shalt.err (!%p1513_p0)  }
  0xa1   : > { %s3115_s12 = smov 1   ;;  %s3116_s13 = smov 128  }
  0xa2   : > { %s3117_s30 = sld [smem:[#allocation58_spill]]  ;;  %s319_s27 = sshll.u32 %s317_s21, 4  ;;  %s320_s27 = int_to_ptr.hbm [resolvable:$true] %s319_s27 }
  0xa3   : > { %s328_s8 = sshrl.u32 %s2458_s19, 3  ;;  %s329_s26 = sand.u32 7, %s2458_s19  }
  0xa4   : > { %s1529_s2 = sshra.s32 %s320_s27, 4  ;;  %s1530_s2 = int_to_ptr.hbm [resolvable:$true] %s1529_s2 }
  0xa5   : > { %s1531_s25 = scalar_lea.hbm %s1530_s2, 2  ;;  %p1534_p2 = scmp.lt.s32.totalorder %s1530_s2, %s3047_s1 }
  0xa6   : > { %p1532_p1 = scmp.ne.s32.totalorder %s1530_s2, %s1531_s25  ;;  %p1535_p3 = scmp.lt.s32.totalorder %s2374_s28, %s1531_s25 }
  0xa8   : > { %s3118_s20 = int_to_ptr.vmem [resolvable:$true] %s3117_s30  ;;  %p1536_p4 = por %p1535_p3, %p1534_p2 }
  0xa9   : > { %311 = dma.hbm_to_vmem [thread:$0]  %s305_s29, 32, %s3118_s20, [#allocation3], %s3116_s13, %s3116_s13, %s3115_s12 }
  0xaa   : > { %p1537_p7 = pnand %p1536_p4, %p1532_p1 }
  0xac   : > { %1540 = shalt.err (!%p1537_p7)  }
  0xad   : > { %s3119_s18 = sld [smem:[#allocation59_spill]]  ;;  %s1133_s19 = sshll.u32 %s328_s8, 4 }
  0xae   : > { %s331_s16 = sadd.s32 %s1133_s19, %s329_s26  ;;  %s343_s22 = sshrl.u32 %s2463_s9, 3 }
  0xaf   : > { %s332_s14 = scalar_lea.hbm %s3047_s1, %s331_s16  ;;  %s344_s17 = sand.u32 7, %s2463_s9  }
  0xb0   : > { %s334_s30 = sshll.u32 %s332_s14, 4  ;;  %s1135_s20 = sshll.u32 %s343_s22, 4  ;;  %s335_s30 = int_to_ptr.hbm [resolvable:$true] %s334_s30 }
  0xb1   : > { %s346_s2 = sadd.s32 %s1135_s20, %s344_s17  ;;  %s1553_s25 = sshra.s32 %s335_s30, 4  ;;  %s1554_s25 = int_to_ptr.hbm [resolvable:$true] %s1553_s25 }
  0xb2   : > { %s1555_s15 = scalar_lea.hbm %s1554_s25, 2  ;;  %p1558_p9 = scmp.lt.s32.totalorder %s1554_s25, %s3047_s1 }
  0xb3   : > { %s3120_s21 = int_to_ptr.vmem [resolvable:$true] %s3119_s18  ;;  %p1556_p8 = scmp.ne.s32.totalorder %s1554_s25, %s1555_s15 }
  0xb4   : > { %326 = dma.hbm_to_vmem [thread:$0]  %s320_s27, 32, %s3120_s21, [#allocation3], %s3116_s13, %s3116_s13, %s3115_s12 }
  0xb5   : > { %p1559_p10 = scmp.lt.s32.totalorder %s2374_s28, %s1555_s15 }
  0xb7   : > { %p1560_p11 = por %p1559_p10, %p1558_p9 }
  0xb9   : > { %p1561_p12 = pnand %p1560_p11, %p1556_p8 }
  0xbb   : > { %1564 = shalt.err (!%p1561_p12)  }
  0xbc   : > { %341 = dma.hbm_to_vmem [thread:$0]  %s335_s30, 32, %s337_s7, [#allocation3], %s3116_s13, %s3116_s13, %s3115_s12 }
  0xbd   : > { %s347_s26 = scalar_lea.hbm %s3047_s1, %s346_s2  ;;  %s2221_s21 = smov [#allocation2 + $0x11]  }
  0xbe   : > { %s349_s18 = sshll.u32 %s347_s26, 4  ;;  %s351_s19 = sshll.u32 %s2221_s21, 4  ;;  %s350_s18 = int_to_ptr.hbm [resolvable:$true] %s349_s18  ;;  %s352_s19 = int_to_ptr.vmem [resolvable:$true] %s351_s19 }
  0xbf   : > { %s1577_s16 = sshra.s32 %s350_s18, 4  ;;  %s1578_s16 = int_to_ptr.hbm [resolvable:$true] %s1577_s16 }
  0xc0   : > { %s1579_s22 = scalar_lea.hbm %s1578_s16, 2  ;;  %p1582_p0 = scmp.lt.s32.totalorder %s1578_s16, %s3047_s1 }
  0xc1   : > { %p1580_p13 = scmp.ne.s32.totalorder %s1578_s16, %s1579_s22  ;;  %p1583_p1 = scmp.lt.s32.totalorder %s2374_s28, %s1579_s22 }
  0xc3   : > { %p1584_p2 = por %p1583_p1, %p1582_p0 }
  0xc5   : > { %p1585_p3 = pnand %p1584_p2, %p1580_p13 }
  0xc7   : > { %1588 = shalt.err (!%p1585_p3)  }
  0xc8   : > { %356 = dma.hbm_to_vmem [thread:$0]  %s350_s18, 32, %s352_s19, [#allocation3], %s3116_s13, %s3116_s13, %s3115_s12 }
  0xc9   : > { %s1136_s7 = sld [smem:[#allocation5 + $0xa]]  ;;  %s2222_s14 = smov [#allocation2 + $0x12]  }
  0xca   : > { %s2514_s17 = sshll.u32 %s2222_s14, 4  ;;  %s1138_s30 = sld [smem:[#allocation5 + $0xb]] }
  0xcb   : > { %3121 = sst [smem:[#allocation57_spill]] %s2514_s17  ;;  %s2223_s20 = smov [#allocation2 + $0x13]  }
  0xcc   : > { %s2517_s2 = sshll.u32 %s2223_s20, 4  ;;  %s2519_s25 = sld [smem:[#allocation5 + $0xc]] }
  0xcd   : > { %3122 = sst [smem:[#allocation58_spill]] %s2517_s2  ;;  %s2224_s15 = smov [#allocation2 + $0x14]  }
  0xce   : > { %s2522_s4 = sshll.u32 %s2224_s15, 4  ;;  %s2524_s27 = sld [smem:[#allocation5 + $0xd]]  ;;  %s397_s4 = int_to_ptr.vmem [resolvable:$true] %s2522_s4 }
  0xcf   : > { %s358_s9 = sshrl.u32 %s1136_s7, 3  ;;  %s359_s8 = sand.u32 7, %s1136_s7  }
  0xd0   : > { %s1137_s26 = sshll.u32 %s358_s9, 4  ;;  %s373_s18 = sshrl.u32 %s1138_s30, 3 }
  0xd1   : > { %s361_s21 = sadd.s32 %s1137_s26, %s359_s8  ;;  %s374_s19 = sand.u32 7, %s1138_s30  }
  0xd2   : > { %s362_s29 = scalar_lea.hbm %s3047_s1, %s361_s21  ;;  %s1139_s24 = sshll.u32 %s373_s18, 4 }
  0xd3   : > { %s364_s14 = sshll.u32 %s362_s29, 4  ;;  %s376_s20 = sadd.s32 %s1139_s24, %s374_s19  ;;  %s365_s14 = int_to_ptr.hbm [resolvable:$true] %s364_s14 }
  0xd4   : > { %s377_s17 = scalar_lea.hbm %s3047_s1, %s376_s20  ;;  %s1601_s6 = sshra.s32 %s365_s14, 4  ;;  %s1602_s6 = int_to_ptr.hbm [resolvable:$true] %s1601_s6 }
  0xd5   : > { %s1603_s7 = scalar_lea.hbm %s1602_s6, 2  ;;  %p1606_p7 = scmp.lt.s32.totalorder %s1602_s6, %s3047_s1 }
  0xd6   : > { %p1604_p4 = scmp.ne.s32.totalorder %s1602_s6, %s1603_s7  ;;  %p1607_p8 = scmp.lt.s32.totalorder %s2374_s28, %s1603_s7 }
  0xd8   : > { %p1608_p9 = por %p1607_p8, %p1606_p7 }
  0xda   : > { %p1609_p10 = pnand %p1608_p9, %p1604_p4 }
  0xdc   : > { %1612 = shalt.err (!%p1609_p10)  }
  0xdd   : > { %s3123_s30 = sld [smem:[#allocation57_spill]]  ;;  %s379_s2 = sshll.u32 %s377_s17, 4  ;;  %s380_s2 = int_to_ptr.hbm [resolvable:$true] %s379_s2 }
  0xde   : > { %s388_s26 = sshrl.u32 %s2519_s25, 3  ;;  %s389_s18 = sand.u32 7, %s2519_s25  }
  0xdf   : > { %s1625_s21 = sshra.s32 %s380_s2, 4  ;;  %s1626_s21 = int_to_ptr.hbm [resolvable:$true] %s1625_s21 }
  0xe0   : > { %s1627_s5 = scalar_lea.hbm %s1626_s21, 2  ;;  %p1630_p12 = scmp.lt.s32.totalorder %s1626_s21, %s3047_s1 }
  0xe1   : > { %p1628_p11 = scmp.ne.s32.totalorder %s1626_s21, %s1627_s5  ;;  %p1631_p13 = scmp.lt.s32.totalorder %s2374_s28, %s1627_s5 }
  0xe3   : > { %s3124_s8 = int_to_ptr.vmem [resolvable:$true] %s3123_s30  ;;  %p1632_p0 = por %p1631_p13, %p1630_p12 }
  0xe4   : > { %371 = dma.hbm_to_vmem [thread:$0]  %s365_s14, 32, %s3124_s8, [#allocation3], %s3116_s13, %s3116_s13, %s3115_s12 }
  0xe5   : > { %p1633_p1 = pnand %p1632_p0, %p1628_p11 }
  0xe7   : > { %1636 = shalt.err (!%p1633_p1)  }
  0xe8   : > { %s3125_s16 = sld [smem:[#allocation58_spill]]  ;;  %s1141_s25 = sshll.u32 %s388_s26, 4 }
  0xe9   : > { %s391_s22 = sadd.s32 %s1141_s25, %s389_s18  ;;  %s403_s29 = sshrl.u32 %s2524_s27, 3 }
  0xea   : > { %s392_s20 = scalar_lea.hbm %s3047_s1, %s391_s22  ;;  %s404_s15 = sand.u32 7, %s2524_s27  }
  0xeb   : > { %s394_s7 = sshll.u32 %s392_s20, 4  ;;  %s1143_s9 = sshll.u32 %s403_s29, 4  ;;  %s395_s7 = int_to_ptr.hbm [resolvable:$true] %s394_s7 }
  0xec   : > { %s406_s30 = sadd.s32 %s1143_s9, %s404_s15  ;;  %s1649_s8 = sshra.s32 %s395_s7, 4  ;;  %s1650_s8 = int_to_ptr.hbm [resolvable:$true] %s1649_s8 }
  0xed   : > { %s1651_s21 = scalar_lea.hbm %s1650_s8, 2  ;;  %p1654_p3 = scmp.lt.s32.totalorder %s1650_s8, %s3047_s1 }
  0xee   : > { %s3126_s17 = int_to_ptr.vmem [resolvable:$true] %s3125_s16  ;;  %p1652_p2 = scmp.ne.s32.totalorder %s1650_s8, %s1651_s21 }
  0xef   : > { %386 = dma.hbm_to_vmem [thread:$0]  %s380_s2, 32, %s3126_s17, [#allocation3], %s3116_s13, %s3116_s13, %s3115_s12 }
  0xf0   : > { %p1655_p4 = scmp.lt.s32.totalorder %s2374_s28, %s1651_s21 }
  0xf2   : > { %p1656_p7 = por %p1655_p4, %p1654_p3 }
  0xf4   : > { %p1657_p8 = pnand %p1656_p7, %p1652_p2 }
  0xf6   : > { %1660 = shalt.err (!%p1657_p8)  }
  0xf7   : > { %401 = dma.hbm_to_vmem [thread:$0]  %s395_s7, 32, %s397_s4, [#allocation3], %s3116_s13, %s3116_s13, %s3115_s12 }
  0xf8   : > { %s407_s18 = scalar_lea.hbm %s3047_s1, %s406_s30  ;;  %s2225_s19 = smov [#allocation2 + $0x15]  }
  0xf9   : > { %s409_s6 = sshll.u32 %s407_s18, 4  ;;  %s411_s16 = sshll.u32 %s2225_s19, 4  ;;  %s410_s6 = int_to_ptr.hbm [resolvable:$true] %s409_s6  ;;  %s412_s16 = int_to_ptr.vmem [resolvable:$true] %s411_s16 }
  0xfa   : > { %s1673_s17 = sshra.s32 %s410_s6, 4  ;;  %s1674_s17 = int_to_ptr.hbm [resolvable:$true] %s1673_s17 }
  0xfb   : > { %s1675_s25 = scalar_lea.hbm %s1674_s17, 2  ;;  %p1678_p10 = scmp.lt.s32.totalorder %s1674_s17, %s3047_s1 }
  0xfc   : > { %p1676_p9 = scmp.ne.s32.totalorder %s1674_s17, %s1675_s25  ;;  %p1679_p11 = scmp.lt.s32.totalorder %s2374_s28, %s1675_s25 }
  0xfe   : > { %p1680_p12 = por %p1679_p11, %p1678_p10 }
 0x100   : > { %p1681_p13 = pnand %p1680_p12, %p1676_p9 }
 0x102   : > { %1684 = shalt.err (!%p1681_p13)  }
 0x103   : > { %416 = dma.hbm_to_vmem [thread:$0]  %s410_s6, 32, %s412_s16, [#allocation3], %s3116_s13, %s3116_s13, %s3115_s12 }
 0x104   : > { %s1144_s4 = sld [smem:[#allocation5 + $0xe]]  ;;  %s2226_s14 = smov [#allocation2 + $0x16]  }
 0x105   : > { %s1146_s24 = sld [smem:[#allocation5 + $0xf]]  ;;  %s2575_s20 = sshll.u32 %s2226_s14, 4  ;;  %s427_s20 = int_to_ptr.vmem [resolvable:$true] %s2575_s20 }
 0x106   : > { %s2227_s15 = smov [#allocation2 + $0x17]  }
 0x107   : > { %s2577_s7 = sshll.u32 %s2227_s15, 4  ;;  %s442_s7 = int_to_ptr.vmem [resolvable:$true] %s2577_s7 }
 0x10a   : > { %s418_s9 = sshrl.u32 %s1144_s4, 3  ;;  %s419_s30 = sand.u32 7, %s1144_s4  }
 0x10b   : > { %s1145_s8 = sshll.u32 %s418_s9, 4  ;;  %s433_s21 = sshrl.u32 %s1146_s24, 3 }
 0x10c   : > { %s421_s5 = sadd.s32 %s1145_s8, %s419_s30  ;;  %s434_s2 = sand.u32 7, %s1146_s24  }
 0x10d   : > { %s422_s18 = scalar_lea.hbm %s3047_s1, %s421_s5  ;;  %s1147_s6 = sshll.u32 %s433_s21, 4 }
 0x10e   : > { %s424_s19 = sshll.u32 %s422_s18, 4  ;;  %s436_s16 = sadd.s32 %s1147_s6, %s434_s2  ;;  %s425_s19 = int_to_ptr.hbm [resolvable:$true] %s424_s19 }
 0x10f   : > { %s437_s22 = scalar_lea.hbm %s3047_s1, %s436_s16  ;;  %s1697_s29 = sshra.s32 %s425_s19, 4  ;;  %s1698_s29 = int_to_ptr.hbm [resolvable:$true] %s1697_s29 }
 0x110   : > { %s1699_s4 = scalar_lea.hbm %s1698_s29, 2  ;;  %p1702_p1 = scmp.lt.s32.totalorder %s1698_s29, %s3047_s1 }
 0x111   : > { %p1700_p0 = scmp.ne.s32.totalorder %s1698_s29, %s1699_s4  ;;  %p1703_p2 = scmp.lt.s32.totalorder %s2374_s28, %s1699_s4 }
 0x113   : > { %p1704_p3 = por %p1703_p2, %p1702_p1 }
 0x115   : > { %p1705_p4 = pnand %p1704_p3, %p1700_p0 }
 0x117   : > { %1708 = shalt.err (!%p1705_p4)  }
 0x118   : > { %431 = dma.hbm_to_vmem [thread:$0]  %s425_s19, 32, %s427_s20, [#allocation3], %s3116_s13, %s3116_s13, %s3115_s12 }
 0x119   : > { %s439_s24 = sshll.u32 %s437_s22, 4  ;;  %s440_s24 = int_to_ptr.hbm [resolvable:$true] %s439_s24 }
 0x11a   : > { %s1721_s9 = sshra.s32 %s440_s24, 4  ;;  %s1722_s9 = int_to_ptr.hbm [resolvable:$true] %s1721_s9 }
 0x11b   : > { %s1723_s30 = scalar_lea.hbm %s1722_s9, 2  ;;  %p1726_p8 = scmp.lt.s32.totalorder %s1722_s9, %s3047_s1 }
 0x11c   : > { %p1724_p7 = scmp.ne.s32.totalorder %s1722_s9, %s1723_s30  ;;  %p1727_p9 = scmp.lt.s32.totalorder %s2374_s28, %s1723_s30 }
 0x11e   : > { %p1728_p10 = por %p1727_p9, %p1726_p8 }
 0x120   : > { %p1729_p11 = pnand %p1728_p10, %p1724_p7 }
 0x122   : > { %1732 = shalt.err (!%p1729_p11)  }
 0x123   : > { %446 = dma.hbm_to_vmem [thread:$0]  %s440_s24, 32, %s442_s7, [#allocation3], %s3116_s13, %s3116_s13, %s3115_s12 }
 0x124 PF: > { %s447_s20 = sadd.s32 1, %s2288_s0 }
 0x125   : > { %p1148_p12 = scmp.ge.s32.totalorder %s447_s20, 2 }
 0x127   : > { %451 = sbr.rel (%p1148_p12) target bundleno = 716 (0x2cc), region = 48 }
 0x12c   : > { %s452_s5 = ssub.s32 1, %s3156_s10  ;;  %s1192_s2 = sshll.u32 %s2288_s0, 4 }
 0x12d   : > { %s2606_s27 = sadd.s32 16, %s1192_s2  ;;  %s1151_s28 = sshll.u32 %s452_s5, 5 }
 0x12e   : > { %s454_s26 = sld [smem:[#allocation5 + %s2606_s27]]  ;;  %s2609_s18 = scalar_lea.vmem [#allocation2], %s1151_s28 }
 0x12f   : > { %s465_s12 = sshll.u32 %s2609_s18, 4  ;;  %s471_s13 = sadd.s32 1, %s2606_s27  ;;  %s2612_s12 = int_to_ptr.vmem [resolvable:$true] %s465_s12 }
 0x130   : > { %s2615_s7 = sld [smem:[#allocation5 + %s471_s13]]  ;;  %s976_s6 = scalar_lea.vmem %s2609_s18, 1 [#allocation2] }
 0x131   : > { %s2618_s19 = sshll.u32 %s976_s6, 4  ;;  %s488_s16 = sadd.s32 2, %s2606_s27 }
 0x132   : > { %3127 = sst [smem:[#allocation60_spill]] %s2618_s19  ;;  %s982_s9 = scalar_lea.vmem %s2609_s18, 2 [#allocation2] }
 0x133   : > { %s2622_s4 = sld [smem:[#allocation5 + %s488_s16]]  ;;  %s2633_s20 = scalar_lea.sflag [#allocation3], %s452_s5 }
 0x134   : > { %s455_s17 = sshrl.u32 %s454_s26, 3  ;;  %s456_s25 = sand.u32 7, %s454_s26  }
 0x135   : > { %s1150_s22 = sshll.u32 %s455_s17, 4  ;;  %s2640_s6 = scalar_lea.hbm %s3047_s1, 1024 }
 0x136   : > { %s458_s29 = sadd.s32 %s1150_s22, %s456_s25  ;;  %s473_s8 = sshrl.u32 %s2615_s7, 3 }
 0x137   : > { %s459_s24 = scalar_lea.hbm %s3047_s1, %s458_s29  ;;  %s474_s21 = sand.u32 7, %s2615_s7  }
 0x138   : > { %s2628_s30 = sshll.u32 %s459_s24, 4  ;;  %s464_s30 = int_to_ptr.hbm [resolvable:$true] %s2628_s30 }
 0x139   : > { %s1745_s2 = sshra.s32 %s464_s30, 4  ;;  %s1746_s2 = int_to_ptr.hbm [resolvable:$true] %s1745_s2 }
 0x13a   : > { %s1747_s28 = scalar_lea.hbm %s1746_s2, 2  ;;  %p1750_p0 = scmp.lt.s32.totalorder %s1746_s2, %s3047_s1 }
 0x13b   : > { %p1748_p13 = scmp.ne.s32.totalorder %s1746_s2, %s1747_s28  ;;  %p1751_p1 = scmp.lt.s32.totalorder %s2640_s6, %s1747_s28 }
 0x13d   : > { %p1752_p2 = por %p1751_p1, %p1750_p0 }
 0x13f   : > { %p1753_p3 = pnand %p1752_p2, %p1748_p13 }
 0x141   : > { %1756 = shalt.err (!%p1753_p3)  }
 0x142   : > { %s1757_s5 = sshra.s32 %s2612_s12, 4  ;;  %s2228_s22 = smov [#allocation2]   ;;  %s1758_s5 = int_to_ptr.vmem [resolvable:$true] %s1757_s5 }
 0x143   : > { %s1759_s25 = scalar_lea.vmem %s1758_s5, 2  ;;  %s2647_s29 = scalar_lea.vmem %s2228_s22, 64 }
 0x144   : > { %p1760_p4 = scmp.ne.s32.totalorder %s1758_s5, %s1759_s25  ;;  %p1762_p7 = scmp.lt.s32.totalorder %s1758_s5, [#allocation2] }
 0x145   : > { %p1763_p8 = scmp.lt.s32.totalorder %s2647_s29, %s1759_s25 }
 0x147   : > { %p1764_p9 = por %p1763_p8, %p1762_p7 }
 0x149   : > { %p1765_p10 = pnand %p1764_p9, %p1760_p4 }
 0x14b   : > { %1768 = shalt.err (!%p1765_p10)  }
 0x14c   : > { %s3077_s14 = smov 128   ;;  %s3079_s15 = smov 1  }
 0x14d   : > { %470 = dma.hbm_to_vmem [thread:$0]  %s464_s30, 32, %s2612_s12, %s2633_s20, %s3077_s14, %s3077_s14, %s3079_s15 }
 0x14e   : > { %s1152_s24 = sshll.u32 %s473_s8, 4  ;;  %s2661_s2 = sshll.u32 %s982_s9, 4  ;;  %s500_s2 = int_to_ptr.vmem [resolvable:$true] %s2661_s2 }
 0x14f   : > { %s476_s28 = sadd.s32 %s1152_s24, %s474_s21  ;;  %s490_s26 = sshrl.u32 %s2622_s4, 3 }
 0x150   : > { %s477_s17 = scalar_lea.hbm %s3047_s1, %s476_s28  ;;  %s491_s5 = sand.u32 7, %s2622_s4  }
 0x151   : > { %s480_s25 = sshll.u32 %s477_s17, 4  ;;  %s1154_s22 = sshll.u32 %s490_s26, 4  ;;  %s481_s25 = int_to_ptr.hbm [resolvable:$true] %s480_s25 }
 0x152   : > { %s493_s19 = sadd.s32 %s1154_s22, %s491_s5  ;;  %s1769_s23 = sshra.s32 %s481_s25, 4  ;;  %s1770_s23 = int_to_ptr.hbm [resolvable:$true] %s1769_s23 }
 0x153   : > { %s1771_s12 = scalar_lea.hbm %s1770_s23, 2  ;;  %p1774_p12 = scmp.lt.s32.totalorder %s1770_s23, %s3047_s1 }
 0x154   : > { %p1772_p11 = scmp.ne.s32.totalorder %s1770_s23, %s1771_s12  ;;  %p1775_p13 = scmp.lt.s32.totalorder %s2640_s6, %s1771_s12 }
 0x156   : > { %p1776_p0 = por %p1775_p13, %p1774_p12 }
 0x158   : > { %p1777_p1 = pnand %p1776_p0, %p1772_p11 }
 0x15a   : > { %1780 = shalt.err (!%p1777_p1)  }
 0x15b   : > { %s3128_s7 = sld [smem:[#allocation60_spill]] }
 0x161   : > { %s3129_s9 = int_to_ptr.vmem [resolvable:$true] %s3128_s7 }
 0x162   : > { %s1781_s4 = sshra.s32 %s3129_s9, 4  ;;  %s1782_s4 = int_to_ptr.vmem [resolvable:$true] %s1781_s4 }
 0x163   : > { %s1783_s21 = scalar_lea.vmem %s1782_s4, 2  ;;  %p1786_p3 = scmp.lt.s32.totalorder %s1782_s4, [#allocation2] }
 0x164   : > { %p1784_p2 = scmp.ne.s32.totalorder %s1782_s4, %s1783_s21  ;;  %p1787_p4 = scmp.lt.s32.totalorder %s2647_s29, %s1783_s21 }
 0x166   : > { %p1788_p7 = por %p1787_p4, %p1786_p3 }
 0x168   : > { %p1789_p8 = pnand %p1788_p7, %p1784_p2 }
 0x16a   : > { %1792 = shalt.err (!%p1789_p8)  }
 0x16b   : > { %s3130_s23 = smov %s3129_s9  ;;  %s494_s26 = scalar_lea.hbm %s3047_s1, %s493_s19 }
 0x16c   : > { %487 = dma.hbm_to_vmem [thread:$0]  %s481_s25, 32, %s3130_s23, %s2633_s20, %s3077_s14, %s3077_s14, %s3079_s15 }
 0x16d   : > { %s497_s13 = sshll.u32 %s494_s26, 4  ;;  %s505_s16 = sadd.s32 3, %s2606_s27  ;;  %s498_s13 = int_to_ptr.hbm [resolvable:$true] %s497_s13 }
 0x16e   : > { %s2688_s17 = sld [smem:[#allocation5 + %s505_s16]]  ;;  %s1793_s5 = sshra.s32 %s498_s13, 4  ;;  %s1794_s5 = int_to_ptr.hbm [resolvable:$true] %s1793_s5 }
 0x16f   : > { %s1795_s22 = scalar_lea.hbm %s1794_s5, 2  ;;  %p1798_p10 = scmp.lt.s32.totalorder %s1794_s5, %s3047_s1 }
 0x170   : > { %p1796_p9 = scmp.ne.s32.totalorder %s1794_s5, %s1795_s22  ;;  %p1799_p11 = scmp.lt.s32.totalorder %s2640_s6, %s1795_s22 }
 0x172   : > { %p1800_p12 = por %p1799_p11, %p1798_p10 }
 0x174   : > { %p1801_p13 = pnand %p1800_p12, %p1796_p9 }
 0x176   : > { %1804 = shalt.err (!%p1801_p13)  }
 0x177   : > { %s1805_s25 = sshra.s32 %s500_s2, 4  ;;  %s1806_s25 = int_to_ptr.vmem [resolvable:$true] %s1805_s25 }
 0x178   : > { %s1807_s19 = scalar_lea.vmem %s1806_s25, 2  ;;  %p1810_p1 = scmp.lt.s32.totalorder %s1806_s25, [#allocation2] }
 0x179   : > { %p1808_p0 = scmp.ne.s32.totalorder %s1806_s25, %s1807_s19  ;;  %p1811_p2 = scmp.lt.s32.totalorder %s2647_s29, %s1807_s19 }
 0x17b   : > { %p1812_p3 = por %p1811_p2, %p1810_p1 }
 0x17d   : > { %p1813_p4 = pnand %p1812_p3, %p1808_p0 }
 0x17f   : > { %1816 = shalt.err (!%p1813_p4)  }
 0x180   : > { %504 = dma.hbm_to_vmem [thread:$0]  %s498_s13, 32, %s500_s2, %s2633_s20, %s3077_s14, %s3077_s14, %s3079_s15 }
 0x181   : > { %s988_s8 = scalar_lea.vmem %s2609_s18, 3 [#allocation2]  ;;  %s522_s7 = sadd.s32 4, %s2606_s27 }
 0x182   : > { %s2701_s9 = sshll.u32 %s988_s8, 4  ;;  %s2703_s4 = sld [smem:[#allocation5 + %s522_s7]]  ;;  %s517_s9 = int_to_ptr.vmem [resolvable:$true] %s2701_s9 }
 0x183   : > { %s994_s21 = scalar_lea.vmem %s2609_s18, 4 [#allocation2]  ;;  %s539_s24 = sadd.s32 5, %s2606_s27 }
 0x184   : > { %s2707_s23 = sshll.u32 %s994_s21, 4  ;;  %s507_s28 = sshrl.u32 %s2688_s17, 3  ;;  %s534_s23 = int_to_ptr.vmem [resolvable:$true] %s2707_s23 }
 0x185   : > { %s508_s26 = sand.u32 7, %s2688_s17   ;;  %s1156_s16 = sshll.u32 %s507_s28, 4 }
 0x186   : > { %s510_s2 = sadd.s32 %s1156_s16, %s508_s26  ;;  %s2713_s13 = sld [smem:[#allocation5 + %s539_s24]] }
 0x187   : > { %s511_s12 = scalar_lea.hbm %s3047_s1, %s510_s2 }
 0x188   : > { %s524_s30 = sshrl.u32 %s2703_s4, 3  ;;  %s514_s25 = sshll.u32 %s511_s12, 4  ;;  %s515_s25 = int_to_ptr.hbm [resolvable:$true] %s514_s25 }
 0x189   : > { %s525_s19 = sand.u32 7, %s2703_s4   ;;  %s1158_s8 = sshll.u32 %s524_s30, 4 }
 0x18a   : > { %s1817_s7 = sshra.s32 %s515_s25, 4  ;;  %s1818_s7 = int_to_ptr.hbm [resolvable:$true] %s1817_s7 }
 0x18b   : > { %s1819_s21 = scalar_lea.hbm %s1818_s7, 2  ;;  %p1822_p8 = scmp.lt.s32.totalorder %s1818_s7, %s3047_s1 }
 0x18c   : > { %p1820_p7 = scmp.ne.s32.totalorder %s1818_s7, %s1819_s21  ;;  %p1823_p9 = scmp.lt.s32.totalorder %s2640_s6, %s1819_s21 }
 0x18e   : > { %p1824_p10 = por %p1823_p9, %p1822_p8 }
 0x190   : > { %p1825_p11 = pnand %p1824_p10, %p1820_p7 }
 0x192   : > { %1828 = shalt.err (!%p1825_p11)  }
 0x193   : > { %s1829_s24 = sshra.s32 %s517_s9, 4  ;;  %s1830_s24 = int_to_ptr.vmem [resolvable:$true] %s1829_s24 }
 0x194   : > { %s1831_s4 = scalar_lea.vmem %s1830_s24, 2  ;;  %p1834_p13 = scmp.lt.s32.totalorder %s1830_s24, [#allocation2] }
 0x195   : > { %p1832_p12 = scmp.ne.s32.totalorder %s1830_s24, %s1831_s4  ;;  %p1835_p0 = scmp.lt.s32.totalorder %s2647_s29, %s1831_s4 }
 0x197   : > { %p1836_p1 = por %p1835_p0, %p1834_p13 }
 0x199   : > { %p1837_p2 = pnand %p1836_p1, %p1832_p12 }
 0x19b   : > { %1840 = shalt.err (!%p1837_p2)  }
 0x19c   : > { %s3131_s28 = smov 128   ;;  %s527_s14 = sadd.s32 %s1158_s8, %s525_s19 }
 0x19d   : > { %521 = dma.hbm_to_vmem [thread:$0]  %s515_s25, 32, %s517_s9, %s2633_s20, %s3131_s28, %s3131_s28, %s3079_s15 }
 0x19e   : > { %s1000_s26 = scalar_lea.vmem %s2609_s18, 5 [#allocation2]  ;;  %s528_s5 = scalar_lea.hbm %s3047_s1, %s527_s14 }
 0x19f   : > { %s541_s22 = sshrl.u32 %s2713_s13, 3  ;;  %s531_s12 = sshll.u32 %s528_s5, 4  ;;  %s532_s12 = int_to_ptr.hbm [resolvable:$true] %s531_s12 }
 0x1a0   : > { %s542_s30 = sand.u32 7, %s2713_s13   ;;  %s1160_s7 = sshll.u32 %s541_s22, 4 }
 0x1a1   : > { %s1841_s21 = sshra.s32 %s532_s12, 4  ;;  %s1842_s21 = int_to_ptr.hbm [resolvable:$true] %s1841_s21 }
 0x1a2   : > { %s1843_s17 = scalar_lea.hbm %s1842_s21, 2  ;;  %p1846_p4 = scmp.lt.s32.totalorder %s1842_s21, %s3047_s1 }
 0x1a3   : > { %p1844_p3 = scmp.ne.s32.totalorder %s1842_s21, %s1843_s17  ;;  %p1847_p7 = scmp.lt.s32.totalorder %s2640_s6, %s1843_s17 }
 0x1a5   : > { %p1848_p8 = por %p1847_p7, %p1846_p4 }
 0x1a7   : > { %p1849_p9 = pnand %p1848_p8, %p1844_p3 }
 0x1a9   : > { %1852 = shalt.err (!%p1849_p9)  }
 0x1aa   : > { %s1853_s9 = sshra.s32 %s534_s23, 4  ;;  %s1854_s9 = int_to_ptr.vmem [resolvable:$true] %s1853_s9 }
 0x1ab   : > { %s1855_s13 = scalar_lea.vmem %s1854_s9, 2  ;;  %p1858_p11 = scmp.lt.s32.totalorder %s1854_s9, [#allocation2] }
 0x1ac   : > { %p1856_p10 = scmp.ne.s32.totalorder %s1854_s9, %s1855_s13  ;;  %p1859_p12 = scmp.lt.s32.totalorder %s2647_s29, %s1855_s13 }
 0x1ae   : > { %p1860_p13 = por %p1859_p12, %p1858_p11 }
 0x1b0   : > { %p1861_p0 = pnand %p1860_p13, %p1856_p10 }
 0x1b2   : > { %1864 = shalt.err (!%p1861_p0)  }
 0x1b3   : > { %538 = dma.hbm_to_vmem [thread:$0]  %s532_s12, 32, %s534_s23, %s2633_s20, %s3131_s28, %s3131_s28, %s3079_s15 }
 0x1b4   : > { %s544_s25 = sadd.s32 %s1160_s7, %s542_s30  ;;  %s2754_s19 = sshll.u32 %s1000_s26, 4  ;;  %s551_s19 = int_to_ptr.vmem [resolvable:$true] %s2754_s19 }
 0x1b5   : > { %s545_s16 = scalar_lea.hbm %s3047_s1, %s544_s25  ;;  %s556_s5 = sadd.s32 6, %s2606_s27 }
 0x1b6   : > { %s548_s2 = sshll.u32 %s545_s16, 4  ;;  %s2761_s22 = sld [smem:[#allocation5 + %s556_s5]]  ;;  %s549_s2 = int_to_ptr.hbm [resolvable:$true] %s548_s2 }
 0x1b7   : > { %s1865_s21 = sshra.s32 %s549_s2, 4  ;;  %s1866_s21 = int_to_ptr.hbm [resolvable:$true] %s1865_s21 }
 0x1b8   : > { %s1867_s17 = scalar_lea.hbm %s1866_s21, 2  ;;  %p1870_p2 = scmp.lt.s32.totalorder %s1866_s21, %s3047_s1 }
 0x1b9   : > { %p1868_p1 = scmp.ne.s32.totalorder %s1866_s21, %s1867_s17  ;;  %p1871_p3 = scmp.lt.s32.totalorder %s2640_s6, %s1867_s17 }
 0x1bb   : > { %p1872_p4 = por %p1871_p3, %p1870_p2 }
 0x1bd   : > { %p1873_p7 = pnand %p1872_p4, %p1868_p1 }
 0x1bf   : > { %1876 = shalt.err (!%p1873_p7)  }
 0x1c0   : > { %s1877_s26 = sshra.s32 %s551_s19, 4  ;;  %s1878_s26 = int_to_ptr.vmem [resolvable:$true] %s1877_s26 }
 0x1c1   : > { %s1879_s30 = scalar_lea.vmem %s1878_s26, 2  ;;  %p1882_p9 = scmp.lt.s32.totalorder %s1878_s26, [#allocation2] }
 0x1c2   : > { %p1880_p8 = scmp.ne.s32.totalorder %s1878_s26, %s1879_s30  ;;  %p1883_p10 = scmp.lt.s32.totalorder %s2647_s29, %s1879_s30 }
 0x1c4   : > { %p1884_p11 = por %p1883_p10, %p1882_p9 }
 0x1c6   : > { %p1885_p12 = pnand %p1884_p11, %p1880_p8 }
 0x1c8   : > { %1888 = shalt.err (!%p1885_p12)  }
 0x1c9   : > { %555 = dma.hbm_to_vmem [thread:$0]  %s549_s2, 32, %s551_s19, %s2633_s20, %s3131_s28, %s3131_s28, %s3079_s15 }
 0x1ca   : > { %s1006_s7 = scalar_lea.vmem %s2609_s18, 6 [#allocation2]  ;;  %s573_s24 = sadd.s32 7, %s2606_s27 }
 0x1cb   : > { %s2774_s4 = sshll.u32 %s1006_s7, 4  ;;  %s2776_s9 = sld [smem:[#allocation5 + %s573_s24]]  ;;  %s568_s4 = int_to_ptr.vmem [resolvable:$true] %s2774_s4 }
 0x1cc   : > { %s1012_s13 = scalar_lea.vmem %s2609_s18, 7 [#allocation2]  ;;  %s590_s8 = sadd.s32 8, %s2606_s27 }
 0x1cd   : > { %s2780_s25 = sshll.u32 %s1012_s13, 4  ;;  %s558_s14 = sshrl.u32 %s2761_s22, 3  ;;  %s585_s25 = int_to_ptr.vmem [resolvable:$true] %s2780_s25 }
 0x1ce   : > { %s559_s16 = sand.u32 7, %s2761_s22   ;;  %s1162_s5 = sshll.u32 %s558_s14, 4 }
 0x1cf   : > { %s561_s19 = sadd.s32 %s1162_s5, %s559_s16  ;;  %s2786_s2 = sld [smem:[#allocation5 + %s590_s8]] }
 0x1d0   : > { %s562_s23 = scalar_lea.hbm %s3047_s1, %s561_s19 }
 0x1d1   : > { %s575_s12 = sshrl.u32 %s2776_s9, 3  ;;  %s565_s26 = sshll.u32 %s562_s23, 4  ;;  %s566_s26 = int_to_ptr.hbm [resolvable:$true] %s565_s26 }
 0x1d2   : > { %s576_s30 = sand.u32 7, %s2776_s9   ;;  %s1164_s7 = sshll.u32 %s575_s12, 4 }
 0x1d3   : > { %s1889_s24 = sshra.s32 %s566_s26, 4  ;;  %s1890_s24 = int_to_ptr.hbm [resolvable:$true] %s1889_s24 }
 0x1d4   : > { %s1891_s13 = scalar_lea.hbm %s1890_s24, 2  ;;  %p1894_p0 = scmp.lt.s32.totalorder %s1890_s24, %s3047_s1 }
 0x1d5   : > { %p1892_p13 = scmp.ne.s32.totalorder %s1890_s24, %s1891_s13  ;;  %p1895_p1 = scmp.lt.s32.totalorder %s2640_s6, %s1891_s13 }
 0x1d7   : > { %p1896_p2 = por %p1895_p1, %p1894_p0 }
 0x1d9   : > { %p1897_p3 = pnand %p1896_p2, %p1892_p13 }
 0x1db   : > { %1900 = shalt.err (!%p1897_p3)  }
 0x1dc   : > { %s1901_s8 = sshra.s32 %s568_s4, 4  ;;  %s1902_s8 = int_to_ptr.vmem [resolvable:$true] %s1901_s8 }
 0x1dd   : > { %s1903_s9 = scalar_lea.vmem %s1902_s8, 2  ;;  %p1906_p7 = scmp.lt.s32.totalorder %s1902_s8, [#allocation2] }
 0x1de   : > { %p1904_p4 = scmp.ne.s32.totalorder %s1902_s8, %s1903_s9  ;;  %p1907_p8 = scmp.lt.s32.totalorder %s2647_s29, %s1903_s9 }
 0x1e0   : > { %p1908_p9 = por %p1907_p8, %p1906_p7 }
 0x1e2   : > { %p1909_p10 = pnand %p1908_p9, %p1904_p4 }
 0x1e4   : > { %1912 = shalt.err (!%p1909_p10)  }
 0x1e5   : > { %s3132_s14 = smov 1   ;;  %s578_s15 = sadd.s32 %s1164_s7, %s576_s30 }
 0x1e6   : > { %572 = dma.hbm_to_vmem [thread:$0]  %s566_s26, 32, %s568_s4, %s2633_s20, %s3131_s28, %s3131_s28, %s3132_s14 }
 0x1e7   : > { %s1018_s16 = scalar_lea.vmem %s2609_s18, 16 [#allocation2]  ;;  %s579_s21 = scalar_lea.hbm %s3047_s1, %s578_s15 }
 0x1e8   : > { %s592_s17 = sshrl.u32 %s2786_s2, 3  ;;  %s582_s23 = sshll.u32 %s579_s21, 4  ;;  %s583_s23 = int_to_ptr.hbm [resolvable:$true] %s582_s23 }
 0x1e9   : > { %s593_s12 = sand.u32 7, %s2786_s2   ;;  %s1166_s24 = sshll.u32 %s592_s17, 4 }
 0x1ea   : > { %s1913_s13 = sshra.s32 %s583_s23, 4  ;;  %s1914_s13 = int_to_ptr.hbm [resolvable:$true] %s1913_s13 }
 0x1eb   : > { %s1915_s22 = scalar_lea.hbm %s1914_s13, 2  ;;  %p1918_p12 = scmp.lt.s32.totalorder %s1914_s13, %s3047_s1 }
 0x1ec   : > { %p1916_p11 = scmp.ne.s32.totalorder %s1914_s13, %s1915_s22  ;;  %p1919_p13 = scmp.lt.s32.totalorder %s2640_s6, %s1915_s22 }
 0x1ee   : > { %p1920_p0 = por %p1919_p13, %p1918_p12 }
 0x1f0   : > { %p1921_p1 = pnand %p1920_p0, %p1916_p11 }
 0x1f2   : > { %1924 = shalt.err (!%p1921_p1)  }
 0x1f3   : > { %s1925_s4 = sshra.s32 %s585_s25, 4  ;;  %s1926_s4 = int_to_ptr.vmem [resolvable:$true] %s1925_s4 }
 0x1f4   : > { %s1927_s2 = scalar_lea.vmem %s1926_s4, 2  ;;  %p1930_p3 = scmp.lt.s32.totalorder %s1926_s4, [#allocation2] }
 0x1f5   : > { %p1928_p2 = scmp.ne.s32.totalorder %s1926_s4, %s1927_s2  ;;  %p1931_p4 = scmp.lt.s32.totalorder %s2647_s29, %s1927_s2 }
 0x1f7   : > { %p1932_p7 = por %p1931_p4, %p1930_p3 }
 0x1f9   : > { %p1933_p8 = pnand %p1932_p7, %p1928_p2 }
 0x1fb   : > { %1936 = shalt.err (!%p1933_p8)  }
 0x1fc   : > { %589 = dma.hbm_to_vmem [thread:$0]  %s583_s23, 32, %s585_s25, %s2633_s20, %s3131_s28, %s3131_s28, %s3132_s14 }
 0x1fd   : > { %s595_s26 = sadd.s32 %s1166_s24, %s593_s12  ;;  %s2827_s30 = sshll.u32 %s1018_s16, 4  ;;  %s602_s30 = int_to_ptr.vmem [resolvable:$true] %s2827_s30 }
 0x1fe   : > { %s596_s5 = scalar_lea.hbm %s3047_s1, %s595_s26  ;;  %s607_s21 = sadd.s32 9, %s2606_s27 }
 0x1ff   : > { %s599_s19 = sshll.u32 %s596_s5, 4  ;;  %s2834_s17 = sld [smem:[#allocation5 + %s607_s21]]  ;;  %s600_s19 = int_to_ptr.hbm [resolvable:$true] %s599_s19 }
 0x200   : > { %s1937_s13 = sshra.s32 %s600_s19, 4  ;;  %s1938_s13 = int_to_ptr.hbm [resolvable:$true] %s1937_s13 }
 0x201   : > { %s1939_s22 = scalar_lea.hbm %s1938_s13, 2  ;;  %p1942_p10 = scmp.lt.s32.totalorder %s1938_s13, %s3047_s1 }
 0x202   : > { %p1940_p9 = scmp.ne.s32.totalorder %s1938_s13, %s1939_s22  ;;  %p1943_p11 = scmp.lt.s32.totalorder %s2640_s6, %s1939_s22 }
 0x204   : > { %p1944_p12 = por %p1943_p11, %p1942_p10 }
 0x206   : > { %p1945_p13 = pnand %p1944_p12, %p1940_p9 }
 0x208   : > { %1948 = shalt.err (!%p1945_p13)  }
 0x209   : > { %s1949_s16 = sshra.s32 %s602_s30, 4  ;;  %s1950_s16 = int_to_ptr.vmem [resolvable:$true] %s1949_s16 }
 0x20a   : > { %s1951_s12 = scalar_lea.vmem %s1950_s16, 2  ;;  %p1954_p1 = scmp.lt.s32.totalorder %s1950_s16, [#allocation2] }
 0x20b   : > { %p1952_p0 = scmp.ne.s32.totalorder %s1950_s16, %s1951_s12  ;;  %p1955_p2 = scmp.lt.s32.totalorder %s2647_s29, %s1951_s12 }
 0x20d   : > { %p1956_p3 = por %p1955_p2, %p1954_p1 }
 0x20f   : > { %p1957_p4 = pnand %p1956_p3, %p1952_p0 }
 0x211   : > { %1960 = shalt.err (!%p1957_p4)  }
 0x212   : > { %606 = dma.hbm_to_vmem [thread:$0]  %s600_s19, 32, %s602_s30, %s2633_s20, %s3131_s28, %s3131_s28, %s3132_s14 }
 0x213   : > { %s1024_s24 = scalar_lea.vmem %s2609_s18, 17 [#allocation2]  ;;  %s624_s8 = sadd.s32 10, %s2606_s27 }
 0x214   : > { %s2847_s9 = sshll.u32 %s1024_s24, 4  ;;  %s2849_s4 = sld [smem:[#allocation5 + %s624_s8]] }
 0x215   : > { %3133 = sst [smem:[#allocation60_spill]] %s2847_s9  ;;  %s1030_s2 = scalar_lea.vmem %s2609_s18, 18 [#allocation2] }
 0x216   : > { %s2853_s26 = sshll.u32 %s1030_s2, 4  ;;  %s641_s7 = sadd.s32 11, %s2606_s27  ;;  %s636_s26 = int_to_ptr.vmem [resolvable:$true] %s2853_s26 }
 0x217   : > { %s609_s15 = sshrl.u32 %s2834_s17, 3  ;;  %s610_s5 = sand.u32 7, %s2834_s17  }
 0x218   : > { %s1168_s21 = sshll.u32 %s609_s15, 4  ;;  %s2859_s19 = sld [smem:[#allocation5 + %s641_s7]] }
 0x219   : > { %s612_s30 = sadd.s32 %s1168_s21, %s610_s5 }
 0x21a   : > { %s613_s25 = scalar_lea.hbm %s3047_s1, %s612_s30  ;;  %s626_s23 = sshrl.u32 %s2849_s4, 3 }
 0x21b   : > { %s616_s16 = sshll.u32 %s613_s25, 4  ;;  %s627_s12 = sand.u32 7, %s2849_s4   ;;  %s617_s16 = int_to_ptr.hbm [resolvable:$true] %s616_s16 }
 0x21c   : > { %s1170_s24 = sshll.u32 %s626_s23, 4  ;;  %s1961_s8 = sshra.s32 %s617_s16, 4  ;;  %s1962_s8 = int_to_ptr.hbm [resolvable:$true] %s1961_s8 }
 0x21d   : > { %s1963_s2 = scalar_lea.hbm %s1962_s8, 2  ;;  %p1966_p8 = scmp.lt.s32.totalorder %s1962_s8, %s3047_s1 }
 0x21e   : > { %p1964_p7 = scmp.ne.s32.totalorder %s1962_s8, %s1963_s2  ;;  %p1967_p9 = scmp.lt.s32.totalorder %s2640_s6, %s1963_s2 }
 0x220   : > { %p1968_p10 = por %p1967_p9, %p1966_p8 }
 0x222   : > { %p1969_p11 = pnand %p1968_p10, %p1964_p7 }
 0x224   : > { %1972 = shalt.err (!%p1969_p11)  }
 0x225   : > { %s3134_s7 = sld [smem:[#allocation60_spill]] }
 0x22b   : > { %s3135_s15 = int_to_ptr.vmem [resolvable:$true] %s3134_s7 }
 0x22c   : > { %s1973_s5 = sshra.s32 %s3135_s15, 4  ;;  %s1974_s5 = int_to_ptr.vmem [resolvable:$true] %s1973_s5 }
 0x22d   : > { %s1975_s4 = scalar_lea.vmem %s1974_s5, 2  ;;  %p1978_p13 = scmp.lt.s32.totalorder %s1974_s5, [#allocation2] }
 0x22e   : > { %p1976_p12 = scmp.ne.s32.totalorder %s1974_s5, %s1975_s4  ;;  %p1979_p0 = scmp.lt.s32.totalorder %s2647_s29, %s1975_s4 }
 0x230   : > { %p1980_p1 = por %p1979_p0, %p1978_p13 }
 0x232   : > { %p1981_p2 = pnand %p1980_p1, %p1976_p12 }
 0x234   : > { %1984 = shalt.err (!%p1981_p2)  }
 0x235   : > { %s3136_s9 = smov %s3135_s15  ;;  %s629_s21 = sadd.s32 %s1170_s24, %s627_s12 }
 0x236   : > { %623 = dma.hbm_to_vmem [thread:$0]  %s617_s16, 32, %s3136_s9, %s2633_s20, %s3131_s28, %s3131_s28, %s3132_s14 }
 0x237   : > { %s1036_s30 = scalar_lea.vmem %s2609_s18, 19 [#allocation2]  ;;  %s630_s25 = scalar_lea.hbm %s3047_s1, %s629_s21 }
 0x238   : > { %s643_s23 = sshrl.u32 %s2859_s19, 3  ;;  %s633_s8 = sshll.u32 %s630_s25, 4  ;;  %s634_s8 = int_to_ptr.hbm [resolvable:$true] %s633_s8 }
 0x239   : > { %s644_s2 = sand.u32 7, %s2859_s19   ;;  %s1172_s17 = sshll.u32 %s643_s23, 4 }
 0x23a   : > { %s1985_s15 = sshra.s32 %s634_s8, 4  ;;  %s1986_s15 = int_to_ptr.hbm [resolvable:$true] %s1985_s15 }
 0x23b   : > { %s1987_s5 = scalar_lea.hbm %s1986_s15, 2  ;;  %p1990_p4 = scmp.lt.s32.totalorder %s1986_s15, %s3047_s1 }
 0x23c   : > { %p1988_p3 = scmp.ne.s32.totalorder %s1986_s15, %s1987_s5  ;;  %p1991_p7 = scmp.lt.s32.totalorder %s2640_s6, %s1987_s5 }
 0x23e   : > { %p1992_p8 = por %p1991_p7, %p1990_p4 }
 0x240   : > { %p1993_p9 = pnand %p1992_p8, %p1988_p3 }
 0x242   : > { %1996 = shalt.err (!%p1993_p9)  }
 0x243   : > { %s1997_s16 = sshra.s32 %s636_s26, 4  ;;  %s1998_s16 = int_to_ptr.vmem [resolvable:$true] %s1997_s16 }
 0x244   : > { %s1999_s19 = scalar_lea.vmem %s1998_s16, 2  ;;  %p2002_p11 = scmp.lt.s32.totalorder %s1998_s16, [#allocation2] }
 0x245   : > { %p2000_p10 = scmp.ne.s32.totalorder %s1998_s16, %s1999_s19  ;;  %p2003_p12 = scmp.lt.s32.totalorder %s2647_s29, %s1999_s19 }
 0x247   : > { %p2004_p13 = por %p2003_p12, %p2002_p11 }
 0x249   : > { %p2005_p0 = pnand %p2004_p13, %p2000_p10 }
 0x24b   : > { %2008 = shalt.err (!%p2005_p0)  }
 0x24c   : > { %640 = dma.hbm_to_vmem [thread:$0]  %s634_s8, 32, %s636_s26, %s2633_s20, %s3131_s28, %s3131_s28, %s3132_s14 }
 0x24d   : > { %s646_s12 = sadd.s32 %s1172_s17, %s644_s2  ;;  %s2900_s24 = sshll.u32 %s1036_s30, 4  ;;  %s653_s24 = int_to_ptr.vmem [resolvable:$true] %s2900_s24 }
 0x24e   : > { %s647_s13 = scalar_lea.hbm %s3047_s1, %s646_s12  ;;  %s658_s25 = sadd.s32 12, %s2606_s27 }
 0x24f   : > { %s650_s22 = sshll.u32 %s647_s13, 4  ;;  %s2907_s23 = sld [smem:[#allocation5 + %s658_s25]]  ;;  %s651_s22 = int_to_ptr.hbm [resolvable:$true] %s650_s22 }
 0x250   : > { %s2009_s15 = sshra.s32 %s651_s22, 4  ;;  %s2010_s15 = int_to_ptr.hbm [resolvable:$true] %s2009_s15 }
 0x251   : > { %s2011_s5 = scalar_lea.hbm %s2010_s15, 2  ;;  %p2014_p2 = scmp.lt.s32.totalorder %s2010_s15, %s3047_s1 }
 0x252   : > { %p2012_p1 = scmp.ne.s32.totalorder %s2010_s15, %s2011_s5  ;;  %p2015_p3 = scmp.lt.s32.totalorder %s2640_s6, %s2011_s5 }
 0x254   : > { %p2016_p4 = por %p2015_p3, %p2014_p2 }
 0x256   : > { %p2017_p7 = pnand %p2016_p4, %p2012_p1 }
 0x258   : > { %2020 = shalt.err (!%p2017_p7)  }
 0x259   : > { %s2021_s30 = sshra.s32 %s653_s24, 4  ;;  %s2022_s30 = int_to_ptr.vmem [resolvable:$true] %s2021_s30 }
 0x25a   : > { %s2023_s2 = scalar_lea.vmem %s2022_s30, 2  ;;  %p2026_p9 = scmp.lt.s32.totalorder %s2022_s30, [#allocation2] }
 0x25b   : > { %p2024_p8 = scmp.ne.s32.totalorder %s2022_s30, %s2023_s2  ;;  %p2027_p10 = scmp.lt.s32.totalorder %s2647_s29, %s2023_s2 }
 0x25d   : > { %p2028_p11 = por %p2027_p10, %p2026_p9 }
 0x25f   : > { %p2029_p12 = pnand %p2028_p11, %p2024_p8 }
 0x261   : > { %2032 = shalt.err (!%p2029_p12)  }
 0x262   : > { %657 = dma.hbm_to_vmem [thread:$0]  %s651_s22, 32, %s653_s24, %s2633_s20, %s3131_s28, %s3131_s28, %s3132_s14 }
 0x263   : > { %s1042_s17 = scalar_lea.vmem %s2609_s18, 20 [#allocation2]  ;;  %s675_s7 = sadd.s32 13, %s2606_s27 }
 0x264   : > { %s2920_s4 = sshll.u32 %s1042_s17, 4  ;;  %s2922_s16 = sld [smem:[#allocation5 + %s675_s7]] }
 0x265   : > { %3137 = sst [smem:[#allocation60_spill]] %s2920_s4  ;;  %s1048_s19 = scalar_lea.vmem %s2609_s18, 21 [#allocation2] }
 0x266   : > { %s2926_s12 = sshll.u32 %s1048_s19, 4  ;;  %s692_s9 = sadd.s32 14, %s2606_s27  ;;  %s687_s12 = int_to_ptr.vmem [resolvable:$true] %s2926_s12 }
 0x267   : > { %s660_s21 = sshrl.u32 %s2907_s23, 3  ;;  %s661_s13 = sand.u32 7, %s2907_s23  }
 0x268   : > { %s1174_s25 = sshll.u32 %s660_s21, 4  ;;  %s2932_s22 = sld [smem:[#allocation5 + %s692_s9]] }
 0x269   : > { %s663_s24 = sadd.s32 %s1174_s25, %s661_s13 }
 0x26a   : > { %s664_s26 = scalar_lea.hbm %s3047_s1, %s663_s24  ;;  %s677_s8 = sshrl.u32 %s2922_s16, 3 }
 0x26b   : > { %s667_s30 = sshll.u32 %s664_s26, 4  ;;  %s678_s2 = sand.u32 7, %s2922_s16   ;;  %s668_s30 = int_to_ptr.hbm [resolvable:$true] %s667_s30 }
 0x26c   : > { %s1176_s17 = sshll.u32 %s677_s8, 4  ;;  %s2033_s7 = sshra.s32 %s668_s30, 4  ;;  %s2034_s7 = int_to_ptr.hbm [resolvable:$true] %s2033_s7 }
 0x26d   : > { %s2035_s19 = scalar_lea.hbm %s2034_s7, 2  ;;  %p2038_p0 = scmp.lt.s32.totalorder %s2034_s7, %s3047_s1 }
 0x26e   : > { %p2036_p13 = scmp.ne.s32.totalorder %s2034_s7, %s2035_s19  ;;  %p2039_p1 = scmp.lt.s32.totalorder %s2640_s6, %s2035_s19 }
 0x270   : > { %p2040_p2 = por %p2039_p1, %p2038_p0 }
 0x272   : > { %p2041_p3 = pnand %p2040_p2, %p2036_p13 }
 0x274   : > { %2044 = shalt.err (!%p2041_p3)  }
 0x275   : > { %s3138_s9 = sld [smem:[#allocation60_spill]] }
 0x27b   : > { %s3139_s21 = int_to_ptr.vmem [resolvable:$true] %s3138_s9 }
 0x27c   : > { %s2045_s13 = sshra.s32 %s3139_s21, 4  ;;  %s2046_s13 = int_to_ptr.vmem [resolvable:$true] %s2045_s13 }
 0x27d   : > { %s2047_s16 = scalar_lea.vmem %s2046_s13, 2  ;;  %p2050_p7 = scmp.lt.s32.totalorder %s2046_s13, [#allocation2] }
 0x27e   : > { %p2048_p4 = scmp.ne.s32.totalorder %s2046_s13, %s2047_s16  ;;  %p2051_p8 = scmp.lt.s32.totalorder %s2647_s29, %s2047_s16 }
 0x280   : > { %p2052_p9 = por %p2051_p8, %p2050_p7 }
 0x282   : > { %p2053_p10 = pnand %p2052_p9, %p2048_p4 }
 0x284   : > { %2056 = shalt.err (!%p2053_p10)  }
 0x285   : > { %s3140_s4 = smov %s3139_s21  ;;  %s680_s25 = sadd.s32 %s1176_s17, %s678_s2 }
 0x286   : > { %674 = dma.hbm_to_vmem [thread:$0]  %s668_s30, 32, %s3140_s4, %s2633_s20, %s3131_s28, %s3131_s28, %s3132_s14 }
 0x287   : > { %s1054_s24 = scalar_lea.vmem %s2609_s18, 22 [#allocation2]  ;;  %s681_s26 = scalar_lea.hbm %s3047_s1, %s680_s25 }
 0x288   : > { %s694_s8 = sshrl.u32 %s2932_s22, 3  ;;  %s684_s7 = sshll.u32 %s681_s26, 4  ;;  %s685_s7 = int_to_ptr.hbm [resolvable:$true] %s684_s7 }
 0x289   : > { %s695_s19 = sand.u32 7, %s2932_s22   ;;  %s1178_s23 = sshll.u32 %s694_s8, 4 }
 0x28a   : > { %s2057_s21 = sshra.s32 %s685_s7, 4  ;;  %s2058_s21 = int_to_ptr.hbm [resolvable:$true] %s2057_s21 }
 0x28b   : > { %s2059_s13 = scalar_lea.hbm %s2058_s21, 2  ;;  %p2062_p12 = scmp.lt.s32.totalorder %s2058_s21, %s3047_s1 }
 0x28c   : > { %p2060_p11 = scmp.ne.s32.totalorder %s2058_s21, %s2059_s13  ;;  %p2063_p13 = scmp.lt.s32.totalorder %s2640_s6, %s2059_s13 }
 0x28e   : > { %p2064_p0 = por %p2063_p13, %p2062_p12 }
 0x290   : > { %p2065_p1 = pnand %p2064_p0, %p2060_p11 }
 0x292   : > { %2068 = shalt.err (!%p2065_p1)  }
 0x293   : > { %s2069_s30 = sshra.s32 %s687_s12, 4  ;;  %s2070_s30 = int_to_ptr.vmem [resolvable:$true] %s2069_s30 }
 0x294   : > { %s2071_s22 = scalar_lea.vmem %s2070_s30, 2  ;;  %p2074_p3 = scmp.lt.s32.totalorder %s2070_s30, [#allocation2] }
 0x295   : > { %p2072_p2 = scmp.ne.s32.totalorder %s2070_s30, %s2071_s22  ;;  %p2075_p4 = scmp.lt.s32.totalorder %s2647_s29, %s2071_s22 }
 0x297   : > { %p2076_p7 = por %p2075_p4, %p2074_p3 }
 0x299   : > { %p2077_p8 = pnand %p2076_p7, %p2072_p2 }
 0x29b   : > { %2080 = shalt.err (!%p2077_p8)  }
 0x29c   : > { %691 = dma.hbm_to_vmem [thread:$0]  %s685_s7, 32, %s687_s12, %s2633_s20, %s3131_s28, %s3131_s28, %s3132_s14 }
 0x29d   : > { %s697_s2 = sadd.s32 %s1178_s23, %s695_s19  ;;  %s2973_s17 = sshll.u32 %s1054_s24, 4  ;;  %s704_s17 = int_to_ptr.vmem [resolvable:$true] %s2973_s17 }
 0x29e   : > { %s698_s15 = scalar_lea.hbm %s3047_s1, %s697_s2  ;;  %s709_s26 = sadd.s32 15, %s2606_s27 }
 0x29f   : > { %s701_s5 = sshll.u32 %s698_s15, 4  ;;  %s710_s8 = sld [smem:[#allocation5 + %s709_s26]]  ;;  %s702_s5 = int_to_ptr.hbm [resolvable:$true] %s701_s5 }
 0x2a0   : > { %s2081_s21 = sshra.s32 %s702_s5, 4  ;;  %s2082_s21 = int_to_ptr.hbm [resolvable:$true] %s2081_s21 }
 0x2a1   : > { %s2083_s13 = scalar_lea.hbm %s2082_s21, 2  ;;  %p2086_p10 = scmp.lt.s32.totalorder %s2082_s21, %s3047_s1 }
 0x2a2   : > { %p2084_p9 = scmp.ne.s32.totalorder %s2082_s21, %s2083_s13  ;;  %p2087_p11 = scmp.lt.s32.totalorder %s2640_s6, %s2083_s13 }
 0x2a4   : > { %p2088_p12 = por %p2087_p11, %p2086_p10 }
 0x2a6   : > { %p2089_p13 = pnand %p2088_p12, %p2084_p9 }
 0x2a8   : > { %2092 = shalt.err (!%p2089_p13)  }
 0x2a9   : > { %s2093_s24 = sshra.s32 %s704_s17, 4  ;;  %s2094_s24 = int_to_ptr.vmem [resolvable:$true] %s2093_s24 }
 0x2aa   : > { %s2095_s7 = scalar_lea.vmem %s2094_s24, 2  ;;  %p2098_p1 = scmp.lt.s32.totalorder %s2094_s24, [#allocation2] }
 0x2ab   : > { %p2096_p0 = scmp.ne.s32.totalorder %s2094_s24, %s2095_s7  ;;  %p2099_p2 = scmp.lt.s32.totalorder %s2647_s29, %s2095_s7 }
 0x2ad   : > { %p2100_p3 = por %p2099_p2, %p2098_p1 }
 0x2af   : > { %p2101_p4 = pnand %p2100_p3, %p2096_p0 }
 0x2b1   : > { %2104 = shalt.err (!%p2101_p4)  }
 0x2b2   : > { %708 = dma.hbm_to_vmem [thread:$0]  %s702_s5, 32, %s704_s17, %s2633_s20, %s3131_s28, %s3131_s28, %s3132_s14 }
 0x2b3   : > { %s1060_s27 = scalar_lea.vmem %s2609_s18, 23 [#allocation2]  ;;  %s711_s23 = sshrl.u32 %s710_s8, 3 }
 0x2b4   : > { %s2990_s19 = sshll.u32 %s1060_s27, 4  ;;  %s712_s16 = sand.u32 7, %s710_s8   ;;  %s721_s19 = int_to_ptr.vmem [resolvable:$true] %s2990_s19 }
 0x2b5   : > { %s1180_s30 = sshll.u32 %s711_s23, 4 }
 0x2b6   : > { %s714_s22 = sadd.s32 %s1180_s30, %s712_s16 }
 0x2b7   : > { %s715_s25 = scalar_lea.hbm %s3047_s1, %s714_s22 }
 0x2b8   : > { %s718_s15 = sshll.u32 %s715_s25, 4  ;;  %s719_s15 = int_to_ptr.hbm [resolvable:$true] %s718_s15 }
 0x2b9   : > { %s2105_s26 = sshra.s32 %s719_s15, 4  ;;  %s2106_s26 = int_to_ptr.hbm [resolvable:$true] %s2105_s26 }
 0x2ba   : > { %s2107_s21 = scalar_lea.hbm %s2106_s26, 2  ;;  %p2110_p8 = scmp.lt.s32.totalorder %s2106_s26, %s3047_s1 }
 0x2bb   : > { %p2108_p7 = scmp.ne.s32.totalorder %s2106_s26, %s2107_s21  ;;  %p2111_p9 = scmp.lt.s32.totalorder %s2640_s6, %s2107_s21 }
 0x2bd   : > { %p2112_p10 = por %p2111_p9, %p2110_p8 }
 0x2bf   : > { %p2113_p11 = pnand %p2112_p10, %p2108_p7 }
 0x2c1   : > { %2116 = shalt.err (!%p2113_p11)  }
 0x2c2   : > { %s2117_s5 = sshra.s32 %s721_s19, 4  ;;  %s2118_s5 = int_to_ptr.vmem [resolvable:$true] %s2117_s5 }
 0x2c3   : > { %s2119_s8 = scalar_lea.vmem %s2118_s5, 2  ;;  %p2122_p13 = scmp.lt.s32.totalorder %s2118_s5, [#allocation2] }
 0x2c4   : > { %p2120_p12 = scmp.ne.s32.totalorder %s2118_s5, %s2119_s8  ;;  %p2123_p0 = scmp.lt.s32.totalorder %s2647_s29, %s2119_s8 }
 0x2c6   : > { %p2124_p1 = por %p2123_p0, %p2122_p13 }
 0x2c8   : > { %p2125_p2 = pnand %p2124_p1, %p2120_p12 }
 0x2ca   : > { %2128 = shalt.err (!%p2125_p2)  }
 0x2cb   : > { %725 = dma.hbm_to_vmem [thread:$0]  %s719_s15, 32, %s721_s19, %s2633_s20, %s3131_s28, %s3131_s28, %s3132_s14 }
 0x2cc PF: > { %s726_s6 = scalar_lea.sflag [#allocation3], %s3156_s10 }
 0x2cd   : > { %2183 = dma.done.wait %s726_s6, 512 }
 0x2ce   : > { %2184 = vsyncadd %s726_s6, 4294966784  ;;  %s1194_s13 = sshll.u32 %s3156_s10, 5  ;;  %v760_v0 = vld [vmem:[#allocation6] sm:$0xff]  ;;  %v761_v1 = vld [vmem:[#allocation6 + $0x8] sm:$0xff]  ;;  %v2231_v14 = vmov 256.0   ;;  %s1196_s29 = sshll.u32 %s2288_s0, 4 }
 0x2cf   : > { %s766_s9 = scalar_lea.vmem [#allocation2], %s1194_s13  ;;  %v762_v6 = vld [vmem:[#allocation6 + $0x10] sm:$0xff]  ;;  %v763_v7 = vld [vmem:[#allocation6 + $0x18] sm:$0xff]  ;;  %1283 = vrcp.f32 %v2231_v14  ;;  %v776_v48 = vld [vmem:[#allocation9] sm:$0x3]  ;;  %s3141_s28 = sld [smem:[#allocation50_spill]] }
 0x2d0   : > { %v767_v2 = vld [vmem:[%s766_s9] sm:$0xff]  ;;  %v768_v3 = vld [vmem:[%s766_s9 + $0x8] sm:$0xff]  ;;  %v769_v8 = vld [vmem:[%s766_s9 + $0x10] sm:$0xff]  ;;  %v844_v55 = vperm.slane %v776_v48, 0  ;;  %v845_v56 = vperm.slane %v776_v48, 1  ;;  %s3142_s24 = sld [smem:[#allocation63_spill]] }
 0x2d1   : > { %v771_v4 = vadd.f32 %v767_v2, %v760_v0  ;;  %v772_v5 = vadd.f32 %v768_v3, %v761_v1  ;;  %v770_v9 = vld [vmem:[%s766_s9 + $0x18] sm:$0xff]  ;;  %v773_v11 = vadd.f32 %v769_v8, %v762_v6  ;;  %v775_v45 = vld [vmem:[%s3049_s3] sm:$0x3]  ;;  %s870_s23 = sshll.u32 %s2349_s11, 4  ;;  %s871_s23 = int_to_ptr.vmem [resolvable:$true] %s870_s23 }
 0x2d2   : > { %v774_v12 = vadd.f32 %v770_v9, %v763_v7  ;;  %v835_v51 = vperm.slane %v775_v45, 0  ;;  %v836_v52 = vperm.slane %v775_v45, 1 }
 0x2d3   : > { %v777_v10 = vadd.f32 %v772_v5, %v771_v4 }
 0x2d4   : > { %v780_v13 = vadd.f32 %v774_v12, %v773_v11 }
 0x2d5   : > { %778 = vadd.xlane.f32.xlu0 %v777_v10  ;;  %v1284_v15 = vpop.eup %1283  ;;  %s3145_s0 = sand.u32 1, %s3141_s28  }
 0x2d6   : > { %v784_v16 = vmul.f32 256.0, %v1284_v15  ;;  %vm788_vm0 = vweird.f32 %v1284_v15  ;;  %s3143_s7 = smov %s3142_s24  ;;  %s869_s27 = scalar_lea.hbm %s3142_s24, %s1196_s29 }
 0x2d7   : > { %s872_s16 = sshll.u32 %s869_s27, 4  ;;  %s857_s30 = scalar_lea.sflag [#allocation8], %s3145_s0  ;;  %s873_s16 = int_to_ptr.hbm [resolvable:$true] %s872_s16 }
 0x2d8   : > { %v785_v17 = vsub.f32 1.0, %v784_v16  ;;  %s2143_s22 = sshra.s32 %s873_s16, 4  ;;  %s2149_s15 = scalar_lea.hbm %s3143_s7, 32  ;;  %s2144_s22 = int_to_ptr.hbm [resolvable:$true] %s2143_s22 }
 0x2d9   : > { %s2145_s2 = scalar_lea.hbm %s2144_s22, 16  ;;  %p2150_p8 = scmp.lt.s32.totalorder %s2144_s22, %s3143_s7 }
 0x2da   : > { %v786_v18 = vmul.f32 %v1284_v15, %v785_v17  ;;  %p2146_p3 = scmp.ne.s32.totalorder %s2144_s22, %s2145_s2  ;;  %p2151_p9 = scmp.lt.s32.totalorder %s2149_s15, %s2145_s2 }
 0x2dc   : > { %v787_v19 = vadd.f32 %v1284_v15, %v786_v18  ;;  %p2147_p4 = pnand %p2146_p3, %p2305_p5  ;;  %p2152_p10 = por %p2151_p9, %p2150_p8 }
 0x2dd   : > { %781 = vadd.xlane.f32.xlu0 %v780_v13 }
 0x2de   : > { %v789_v20 = vsel %vm788_vm0, %v1284_v15, %v787_v19  ;;  %p2148_p7 = pneg %p2147_p4 }
 0x2e0   : > { %p2153_p11 = pnand %p2152_p10, %p2148_p7 }
 0x348   : > { %v779_v21 = vpop.xlane.xlu0 %778 }
 0x349   : > { %v790_v22 = vmul.f32 %v789_v20, %v779_v21 }
 0x34b   : > { %v792_v23 = vsub.f32 %v771_v4, %v790_v22  ;;  %v793_v24 = vsub.f32 %v772_v5, %v790_v22 }
 0x34d   : > { %v796_v25 = vmul.f32 %v792_v23, %v792_v23  ;;  %v797_v26 = vmul.f32 %v793_v24, %v793_v24 }
 0x34f   : > { %v800_v27 = vadd.f32 %v797_v26, %v796_v25 }
 0x350   : > { %v782_v28 = vpop.xlane.xlu0 %781 }
 0x351   : > { %v791_v29 = vmul.f32 %v789_v20, %v782_v28  ;;  %801 = vadd.xlane.f32.xlu1 %v800_v27 }
 0x353   : > { %v794_v30 = vsub.f32 %v773_v11, %v791_v29  ;;  %v795_v31 = vsub.f32 %v774_v12, %v791_v29 }
 0x355   : > { %v798_v32 = vmul.f32 %v794_v30, %v794_v30  ;;  %v799_v33 = vmul.f32 %v795_v31, %v795_v31 }
 0x357   : > { %v803_v34 = vadd.f32 %v799_v33, %v798_v32 }
 0x359   : > { %804 = vadd.xlane.f32.xlu1 %v803_v34 }
 0x3c4   : > { %v802_v35 = vpop.xlane.xlu1 %801 }
 0x3c5   : > { %v806_v36 = vmul.f32 %v802_v35, %v789_v20 }
 0x3c7   : > { %v808_v37 = vadd.f32 1e-05, %v806_v36 }
 0x3c9   : > { %1285 = vrsqrt.f32 %v808_v37  ;;  %vm816_vm2 = vweird.f32 %v808_v37 }
 0x3cc   : > { %v805_v38 = vpop.xlane.xlu1 %804 }
 0x3cd   : > { %v807_v39 = vmul.f32 %v805_v38, %v789_v20 }
 0x3cf   : > { %v1286_v40 = vpop.eup %1285  ;;  %v809_v41 = vadd.f32 1e-05, %v807_v39 }
 0x3d0   : > { %v811_v42 = vmul.f32 %v1286_v40, %v808_v37  ;;  %vm817_vm1 = vweird.f32 %v1286_v40 }
 0x3d1   : > { %1287 = vrsqrt.f32 %v809_v41  ;;  %vm818_vm3 = vmor %vm816_vm2, %vm817_vm1  ;;  %vm826_vm5 = vweird.f32 %v809_v41 }
 0x3d2   : > { %v812_v43 = vmul.f32 %v1286_v40, %v811_v42 }
 0x3d4   : > { %v813_v44 = vmul.f32 0.5, %v812_v43 }
 0x3d6   : > { %v814_v46 = vsub.f32 1.5, %v813_v44 }
 0x3d7   : > { %v1288_v47 = vpop.eup %1287 }
 0x3d8   : > { %v815_v49 = vmul.f32 %v1286_v40, %v814_v46  ;;  %v821_v50 = vmul.f32 %v1288_v47, %v809_v41  ;;  %vm827_vm4 = vweird.f32 %v1288_v47 }
 0x3d9   : > { %vm828_vm6 = vmor %vm826_vm5, %vm827_vm4 }
 0x3da   : > { %v819_v53 = vsel %vm818_vm3, %v1286_v40, %v815_v49  ;;  %v822_v54 = vmul.f32 %v1288_v47, %v821_v50 }
 0x3db   : > { %v830_v57 = vmul.f32 %v819_v53, %v792_v23  ;;  %v831_v58 = vmul.f32 %v819_v53, %v793_v24 }
 0x3dc   : > { %v823_v59 = vmul.f32 0.5, %v822_v54 }
 0x3dd   : > { %v839_v60 = vmul.f32 %v835_v51, %v830_v57  ;;  %v840_v61 = vmul.f32 %v836_v52, %v831_v58 }
 0x3de   : > { %v824_v62 = vsub.f32 1.5, %v823_v59 }
 0x3df   : > { %v848_v63 = vadd.f32 %v844_v55, %v839_v60  ;;  %v849_v0 = vadd.f32 %v845_v56, %v840_v61 }
 0x3e0   : > { %v825_v1 = vmul.f32 %v1288_v47, %v824_v62 }
 0x3e1   : > { %v852_v2 = vpack.c.bf16 %v849_v0, %v848_v63 }
 0x3e2   : > { %v829_v3 = vsel %vm828_vm6, %v1288_v47, %v825_v1 }
 0x3e3   : > { %854 = vst [vmem:[%s2349_s11] sm:$0xff] %v852_v2  ;;  %v832_v4 = vmul.f32 %v829_v3, %v794_v30  ;;  %v833_v5 = vmul.f32 %v829_v3, %v795_v31 }
 0x3e5   : > { %v841_v6 = vmul.f32 %v835_v51, %v832_v4  ;;  %v842_v7 = vmul.f32 %v836_v52, %v833_v5 }
 0x3e7   : > { %v850_v8 = vadd.f32 %v844_v55, %v841_v6  ;;  %v851_v9 = vadd.f32 %v845_v56, %v842_v7 }
 0x3e9   : > { %v853_v10 = vpack.c.bf16 %v851_v9, %v850_v8 }
 0x3eb   : > { %855 = vst [vmem:[%s2349_s11 + $0x8] sm:$0xff] %v853_v10 }
 0x3ec   : > { %2156 = shalt.err (!%p2153_p11)
}
 0x3ed   : > { %s2232_s11 = smov 128   ;;  %s2233_s17 = smov 8  }
 0x3ee   : > { %1205 = dma.vmem_to_hbm [thread:$0]  (%p2305_p5), %s871_s23, 256, %s873_s16, %s857_s30, %s2232_s11, %s2232_s11, %s2233_s17  }
 0x3ef PF: > { %s3146_s18 = sld [smem:[#allocation52_spill]] }
 0x3f0   : > { %s3147_s5 = sld [smem:[#allocation49_spill]] }
 0x3f5   : > { %p1222_p12 = scmp.ge.s32.totalorder %s3146_s18, 2 }
 0x3f6   : > { %s887_s6 = sand.u32 1, %s3147_s5  }
 0x3f7   : > { %p1215_p13 = pnand %p1222_p12, %p2309_p6  ;;  %s888_s13 = scalar_lea.sflag [#allocation8], %s887_s6 }
 0x3f9   : > { %p1216_p0 = pneg %p1215_p13 }
 0x3fb   : > { %2186 = dma.done.wait (%p1216_p0), %s888_s13, 256  }
 0x3fc   : > { %2188 = vsyncadd (%p1216_p0), %s888_s13, 4294967040  ;;  %s3149_s25 = sld [smem:[#allocation53_spill]] }
 0x3fd   : > { %s3150_s22 = sld [smem:[#allocation50_spill]] }
 0x3fe   : > { %s3151_s23 = sld [smem:[#allocation51_spill]] }
 0x3ff   : > { %s3152_s24 = sld [smem:[#allocation54_spill]] }
 0x402   : > { %p25_p1 = scmp.ge.s32.totalorder %s3149_s25, 4  }
 0x404   :  { %27 = sbr.rel (!%p25_p1) target bundleno = 13 (0xd), region = 148 }
 0x409   :  { %894 = vsyncpa [#allocation7], 1 }
 0x40a   :  { %896 = vsyncpa [#allocation7 + $0x1], 1 }
 0x40b   :  { %897 = vsyncpa [#allocation10], 1 }
 0x40c   :  { %898 = vsyncpa [#allocation8], 1 }
 0x40d   :  { %900 = vsyncpa [#allocation8 + $0x1], 1 }
 0x40e   :  { %901 = vsyncmov [#allocation3] }
 0x411   :  { %s902_s9 = vpop.sfrf %901 }
 0x412   :  { %p1190_p5 = scmp.ne.s32.totalorder %s902_s9, 0 }
 0x414   :  { %906 = shalt.err (%p1190_p5)  }
 0x415   :  { %908 = vsyncmov [#allocation3 + $0x1] }
 0x418   :  { %s909_s10 = vpop.sfrf %908 }
 0x419   :  { %p1191_p6 = scmp.ne.s32.totalorder %s909_s10, 0 }
 0x41b   :  { %913 = shalt.err (%p1191_p6)  }

</bundles_post_ra>
